<compile_context>
chip_gen: v5e
topology: v5e:2x2
jax: 0.10.0
libtpu: 0.0.40
codegen_flags: <defaults>
</compile_context>

<pallas_src>
import math
import jax
import jax.numpy as jnp
from jax.experimental import pallas as pl
from jax.experimental.pallas import tpu as pltpu

FP = 128  # padded lane width used for every feature dimension
VMEM_SPEC = pl.BlockSpec(memory_space=pltpu.MemorySpace.VMEM)


def _round_up(x, m):
    return ((x + m - 1) // m) * m


# ------------------------------ fused kernel ---------------------------------
def _gine_fused_kernel(src_ref, dst_ref, bat_ref, x_ref, ea_ref,
                       wl_ref, bl_ref, w1_ref, b1_ref, w2_ref, b2_ref,
                       hw1_ref, hb1_ref, hw2_ref, hb2_ref, out_ref):
    N = x_ref.shape[0]
    E = ea_ref.shape[0]
    G, F = out_ref.shape

    # --- one (N, E) node iota; both graph operators derive from it.
    # src_ohT[n, e] = (n == src[e])  -> gather  via transposed-LHS matmul
    # dstT_oh[n, e] = (n == dst[e])  -> scatter-add
    node_iota_ne = jax.lax.broadcasted_iota(jnp.int32, (N, E), 0)
    src_ohT = (node_iota_ne == src_ref[...]).astype(jnp.bfloat16)       # (N, E)
    dstT_oh = (node_iota_ne == dst_ref[...]).astype(jnp.bfloat16)       # (N, E)

    # mean-pool operator: gmat[g, n] = (g == batch[n])
    graph_iota = jax.lax.broadcasted_iota(jnp.int32, (G, N), 0)
    gmask = graph_iota == bat_ref[...]                                  # (G, N)
    counts = jnp.sum(gmask.astype(jnp.float32), axis=1, keepdims=True)
    inv_cnt = 1.0 / jnp.maximum(counts, 1.0)
    gmat = gmask.astype(jnp.bfloat16)

    # --- fused edge-attr projection for all three layers (384-wide N on MXU)
    ea_b = ea_ref[...]                                                  # bf16 (E, FP)
    e_all = jnp.dot(ea_b, wl_ref[...], preferred_element_type=jnp.float32)  # (E, 3*FP)

    h = x_ref[...].astype(jnp.float32)       # f32 master copy of node features
    hh_acc = jnp.zeros((G, F), jnp.float32)  # head lin1 accumulator (no concat)

    for l in range(3):                       # three GINEConv layers (unrolled)
        h_b = h.astype(jnp.bfloat16)
        # gather x_j = x[src[e]] : contract node axis of the transposed one-hot
        x_j = jax.lax.dot_general(src_ohT, h_b, (((0,), (0,)), ((), ())),
                                  preferred_element_type=jnp.float32)   # (E, FP)
        # this layer's edge projection (static, lane-aligned slice) + bias
        e_proj = e_all[:, l * FP:(l + 1) * FP] + bl_ref[l]
        # GINE message: relu(x_j + lin(edge_attr))
        m = jnp.maximum(x_j + e_proj, 0.0).astype(jnp.bfloat16)
        # scatter-add to destination nodes
        aggr = jnp.dot(dstT_oh, m, preferred_element_type=jnp.float32)  # (N, FP)
        # (1 + eps) * x_i + aggr  with eps = 0
        z = (h + aggr).astype(jnp.bfloat16)
        # nn = Linear(+folded BatchNorm) -> ReLU -> Linear -> ReLU
        t = jnp.dot(z, w1_ref[l], preferred_element_type=jnp.float32) + b1_ref[l]
        t = jnp.maximum(t, 0.0).astype(jnp.bfloat16)
        t = jnp.dot(t, w2_ref[l], preferred_element_type=jnp.float32) + b2_ref[l]
        h = jnp.maximum(t, 0.0)
        # mean pool of this layer's node embeddings
        g = jnp.dot(gmat, h.astype(jnp.bfloat16),
                    preferred_element_type=jnp.float32) * inv_cnt        # (G, FP)
        # head lin1 contribution of this layer (replaces the concat matmul)
        hh_acc = hh_acc + jnp.dot(g.astype(jnp.bfloat16), hw1_ref[l],
                                  preferred_element_type=jnp.float32)

    # head: relu(lin1) -> (dropout: identity) -> lin2 -> sigmoid
    hh = jnp.maximum(hh_acc + hb1_ref[...], 0.0).astype(jnp.bfloat16)
    o = jnp.dot(hh, hw2_ref[...], preferred_element_type=jnp.float32) + hb2_ref[...]
    out_ref[...] = jax.nn.sigmoid(o)


# ------------------------------ parameter setup -------------------------------
def _linear(key, in_dim, out_dim):
    # matches torch.nn.Linear default init: U(-1/sqrt(in), 1/sqrt(in))
    kw, kb = jax.random.split(key)
    bound = 1.0 / math.sqrt(in_dim)
    w = jax.random.uniform(kw, (in_dim, out_dim), jnp.float32, -bound, bound)
    b = jax.random.uniform(kb, (out_dim,), jnp.float32, -bound, bound)
    return w, b


def _pad2(a, rows, cols):
    out = jnp.zeros((rows, cols), a.dtype)
    return out.at[:a.shape[0], :a.shape[1]].set(a)


def _gine_conv_params(key, in_dim, hidden_dim, edge_dim):
    k1, k2, k3 = jax.random.split(key, 3)
    wl, bl = _linear(k1, edge_dim, in_dim)        # GINEConv.lin: edge_dim -> in
    w1, b1 = _linear(k2, in_dim, hidden_dim)      # nn[0]
    w2, b2 = _linear(k3, hidden_dim, hidden_dim)  # nn[3]
    # fold eval-mode BatchNorm1d (torch defaults: gamma=1, beta=0, mean=0, var=1)
    bn_eps = 1e-5
    scale = 1.0 / jnp.sqrt(jnp.ones((hidden_dim,), jnp.float32) + bn_eps)
    shift = jnp.zeros((hidden_dim,), jnp.float32)
    w1 = w1 * scale[None, :]
    b1 = b1 * scale + shift
    return wl, bl, w1, b1, w2, b2


def init_gine_model_params(key, node_in_dim, hidden_dim, output_dim,
                           fc_hidden_dim, num_edge_features):
    kc1, kc2, kc3, kl1, kl2 = jax.random.split(key, 5)
    convs = [
        _gine_conv_params(kc1, node_in_dim, hidden_dim, num_edge_features),
        _gine_conv_params(kc2, hidden_dim, hidden_dim, num_edge_features),
        _gine_conv_params(kc3, hidden_dim, hidden_dim, num_edge_features),
    ]
    # concatenated edge-attr projection weight: (FP, 3*FP), one 128-col block/layer
    wl_cat = jnp.zeros((FP, 3 * FP), jnp.float32)
    for l, c in enumerate(convs):
        wl_nat = c[0]                                     # (edge_dim, in_dim_l)
        wl_cat = wl_cat.at[:wl_nat.shape[0],
                           l * FP:l * FP + wl_nat.shape[1]].set(wl_nat)
    bl = jnp.stack([_pad2(c[1][None, :], 1, FP) for c in convs])
    w1 = jnp.stack([_pad2(c[2], FP, FP) for c in convs]).astype(jnp.bfloat16)
    b1 = jnp.stack([_pad2(c[3][None, :], 1, FP) for c in convs])
    w2 = jnp.stack([_pad2(c[4], FP, FP) for c in convs]).astype(jnp.bfloat16)
    b2 = jnp.stack([_pad2(c[5][None, :], 1, FP) for c in convs])

    fc3 = fc_hidden_dim * 3
    hw1_nat, hb1_nat = _linear(kl1, hidden_dim * 3, fc3)    # lin1
    hw2_nat, hb2_nat = _linear(kl2, fc3, output_dim)        # lin2
    # lin1 weight kept as three per-layer blocks (accumulated in-kernel, no concat)
    hw1 = jnp.stack([
        _pad2(hw1_nat[l * hidden_dim:(l + 1) * hidden_dim, :], FP, FP)
        for l in range(3)
    ]).astype(jnp.bfloat16)
    hb1 = _pad2(hb1_nat[None, :], 1, FP)
    hw2 = _pad2(hw2_nat, FP, FP).astype(jnp.bfloat16)
    hb2 = _pad2(hb2_nat[None, :], 1, FP)

    return dict(wl=wl_cat.astype(jnp.bfloat16), bl=bl, w1=w1, b1=b1,
                w2=w2, b2=b2, hw1=hw1, hb1=hb1, hw2=hw2, hb2=hb2,
                output_dim=output_dim)


# --------------------------------- forward ------------------------------------
def gine_model_forward(x, edge_index, edge_attr, batch, params, num_graphs):
    n = x.shape[0]
    e = edge_attr.shape[0]
    n_pad = _round_up(max(n, 8), 128)
    e_pad = _round_up(max(e, 8), 128)
    g_pad = _round_up(max(num_graphs, 16), 16)   # bf16 (16,128) tile minimum

    x_p = _pad2(x.astype(jnp.float32), n_pad, FP).astype(jnp.bfloat16)
    ea_p = _pad2(edge_attr.astype(jnp.float32), e_pad, FP).astype(jnp.bfloat16)
    # padded edges / nodes use index -1: they match no node / graph -> contribute 0
    src = jnp.full((1, e_pad), -1, jnp.int32).at[0, :e].set(
        edge_index[0].astype(jnp.int32))
    dst = jnp.full((1, e_pad), -1, jnp.int32).at[0, :e].set(
        edge_index[1].astype(jnp.int32))
    bat = jnp.full((1, n_pad), -1, jnp.int32).at[0, :n].set(batch.astype(jnp.int32))

    args = (src, dst, bat, x_p, ea_p,
            params["wl"], params["bl"], params["w1"], params["b1"],
            params["w2"], params["b2"],
            params["hw1"], params["hb1"], params["hw2"], params["hb2"])

    # cost / vmem bookkeeping derived from actual buffer sizes
    in_bytes = sum(int(a.size) * a.dtype.itemsize for a in args)
    out_bytes = g_pad * FP * 4
    flops = (
        2 * e_pad * FP * (3 * FP)                       # fused edge projection
        + 3 * (2 * e_pad * n_pad * FP                   # gather
               + 2 * n_pad * e_pad * FP                 # scatter-add
               + 2 * 2 * n_pad * FP * FP                # two nn linears
               + 2 * g_pad * n_pad * FP                 # mean pool
               + 2 * g_pad * FP * FP)                   # head lin1 block
        + 2 * g_pad * FP * FP                           # head lin2
    )
    transcendentals = g_pad * FP                        # sigmoid
    # live intermediates: (N,E) iota + 2x bf16 one-hot, (E,3FP) f32 edge proj,
    # a few (E,FP)/(N,FP) f32 temporaries, pool/head temporaries
    scratch_bytes = (n_pad * e_pad * (4 + 2 * 2)
                     + e_pad * 3 * FP * 4
                     + 6 * e_pad * FP * 4
                     + 8 * n_pad * FP * 4
                     + 6 * g_pad * max(n_pad, FP) * 4)
    vmem_limit = min(96 * 1024 * 1024,
                     max(8 * 1024 * 1024,
                         _round_up(2 * (in_bytes + out_bytes) + 2 * scratch_bytes,
                                   1 << 20)))

    out = pl.pallas_call(
        _gine_fused_kernel,
        out_shape=jax.ShapeDtypeStruct((g_pad, FP), jnp.float32),
        in_specs=[VMEM_SPEC] * len(args),
        out_specs=VMEM_SPEC,
        compiler_params=pltpu.CompilerParams(vmem_limit_bytes=vmem_limit),
        cost_estimate=pl.CostEstimate(flops=flops,
                                      transcendentals=transcendentals,
                                      bytes_accessed=in_bytes + out_bytes),
    )(*args)
    return out[:num_graphs, :params["output_dim"]]


# ----------------------------------- main --------------------------------------
if __name__ == "__main__":
    NODE_IN_DIM = 8
    HIDDEN_DIM = 32
    OUTPUT_DIM = 4
    FC_HIDDEN_DIM = 16
    NUM_EDGE_FEATURES = 6
    N_NODES = 16
    N_EDGES = 32
    N_GRAPHS = 2

    key = jax.random.PRNGKey(0)
    kx, kea, ksrc, kdst, kparams = jax.random.split(key, 5)

    x = jax.random.normal(kx, (N_NODES, NODE_IN_DIM), jnp.float32)
    edge_attr = jax.random.normal(kea, (N_EDGES, NUM_EDGE_FEATURES), jnp.float32)
    # edges stay within their graph (nodes 0-7 -> graph 0, 8-15 -> graph 1)
    src0 = jax.random.randint(ksrc, (N_EDGES // 2,), 0, N_NODES // 2)
    dst0 = jax.random.randint(kdst, (N_EDGES // 2,), 0, N_NODES // 2)
    src1 = jax.random.randint(ksrc, (N_EDGES // 2,), N_NODES // 2, N_NODES)
    dst1 = jax.random.randint(kdst, (N_EDGES // 2,), N_NODES // 2, N_NODES)
    edge_index = jnp.stack([jnp.concatenate([src0, src1]),
                            jnp.concatenate([dst0, dst1])], axis=0)
    batch = jnp.concatenate([jnp.zeros((N_NODES // 2,), jnp.int32),
                             jnp.ones((N_NODES // 2,), jnp.int32)])

    params = init_gine_model_params(kparams, NODE_IN_DIM, HIDDEN_DIM,
                                    OUTPUT_DIM, FC_HIDDEN_DIM,
                                    NUM_EDGE_FEATURES)

    out = gine_model_forward(x, edge_index, edge_attr, batch, params, N_GRAPHS)
    out = jax.block_until_ready(out)
    assert out.shape == (N_GRAPHS, OUTPUT_DIM)
    assert bool(jnp.all(jnp.isfinite(out)))
    assert bool(jnp.all((out >= 0.0) & (out <= 1.0)))
    print("KERNEL_OK")
</pallas_src>

<mosaic_0001>
module attributes {stable_mosaic.version = 11 : i64} {
  func.func @_gine_fused_kernel(%arg0: memref<1x128xi32, #tpu.memory_space<vmem>>, %arg1: memref<1x128xi32, #tpu.memory_space<vmem>>, %arg2: memref<1x128xi32, #tpu.memory_space<vmem>>, %arg3: memref<128x128xbf16, #tpu.memory_space<vmem>>, %arg4: memref<128x128xbf16, #tpu.memory_space<vmem>>, %arg5: memref<128x384xbf16, #tpu.memory_space<vmem>>, %arg6: memref<3x1x128xf32, #tpu.memory_space<vmem>>, %arg7: memref<3x128x128xbf16, #tpu.memory_space<vmem>>, %arg8: memref<3x1x128xf32, #tpu.memory_space<vmem>>, %arg9: memref<3x128x128xbf16, #tpu.memory_space<vmem>>, %arg10: memref<3x1x128xf32, #tpu.memory_space<vmem>>, %arg11: memref<3x128x128xbf16, #tpu.memory_space<vmem>>, %arg12: memref<1x128xf32, #tpu.memory_space<vmem>>, %arg13: memref<128x128xbf16, #tpu.memory_space<vmem>>, %arg14: memref<1x128xf32, #tpu.memory_space<vmem>>, %arg15: memref<16x128xf32, #tpu.memory_space<vmem>>) attributes {dimension_semantics = [], scalar_prefetch = 0 : i64, scratch_operands = 0 : i64, tpu.core_type = #tpu.core_type<tc>} {
    %0 = tpu.iota {dimensions = array<i32: 0>} : vector<128x128xi32>
    %c0 = arith.constant 0 : index
    %c0_0 = arith.constant 0 : index
    %1 = vector.load %arg0[%c0, %c0_0] : memref<1x128xi32, #tpu.memory_space<vmem>>, vector<1x128xi32>
    %2 = vector.broadcast %1 : vector<1x128xi32> to vector<128x128xi32>
    %3 = arith.cmpi eq, %0, %2 : vector<128x128xi32>
    %4 = arith.extui %3 : vector<128x128xi1> to vector<128x128xi32>
    %5 = arith.sitofp %4 : vector<128x128xi32> to vector<128x128xf32>
    %6 = arith.truncf %5 : vector<128x128xf32> to vector<128x128xbf16>
    %c0_1 = arith.constant 0 : index
    %c0_2 = arith.constant 0 : index
    %7 = vector.load %arg1[%c0_1, %c0_2] : memref<1x128xi32, #tpu.memory_space<vmem>>, vector<1x128xi32>
    %8 = vector.broadcast %7 : vector<1x128xi32> to vector<128x128xi32>
    %9 = arith.cmpi eq, %0, %8 : vector<128x128xi32>
    %10 = arith.extui %9 : vector<128x128xi1> to vector<128x128xi32>
    %11 = arith.sitofp %10 : vector<128x128xi32> to vector<128x128xf32>
    %12 = arith.truncf %11 : vector<128x128xf32> to vector<128x128xbf16>
    %13 = tpu.iota {dimensions = array<i32: 0>} : vector<16x128xi32>
    %c0_3 = arith.constant 0 : index
    %c0_4 = arith.constant 0 : index
    %14 = vector.load %arg2[%c0_3, %c0_4] : memref<1x128xi32, #tpu.memory_space<vmem>>, vector<1x128xi32>
    %15 = vector.broadcast %14 : vector<1x128xi32> to vector<16x128xi32>
    %16 = arith.cmpi eq, %13, %15 : vector<16x128xi32>
    %17 = arith.extui %16 : vector<16x128xi1> to vector<16x128xi32>
    %18 = arith.sitofp %17 : vector<16x128xi32> to vector<16x128xf32>
    %cst = arith.constant dense<0.000000e+00> : vector<16xf32>
    %19 = vector.multi_reduction <add>, %18, %cst [1] : vector<16x128xf32> to vector<16xf32>
    %20 = vector.shape_cast %19 : vector<16xf32> to vector<16x1xf32>
    %cst_5 = arith.constant 1.000000e+00 : f32
    %21 = vector.broadcast %cst_5 : f32 to vector<16x1xf32>
    %22 = arith.maximumf %20, %21 : vector<16x1xf32>
    %cst_6 = arith.constant 1.000000e+00 : f32
    %23 = vector.broadcast %cst_6 : f32 to vector<16x1xf32>
    %24 = arith.divf %23, %22 : vector<16x1xf32>
    %25 = arith.extui %16 : vector<16x128xi1> to vector<16x128xi32>
    %26 = arith.sitofp %25 : vector<16x128xi32> to vector<16x128xf32>
    %27 = arith.truncf %26 : vector<16x128xf32> to vector<16x128xbf16>
    %c0_7 = arith.constant 0 : index
    %c0_8 = arith.constant 0 : index
    %28 = vector.load %arg4[%c0_7, %c0_8] : memref<128x128xbf16, #tpu.memory_space<vmem>>, vector<128x128xbf16>
    %c0_9 = arith.constant 0 : index
    %c0_10 = arith.constant 0 : index
    %29 = vector.load %arg5[%c0_9, %c0_10] : memref<128x384xbf16, #tpu.memory_space<vmem>>, vector<128x384xbf16>
    %cst_11 = arith.constant dense<0.000000e+00> : vector<128x384xf32>
    %30 = tpu.matmul %28, %29, %cst_11 {dimension_numbers = #tpu.dot_dimension_numbers<[1], [0], [0], [1], [0, 0, 1, 1], [], []>} : vector<128x128xbf16>, vector<128x384xbf16>, vector<128x384xf32> -> vector<128x384xf32>
    %c0_12 = arith.constant 0 : index
    %c0_13 = arith.constant 0 : index
    %31 = vector.load %arg3[%c0_12, %c0_13] : memref<128x128xbf16, #tpu.memory_space<vmem>>, vector<128x128xbf16>
    %32 = arith.extf %31 : vector<128x128xbf16> to vector<128x128xf32>
    %cst_14 = arith.constant 0.000000e+00 : f32
    %33 = vector.broadcast %cst_14 : f32 to vector<16x128xf32>
    %34 = arith.truncf %32 : vector<128x128xf32> to vector<128x128xbf16>
    %cst_15 = arith.constant dense<0.000000e+00> : vector<128x128xf32>
    %35 = tpu.matmul %6, %34, %cst_15 {dimension_numbers = #tpu.dot_dimension_numbers<[0], [0], [1], [1], [0, 1, 1, 1], [], []>} : vector<128x128xbf16>, vector<128x128xbf16>, vector<128x128xf32> -> vector<128x128xf32>
    %36 = vector.extract_strided_slice %30 {offsets = [0, 0], sizes = [128, 128], strides = [1, 1]} : vector<128x384xf32> to vector<128x128xf32>
    %c0_16 = arith.constant 0 : index
    %c0_17 = arith.constant 0 : index
    %c0_18 = arith.constant 0 : index
    %37 = vector.load %arg6[%c0_16, %c0_17, %c0_18] : memref<3x1x128xf32, #tpu.memory_space<vmem>>, vector<1x1x128xf32>
    %38 = vector.shape_cast %37 : vector<1x1x128xf32> to vector<1x128xf32>
    %39 = vector.broadcast %38 : vector<1x128xf32> to vector<128x128xf32>
    %40 = arith.addf %36, %39 : vector<128x128xf32>
    %41 = arith.addf %35, %40 : vector<128x128xf32>
    %cst_19 = arith.constant 0.000000e+00 : f32
    %42 = vector.broadcast %cst_19 : f32 to vector<128x128xf32>
    %43 = arith.maximumf %41, %42 : vector<128x128xf32>
    %44 = arith.truncf %43 : vector<128x128xf32> to vector<128x128xbf16>
    %cst_20 = arith.constant dense<0.000000e+00> : vector<128x128xf32>
    %45 = tpu.matmul %12, %44, %cst_20 {dimension_numbers = #tpu.dot_dimension_numbers<[1], [0], [0], [1], [0, 0, 1, 1], [], []>} : vector<128x128xbf16>, vector<128x128xbf16>, vector<128x128xf32> -> vector<128x128xf32>
    %46 = arith.addf %32, %45 : vector<128x128xf32>
    %47 = arith.truncf %46 : vector<128x128xf32> to vector<128x128xbf16>
    %c0_21 = arith.constant 0 : index
    %c0_22 = arith.constant 0 : index
    %c0_23 = arith.constant 0 : index
    %48 = vector.load %arg7[%c0_21, %c0_22, %c0_23] : memref<3x128x128xbf16, #tpu.memory_space<vmem>>, vector<1x128x128xbf16>
    %49 = vector.shape_cast %48 : vector<1x128x128xbf16> to vector<128x128xbf16>
    %cst_24 = arith.constant dense<0.000000e+00> : vector<128x128xf32>
    %50 = tpu.matmul %47, %49, %cst_24 {dimension_numbers = #tpu.dot_dimension_numbers<[1], [0], [0], [1], [0, 0, 1, 1], [], []>} : vector<128x128xbf16>, vector<128x128xbf16>, vector<128x128xf32> -> vector<128x128xf32>
    %c0_25 = arith.constant 0 : index
    %c0_26 = arith.constant 0 : index
    %c0_27 = arith.constant 0 : index
    %51 = vector.load %arg8[%c0_25, %c0_26, %c0_27] : memref<3x1x128xf32, #tpu.memory_space<vmem>>, vector<1x1x128xf32>
    %52 = vector.shape_cast %51 : vector<1x1x128xf32> to vector<1x128xf32>
    %53 = vector.broadcast %52 : vector<1x128xf32> to vector<128x128xf32>
    %54 = arith.addf %50, %53 : vector<128x128xf32>
    %cst_28 = arith.constant 0.000000e+00 : f32
    %55 = vector.broadcast %cst_28 : f32 to vector<128x128xf32>
    %56 = arith.maximumf %54, %55 : vector<128x128xf32>
    %57 = arith.truncf %56 : vector<128x128xf32> to vector<128x128xbf16>
    %c0_29 = arith.constant 0 : index
    %c0_30 = arith.constant 0 : index
    %c0_31 = arith.constant 0 : index
    %58 = vector.load %arg9[%c0_29, %c0_30, %c0_31] : memref<3x128x128xbf16, #tpu.memory_space<vmem>>, vector<1x128x128xbf16>
    %59 = vector.shape_cast %58 : vector<1x128x128xbf16> to vector<128x128xbf16>
    %cst_32 = arith.constant dense<0.000000e+00> : vector<128x128xf32>
    %60 = tpu.matmul %57, %59, %cst_32 {dimension_numbers = #tpu.dot_dimension_numbers<[1], [0], [0], [1], [0, 0, 1, 1], [], []>} : vector<128x128xbf16>, vector<128x128xbf16>, vector<128x128xf32> -> vector<128x128xf32>
    %c0_33 = arith.constant 0 : index
    %c0_34 = arith.constant 0 : index
    %c0_35 = arith.constant 0 : index
    %61 = vector.load %arg10[%c0_33, %c0_34, %c0_35] : memref<3x1x128xf32, #tpu.memory_space<vmem>>, vector<1x1x128xf32>
    %62 = vector.shape_cast %61 : vector<1x1x128xf32> to vector<1x128xf32>
    %63 = vector.broadcast %62 : vector<1x128xf32> to vector<128x128xf32>
    %64 = arith.addf %60, %63 : vector<128x128xf32>
    %cst_36 = arith.constant 0.000000e+00 : f32
    %65 = vector.broadcast %cst_36 : f32 to vector<128x128xf32>
    %66 = arith.maximumf %64, %65 : vector<128x128xf32>
    %67 = arith.truncf %66 : vector<128x128xf32> to vector<128x128xbf16>
    %cst_37 = arith.constant dense<0.000000e+00> : vector<16x128xf32>
    %68 = tpu.matmul %27, %67, %cst_37 {dimension_numbers = #tpu.dot_dimension_numbers<[1], [0], [0], [1], [0, 0, 1, 1], [], []>} : vector<16x128xbf16>, vector<128x128xbf16>, vector<16x128xf32> -> vector<16x128xf32>
    %69 = vector.broadcast %24 : vector<16x1xf32> to vector<16x128xf32>
    %70 = arith.mulf %68, %69 : vector<16x128xf32>
    %71 = arith.truncf %70 : vector<16x128xf32> to vector<16x128xbf16>
    %c0_38 = arith.constant 0 : index
    %c0_39 = arith.constant 0 : index
    %c0_40 = arith.constant 0 : index
    %72 = vector.load %arg11[%c0_38, %c0_39, %c0_40] : memref<3x128x128xbf16, #tpu.memory_space<vmem>>, vector<1x128x128xbf16>
    %73 = vector.shape_cast %72 : vector<1x128x128xbf16> to vector<128x128xbf16>
    %cst_41 = arith.constant dense<0.000000e+00> : vector<16x128xf32>
    %74 = tpu.matmul %71, %73, %cst_41 {dimension_numbers = #tpu.dot_dimension_numbers<[1], [0], [0], [1], [0, 0, 1, 1], [], []>} : vector<16x128xbf16>, vector<128x128xbf16>, vector<16x128xf32> -> vector<16x128xf32>
    %75 = arith.addf %33, %74 : vector<16x128xf32>
    %76 = arith.truncf %66 : vector<128x128xf32> to vector<128x128xbf16>
    %cst_42 = arith.constant dense<0.000000e+00> : vector<128x128xf32>
    %77 = tpu.matmul %6, %76, %cst_42 {dimension_numbers = #tpu.dot_dimension_numbers<[0], [0], [1], [1], [0, 1, 1, 1], [], []>} : vector<128x128xbf16>, vector<128x128xbf16>, vector<128x128xf32> -> vector<128x128xf32>
    %78 = vector.extract_strided_slice %30 {offsets = [0, 128], sizes = [128, 128], strides = [1, 1]} : vector<128x384xf32> to vector<128x128xf32>
    %c1 = arith.constant 1 : index
    %c0_43 = arith.constant 0 : index
    %c0_44 = arith.constant 0 : index
    %79 = vector.load %arg6[%c1, %c0_43, %c0_44] : memref<3x1x128xf32, #tpu.memory_space<vmem>>, vector<1x1x128xf32>
    %80 = vector.shape_cast %79 : vector<1x1x128xf32> to vector<1x128xf32>
    %81 = vector.broadcast %80 : vector<1x128xf32> to vector<128x128xf32>
    %82 = arith.addf %78, %81 : vector<128x128xf32>
    %83 = arith.addf %77, %82 : vector<128x128xf32>
    %cst_45 = arith.constant 0.000000e+00 : f32
    %84 = vector.broadcast %cst_45 : f32 to vector<128x128xf32>
    %85 = arith.maximumf %83, %84 : vector<128x128xf32>
    %86 = arith.truncf %85 : vector<128x128xf32> to vector<128x128xbf16>
    %cst_46 = arith.constant dense<0.000000e+00> : vector<128x128xf32>
    %87 = tpu.matmul %12, %86, %cst_46 {dimension_numbers = #tpu.dot_dimension_numbers<[1], [0], [0], [1], [0, 0, 1, 1], [], []>} : vector<128x128xbf16>, vector<128x128xbf16>, vector<128x128xf32> -> vector<128x128xf32>
    %88 = arith.addf %66, %87 : vector<128x128xf32>
    %89 = arith.truncf %88 : vector<128x128xf32> to vector<128x128xbf16>
    %c1_47 = arith.constant 1 : index
    %c0_48 = arith.constant 0 : index
    %c0_49 = arith.constant 0 : index
    %90 = vector.load %arg7[%c1_47, %c0_48, %c0_49] : memref<3x128x128xbf16, #tpu.memory_space<vmem>>, vector<1x128x128xbf16>
    %91 = vector.shape_cast %90 : vector<1x128x128xbf16> to vector<128x128xbf16>
    %cst_50 = arith.constant dense<0.000000e+00> : vector<128x128xf32>
    %92 = tpu.matmul %89, %91, %cst_50 {dimension_numbers = #tpu.dot_dimension_numbers<[1], [0], [0], [1], [0, 0, 1, 1], [], []>} : vector<128x128xbf16>, vector<128x128xbf16>, vector<128x128xf32> -> vector<128x128xf32>
    %c1_51 = arith.constant 1 : index
    %c0_52 = arith.constant 0 : index
    %c0_53 = arith.constant 0 : index
    %93 = vector.load %arg8[%c1_51, %c0_52, %c0_53] : memref<3x1x128xf32, #tpu.memory_space<vmem>>, vector<1x1x128xf32>
    %94 = vector.shape_cast %93 : vector<1x1x128xf32> to vector<1x128xf32>
    %95 = vector.broadcast %94 : vector<1x128xf32> to vector<128x128xf32>
    %96 = arith.addf %92, %95 : vector<128x128xf32>
    %cst_54 = arith.constant 0.000000e+00 : f32
    %97 = vector.broadcast %cst_54 : f32 to vector<128x128xf32>
    %98 = arith.maximumf %96, %97 : vector<128x128xf32>
    %99 = arith.truncf %98 : vector<128x128xf32> to vector<128x128xbf16>
    %c1_55 = arith.constant 1 : index
    %c0_56 = arith.constant 0 : index
    %c0_57 = arith.constant 0 : index
    %100 = vector.load %arg9[%c1_55, %c0_56, %c0_57] : memref<3x128x128xbf16, #tpu.memory_space<vmem>>, vector<1x128x128xbf16>
    %101 = vector.shape_cast %100 : vector<1x128x128xbf16> to vector<128x128xbf16>
    %cst_58 = arith.constant dense<0.000000e+00> : vector<128x128xf32>
    %102 = tpu.matmul %99, %101, %cst_58 {dimension_numbers = #tpu.dot_dimension_numbers<[1], [0], [0], [1], [0, 0, 1, 1], [], []>} : vector<128x128xbf16>, vector<128x128xbf16>, vector<128x128xf32> -> vector<128x128xf32>
    %c1_59 = arith.constant 1 : index
    %c0_60 = arith.constant 0 : index
    %c0_61 = arith.constant 0 : index
    %103 = vector.load %arg10[%c1_59, %c0_60, %c0_61] : memref<3x1x128xf32, #tpu.memory_space<vmem>>, vector<1x1x128xf32>
    %104 = vector.shape_cast %103 : vector<1x1x128xf32> to vector<1x128xf32>
    %105 = vector.broadcast %104 : vector<1x128xf32> to vector<128x128xf32>
    %106 = arith.addf %102, %105 : vector<128x128xf32>
    %cst_62 = arith.constant 0.000000e+00 : f32
    %107 = vector.broadcast %cst_62 : f32 to vector<128x128xf32>
    %108 = arith.maximumf %106, %107 : vector<128x128xf32>
    %109 = arith.truncf %108 : vector<128x128xf32> to vector<128x128xbf16>
    %cst_63 = arith.constant dense<0.000000e+00> : vector<16x128xf32>
    %110 = tpu.matmul %27, %109, %cst_63 {dimension_numbers = #tpu.dot_dimension_numbers<[1], [0], [0], [1], [0, 0, 1, 1], [], []>} : vector<16x128xbf16>, vector<128x128xbf16>, vector<16x128xf32> -> vector<16x128xf32>
    %111 = vector.broadcast %24 : vector<16x1xf32> to vector<16x128xf32>
    %112 = arith.mulf %110, %111 : vector<16x128xf32>
    %113 = arith.truncf %112 : vector<16x128xf32> to vector<16x128xbf16>
    %c1_64 = arith.constant 1 : index
    %c0_65 = arith.constant 0 : index
    %c0_66 = arith.constant 0 : index
    %114 = vector.load %arg11[%c1_64, %c0_65, %c0_66] : memref<3x128x128xbf16, #tpu.memory_space<vmem>>, vector<1x128x128xbf16>
    %115 = vector.shape_cast %114 : vector<1x128x128xbf16> to vector<128x128xbf16>
    %cst_67 = arith.constant dense<0.000000e+00> : vector<16x128xf32>
    %116 = tpu.matmul %113, %115, %cst_67 {dimension_numbers = #tpu.dot_dimension_numbers<[1], [0], [0], [1], [0, 0, 1, 1], [], []>} : vector<16x128xbf16>, vector<128x128xbf16>, vector<16x128xf32> -> vector<16x128xf32>
    %117 = arith.addf %75, %116 : vector<16x128xf32>
    %118 = arith.truncf %108 : vector<128x128xf32> to vector<128x128xbf16>
    %cst_68 = arith.constant dense<0.000000e+00> : vector<128x128xf32>
    %119 = tpu.matmul %6, %118, %cst_68 {dimension_numbers = #tpu.dot_dimension_numbers<[0], [0], [1], [1], [0, 1, 1, 1], [], []>} : vector<128x128xbf16>, vector<128x128xbf16>, vector<128x128xf32> -> vector<128x128xf32>
    %120 = vector.extract_strided_slice %30 {offsets = [0, 256], sizes = [128, 128], strides = [1, 1]} : vector<128x384xf32> to vector<128x128xf32>
    %c2 = arith.constant 2 : index
    %c0_69 = arith.constant 0 : index
    %c0_70 = arith.constant 0 : index
    %121 = vector.load %arg6[%c2, %c0_69, %c0_70] : memref<3x1x128xf32, #tpu.memory_space<vmem>>, vector<1x1x128xf32>
    %122 = vector.shape_cast %121 : vector<1x1x128xf32> to vector<1x128xf32>
    %123 = vector.broadcast %122 : vector<1x128xf32> to vector<128x128xf32>
    %124 = arith.addf %120, %123 : vector<128x128xf32>
    %125 = arith.addf %119, %124 : vector<128x128xf32>
    %cst_71 = arith.constant 0.000000e+00 : f32
    %126 = vector.broadcast %cst_71 : f32 to vector<128x128xf32>
    %127 = arith.maximumf %125, %126 : vector<128x128xf32>
    %128 = arith.truncf %127 : vector<128x128xf32> to vector<128x128xbf16>
    %cst_72 = arith.constant dense<0.000000e+00> : vector<128x128xf32>
    %129 = tpu.matmul %12, %128, %cst_72 {dimension_numbers = #tpu.dot_dimension_numbers<[1], [0], [0], [1], [0, 0, 1, 1], [], []>} : vector<128x128xbf16>, vector<128x128xbf16>, vector<128x128xf32> -> vector<128x128xf32>
    %130 = arith.addf %108, %129 : vector<128x128xf32>
    %131 = arith.truncf %130 : vector<128x128xf32> to vector<128x128xbf16>
    %c2_73 = arith.constant 2 : index
    %c0_74 = arith.constant 0 : index
    %c0_75 = arith.constant 0 : index
    %132 = vector.load %arg7[%c2_73, %c0_74, %c0_75] : memref<3x128x128xbf16, #tpu.memory_space<vmem>>, vector<1x128x128xbf16>
    %133 = vector.shape_cast %132 : vector<1x128x128xbf16> to vector<128x128xbf16>
    %cst_76 = arith.constant dense<0.000000e+00> : vector<128x128xf32>
    %134 = tpu.matmul %131, %133, %cst_76 {dimension_numbers = #tpu.dot_dimension_numbers<[1], [0], [0], [1], [0, 0, 1, 1], [], []>} : vector<128x128xbf16>, vector<128x128xbf16>, vector<128x128xf32> -> vector<128x128xf32>
    %c2_77 = arith.constant 2 : index
    %c0_78 = arith.constant 0 : index
    %c0_79 = arith.constant 0 : index
    %135 = vector.load %arg8[%c2_77, %c0_78, %c0_79] : memref<3x1x128xf32, #tpu.memory_space<vmem>>, vector<1x1x128xf32>
    %136 = vector.shape_cast %135 : vector<1x1x128xf32> to vector<1x128xf32>
    %137 = vector.broadcast %136 : vector<1x128xf32> to vector<128x128xf32>
    %138 = arith.addf %134, %137 : vector<128x128xf32>
    %cst_80 = arith.constant 0.000000e+00 : f32
    %139 = vector.broadcast %cst_80 : f32 to vector<128x128xf32>
    %140 = arith.maximumf %138, %139 : vector<128x128xf32>
    %141 = arith.truncf %140 : vector<128x128xf32> to vector<128x128xbf16>
    %c2_81 = arith.constant 2 : index
    %c0_82 = arith.constant 0 : index
    %c0_83 = arith.constant 0 : index
    %142 = vector.load %arg9[%c2_81, %c0_82, %c0_83] : memref<3x128x128xbf16, #tpu.memory_space<vmem>>, vector<1x128x128xbf16>
    %143 = vector.shape_cast %142 : vector<1x128x128xbf16> to vector<128x128xbf16>
    %cst_84 = arith.constant dense<0.000000e+00> : vector<128x128xf32>
    %144 = tpu.matmul %141, %143, %cst_84 {dimension_numbers = #tpu.dot_dimension_numbers<[1], [0], [0], [1], [0, 0, 1, 1], [], []>} : vector<128x128xbf16>, vector<128x128xbf16>, vector<128x128xf32> -> vector<128x128xf32>
    %c2_85 = arith.constant 2 : index
    %c0_86 = arith.constant 0 : index
    %c0_87 = arith.constant 0 : index
    %145 = vector.load %arg10[%c2_85, %c0_86, %c0_87] : memref<3x1x128xf32, #tpu.memory_space<vmem>>, vector<1x1x128xf32>
    %146 = vector.shape_cast %145 : vector<1x1x128xf32> to vector<1x128xf32>
    %147 = vector.broadcast %146 : vector<1x128xf32> to vector<128x128xf32>
    %148 = arith.addf %144, %147 : vector<128x128xf32>
    %cst_88 = arith.constant 0.000000e+00 : f32
    %149 = vector.broadcast %cst_88 : f32 to vector<128x128xf32>
    %150 = arith.maximumf %148, %149 : vector<128x128xf32>
    %151 = arith.truncf %150 : vector<128x128xf32> to vector<128x128xbf16>
    %cst_89 = arith.constant dense<0.000000e+00> : vector<16x128xf32>
    %152 = tpu.matmul %27, %151, %cst_89 {dimension_numbers = #tpu.dot_dimension_numbers<[1], [0], [0], [1], [0, 0, 1, 1], [], []>} : vector<16x128xbf16>, vector<128x128xbf16>, vector<16x128xf32> -> vector<16x128xf32>
    %153 = vector.broadcast %24 : vector<16x1xf32> to vector<16x128xf32>
    %154 = arith.mulf %152, %153 : vector<16x128xf32>
    %155 = arith.truncf %154 : vector<16x128xf32> to vector<16x128xbf16>
    %c2_90 = arith.constant 2 : index
    %c0_91 = arith.constant 0 : index
    %c0_92 = arith.constant 0 : index
    %156 = vector.load %arg11[%c2_90, %c0_91, %c0_92] : memref<3x128x128xbf16, #tpu.memory_space<vmem>>, vector<1x128x128xbf16>
    %157 = vector.shape_cast %156 : vector<1x128x128xbf16> to vector<128x128xbf16>
    %cst_93 = arith.constant dense<0.000000e+00> : vector<16x128xf32>
    %158 = tpu.matmul %155, %157, %cst_93 {dimension_numbers = #tpu.dot_dimension_numbers<[1], [0], [0], [1], [0, 0, 1, 1], [], []>} : vector<16x128xbf16>, vector<128x128xbf16>, vector<16x128xf32> -> vector<16x128xf32>
    %159 = arith.addf %117, %158 : vector<16x128xf32>
    %c0_94 = arith.constant 0 : index
    %c0_95 = arith.constant 0 : index
    %160 = vector.load %arg12[%c0_94, %c0_95] : memref<1x128xf32, #tpu.memory_space<vmem>>, vector<1x128xf32>
    %161 = vector.broadcast %160 : vector<1x128xf32> to vector<16x128xf32>
    %162 = arith.addf %159, %161 : vector<16x128xf32>
    %cst_96 = arith.constant 0.000000e+00 : f32
    %163 = vector.broadcast %cst_96 : f32 to vector<16x128xf32>
    %164 = arith.maximumf %162, %163 : vector<16x128xf32>
    %165 = arith.truncf %164 : vector<16x128xf32> to vector<16x128xbf16>
    %c0_97 = arith.constant 0 : index
    %c0_98 = arith.constant 0 : index
    %166 = vector.load %arg13[%c0_97, %c0_98] : memref<128x128xbf16, #tpu.memory_space<vmem>>, vector<128x128xbf16>
    %cst_99 = arith.constant dense<0.000000e+00> : vector<16x128xf32>
    %167 = tpu.matmul %165, %166, %cst_99 {dimension_numbers = #tpu.dot_dimension_numbers<[1], [0], [0], [1], [0, 0, 1, 1], [], []>} : vector<16x128xbf16>, vector<128x128xbf16>, vector<16x128xf32> -> vector<16x128xf32>
    %c0_100 = arith.constant 0 : index
    %c0_101 = arith.constant 0 : index
    %168 = vector.load %arg14[%c0_100, %c0_101] : memref<1x128xf32, #tpu.memory_space<vmem>>, vector<1x128xf32>
    %169 = vector.broadcast %168 : vector<1x128xf32> to vector<16x128xf32>
    %170 = arith.addf %167, %169 : vector<16x128xf32>
    %171 = arith.negf %170 : vector<16x128xf32>
    %172 = math.exp %171 : vector<16x128xf32>
    %cst_102 = arith.constant 1.000000e+00 : f32
    %173 = vector.broadcast %cst_102 : f32 to vector<16x128xf32>
    %174 = arith.addf %173, %172 : vector<16x128xf32>
    %175 = arith.divf %173, %174 : vector<16x128xf32>
    %c0_103 = arith.constant 0 : index
    %c0_104 = arith.constant 0 : index
    %176 = vector.load %arg15[%c0_103, %c0_104] : memref<16x128xf32, #tpu.memory_space<vmem>>, vector<16x128xf32>
    tpu.vector_store %arg15[%c0_103, %c0_104], %175 {strides = array<i32>} : memref<16x128xf32, #tpu.memory_space<vmem>>, vector<16x128xf32>,
    return
  }
}

</mosaic_0001>

<bundles_post_ra>
// kernel: tpu_custom_call.1
= control target key start
LH: loop header
LB: loop body
LE: loop exit
PB: predicated region body
PF: predicated region fallthrough
CT: control target
= control target key end

     0   :  { %20 = vsyncpa [#allocation3], 0  ;;  %s4831_s0 = inlined_call_operand.hbm [shape: s32[1,128], index: 0, kind: input, shape index: {}]   ;;  %s4832_s1 = inlined_call_operand.hbm [shape: s32[1,128], index: 1, kind: input, shape index: {}]   ;;  %s4833_s2 = inlined_call_operand.hbm [shape: s32[1,128], index: 2, kind: input, shape index: {}]   ;;  %s4834_s3 = inlined_call_operand.hbm [shape: bf16[128,128], index: 3, kind: input, shape index: {}]   ;;  %s4835_s4 = inlined_call_operand.hbm [shape: bf16[128,128], index: 4, kind: input, shape index: {}]   ;;  %s4836_s5 = inlined_call_operand.hbm [shape: bf16[128,384], index: 5, kind: input, shape index: {}]   ;;  %s4837_s6 = inlined_call_operand.vmem [shape: f32[3,1,128], index: 6, kind: input, shape index: {}]   ;;  %s4838_s7 = inlined_call_operand.hbm [shape: bf16[3,128,128], index: 7, kind: input, shape index: {}]   ;;  %s4839_s8 = inlined_call_operand.vmem [shape: f32[3,1,128], index: 8, kind: input, shape index: {}]   ;;  %s4840_s9 = inlined_call_operand.hbm [shape: bf16[3,128,128], index: 9, kind: input, shape index: {}]   ;;  %s4841_s10 = inlined_call_operand.vmem [shape: f32[3,1,128], index: 10, kind: input, shape index: {}]   ;;  %s4842_s11 = inlined_call_operand.hbm [shape: bf16[3,128,128], index: 11, kind: input, shape index: {}]   ;;  %s4843_s12 = inlined_call_operand.vmem [shape: f32[1,128], index: 12, kind: input, shape index: {}]   ;;  %s4844_s13 = inlined_call_operand.hbm [shape: bf16[128,128], index: 13, kind: input, shape index: {}]   ;;  %s4845_s14 = inlined_call_operand.vmem [shape: f32[1,128], index: 14, kind: input, shape index: {}]   ;;  %s4846_s15 = inlined_call_operand.hbm [shape: f32[16,128], index: 15, kind: output, shape index: {}]  }
   0x1   :  { %21 = vsyncpa [#allocation6], 0 }
   0x2   :  { %22 = vsyncpa [#allocation9], 0 }
   0x3   :  { %23 = vsyncpa [#allocation12], 0 }
   0x4   :  { %24 = vsyncpa [#allocation15], 0 }
   0x5   :  { %25 = vsyncpa [#allocation18], 0  ;;  %s43_s20 = sshll.u32 %s4832_s1, 4  ;;  %s44_s20 = int_to_ptr.hbm [resolvable:$true] %s43_s20 }
   0x6   :  { %26 = vsyncpa [#allocation4], 0  ;;  %s3710_s21 = smov [#allocation5]   ;;  %s64_s25 = sshll.u32 %s4834_s3, 4  ;;  %s65_s25 = int_to_ptr.hbm [resolvable:$true] %s64_s25 }
   0x7   :  { %s45_s22 = sshll.u32 %s3710_s21, 4  ;;  %s3711_s26 = smov [#allocation8]   ;;  %s46_s22 = int_to_ptr.vmem [resolvable:$true] %s45_s22 }
   0x8   :  { %48 = dma.hbm_to_vmem [thread:$0]  %s44_s20, 16, %s46_s22, [#allocation6]  }
   0x9   :  { %s66_s27 = sshll.u32 %s3711_s26, 4  ;;  %s3712_s28 = smov 64   ;;  %s67_s27 = int_to_ptr.vmem [resolvable:$true] %s66_s27 }
   0xa   :  { %s3713_s29 = smov 4   ;;  %s90_s16 = sshll.u32 %s4836_s5, 4  ;;  %s91_s16 = int_to_ptr.hbm [resolvable:$true] %s90_s16 }
   0xb   :  { %72 = dma.hbm_to_vmem [thread:$0]  %s65_s25, 1024, %s67_s27, [#allocation9], %s3712_s28, %s3712_s28, %s3713_s29  }
   0xc   :  { %s3714_s17 = smov [#allocation11]   ;;  %s120_s20 = sshll.u32 %s4840_s9, 4  ;;  %s121_s20 = int_to_ptr.hbm [resolvable:$true] %s120_s20 }
   0xd   :  { %s92_s18 = sshll.u32 %s3714_s17, 4  ;;  %s3715_s21 = smov 192   ;;  %s93_s18 = int_to_ptr.vmem [resolvable:$true] %s92_s18 }
   0xe   :  { %s3716_s22 = smov 12   ;;  %s3717_s23 = smov [#allocation14]  }
   0xf   :  { %98 = dma.hbm_to_vmem [thread:$0]  %s91_s16, 3072, %s93_s18, [#allocation12], %s3715_s21, %s3715_s21, %s3716_s22  }
  0x10   :  { %s122_s24 = sshll.u32 %s3717_s23, 4  ;;  %s32_s27 = sshll.u32 %s4831_s0, 4  ;;  %s123_s24 = int_to_ptr.vmem [resolvable:$true] %s122_s24  ;;  %s33_s27 = int_to_ptr.hbm [resolvable:$true] %s32_s27 }
  0x11   :  { %128 = dma.hbm_to_vmem [thread:$0]  %s121_s20, 3072, %s123_s24, [#allocation15], %s3712_s28, %s3712_s28, %s3713_s29  }
  0x12   :  { %s54_s9 = sshll.u32 %s4833_s2, 4  ;;  %s3718_s30 = smov [#allocation2]   ;;  %s55_s9 = int_to_ptr.hbm [resolvable:$true] %s54_s9 }
  0x13   :  { %s34_s17 = sshll.u32 %s3718_s30, 4  ;;  %s3719_s16 = smov [#allocation7]   ;;  %s35_s17 = int_to_ptr.vmem [resolvable:$true] %s34_s17 }
  0x14   :  { %37 = dma.hbm_to_vmem [thread:$0]  %s33_s27, 16, %s35_s17, [#allocation3]  }
  0x15   :  { %s56_s18 = sshll.u32 %s3719_s16, 4  ;;  %s77_s0 = sshll.u32 %s4835_s4, 4  ;;  %s57_s18 = int_to_ptr.vmem [resolvable:$true] %s56_s18  ;;  %s78_s0 = int_to_ptr.hbm [resolvable:$true] %s77_s0 }
  0x16   :  { %59 = dma.hbm_to_vmem [thread:$0]  %s55_s9, 16, %s57_s18, [#allocation6]  }
  0x17   :  { %s105_s22 = sshll.u32 %s4838_s7, 4  ;;  %s3720_s23 = smov [#allocation10]   ;;  %s106_s22 = int_to_ptr.hbm [resolvable:$true] %s105_s22 }
  0x18   :  { %s79_s2 = sshll.u32 %s3720_s23, 4  ;;  %s3721_s24 = smov [#allocation13]   ;;  %s80_s2 = int_to_ptr.vmem [resolvable:$true] %s79_s2 }
  0x19   :  { %85 = dma.hbm_to_vmem [thread:$0]  %s78_s0, 1024, %s80_s2, [#allocation9], %s3712_s28, %s3712_s28, %s3713_s29  }
  0x1a   :  { %s107_s26 = sshll.u32 %s3721_s24, 4  ;;  %s135_s4 = sshll.u32 %s4842_s11, 4  ;;  %s108_s26 = int_to_ptr.vmem [resolvable:$true] %s107_s26  ;;  %s136_s4 = int_to_ptr.hbm [resolvable:$true] %s135_s4 }
  0x1b   :  { %113 = dma.hbm_to_vmem [thread:$0]  %s106_s22, 3072, %s108_s26, [#allocation12], %s3712_s28, %s3712_s28, %s3713_s29  }
  0x1c   :  { %s150_s1 = sshll.u32 %s4844_s13, 4  ;;  %s3722_s9 = smov [#allocation16]   ;;  %s151_s1 = int_to_ptr.hbm [resolvable:$true] %s150_s1 }
  0x1d   :  { %s137_s30 = sshll.u32 %s3722_s9, 4  ;;  %s3723_s17 = smov [#allocation17]   ;;  %s138_s30 = int_to_ptr.vmem [resolvable:$true] %s137_s30 }
  0x1e   :  { %143 = dma.hbm_to_vmem [thread:$0]  %s136_s4, 3072, %s138_s30, [#allocation15], %s3712_s28, %s3712_s28, %s3713_s29  }
  0x1f   :  { %s152_s11 = sshll.u32 %s3723_s17, 4  ;;  %s153_s11 = int_to_ptr.vmem [resolvable:$true] %s152_s11 }
  0x20   :  { %158 = dma.hbm_to_vmem [thread:$0]  %s151_s1, 1024, %s153_s11, [#allocation18], %s3712_s28, %s3712_s28, %s3713_s29  }
  0x21   :  { %3696 = dma.done.wait [#allocation3], 16  }
  0x22   :  { %3697 = vsyncadd [#allocation3], 4294967280 }
  0x23   :  { %3698 = dma.done.wait [#allocation6], 32  }
  0x24   :  { %3699 = vsyncadd [#allocation6], 4294967264 }
  0x25   :  { %3700 = dma.done.wait [#allocation9], 2048  }
  0x26   :  { %3701 = vsyncadd [#allocation9], 4294965248 }
  0x27   :  { %3702 = dma.done.wait [#allocation12], 6144  }
  0x28   :  { %3703 = vsyncadd [#allocation12], 4294961152 }
  0x29   :  { %3704 = dma.done.wait [#allocation15], 6144  }
  0x2a   :  { %3705 = vsyncadd [#allocation15], 4294961152 }
  0x2b   :  { %3706 = dma.done.wait [#allocation18], 1024  }
  0x2c   :  { %3707 = vsyncadd [#allocation18], 4294966272  ;;  %v201_v0 = vlaneseq  ;;  %v3863_v3 = vld [vmem:[#allocation2] ss:$0 sm:$0xff]  ;;  %v4847_v4 = vmov 0.0   ;;  %v3258_v42 = vld [vmem:[#allocation8 + $0x30] sm:$0xff] }
  0x2d   :  { %4931 = vst [vmem:[#allocation29_spill] sm:$0xff] %v3863_v3  ;;  %v2796_v33 = vld [vmem:[#allocation11 + $0xa8] sm:$0xf]  ;;  %v3250_v34 = vld [vmem:[#allocation11 + $0xb0] sm:$0xf0]  ;;  %v3259_v38 = vld [vmem:[#allocation8 + $0x38] sm:$0xff] }
  0x2e   :  { %v3858_v1 = vshrl.u32 %v201_v0, 7  ;;  %v2784_v35 = vld [vmem:[#allocation11 + $0x90] sm:$0xf]  ;;  %v2797_v36 = vor.u32 %v3250_v34, %v2796_v33  ;;  %v3247_v37 = vld [vmem:[#allocation11 + $0x98] sm:$0xf0]  ;;  %866 = vmatpush.bf16.msra.mxu3 %v3259_v38  ;;  %v3257_v46 = vld [vmem:[#allocation8 + $0x28] sm:$0xff] }
  0x2f   :  { %v2785_v41 = vor.u32 %v3247_v37, %v2784_v35  ;;  %v2772_v43 = vld [vmem:[#allocation11 + $0x78] sm:$0xf]  ;;  %v3244_v44 = vld [vmem:[#allocation11 + $0x80] sm:$0xf0]  ;;  %v2760_v47 = vld [vmem:[#allocation11 + $0x60] sm:$0xf] }
  0x30   :  { %4929 = vst [vmem:[#allocation27_spill] sm:$0xff] %v3858_v1  ;;  %v3861_v2 = vadd.s32 8, %v3858_v1  ;;  %vm4872_vm0 = vcmp.eq.s32.totalorder %v3858_v1, %v3863_v3  ;;  %v3878_v8 = vadd.s32 16, %v3858_v1  ;;  %v3881_v9 = vadd.s32 24, %v3858_v1  ;;  %603 = vmatpush.bf16.msra.mxu0 %v2797_v36  ;;  %v3241_v48 = vld [vmem:[#allocation11 + $0x68] sm:$0xf0] }
  0x31   :  { %v2644_v5 = vsel %vm4872_vm0, 1.0, %v4847_v4  ;;  %v3896_v13 = vadd.s32 32, %v3858_v1  ;;  %v3899_v14 = vadd.s32 40, %v3858_v1  ;;  %v3914_v18 = vadd.s32 48, %v3858_v1  ;;  %v3256_v52 = vld [vmem:[#allocation8 + $0x20] sm:$0xff]  ;;  %v3255_v57 = vld [vmem:[#allocation8 + $0x18] sm:$0xff] }
  0x32   :  { %4930 = vst [vmem:[#allocation28_spill] sm:$0xff] %v3861_v2  ;;  %vm4871_vm1 = vcmp.eq.s32.totalorder %v3861_v2, %v3863_v3  ;;  %vm4874_vm2 = vcmp.eq.s32.totalorder %v3878_v8, %v3863_v3  ;;  %vm4873_vm3 = vcmp.eq.s32.totalorder %v3881_v9, %v3863_v3  ;;  %v3917_v19 = vadd.s32 56, %v3858_v1  ;;  %867 = vmatpush.bf16.msra.mxu3 %v3258_v42  ;;  %v2748_v54 = vld [vmem:[#allocation11 + $0x48] sm:$0xf]  ;;  %v3238_v55 = vld [vmem:[#allocation11 + $0x50] sm:$0xf0] }
  0x33   :  { %v2645_v6 = vsel %vm4871_vm1, 1.0, %v4847_v4  ;;  %4932 = vst [vmem:[#allocation30_spill] sm:$0xff] %v3878_v8  ;;  %v2646_v10 = vsel %vm4874_vm2, 1.0, %v4847_v4  ;;  %v2647_v11 = vsel %vm4873_vm3, 1.0, %v4847_v4  ;;  %vm4876_vm4 = vcmp.eq.s32.totalorder %v3896_v13, %v3863_v3  ;;  %v2736_v58 = vld [vmem:[#allocation11 + $0x30] sm:$0xf] }
  0x34   :  { %v268_v7 = vpack.c.bf16 %v2645_v6, %v2644_v5  ;;  %4933 = vst [vmem:[#allocation31_spill] sm:$0xff] %v3881_v9  ;;  %v269_v12 = vpack.c.bf16 %v2647_v11, %v2646_v10  ;;  %vm4875_vm5 = vcmp.eq.s32.totalorder %v3899_v14, %v3863_v3  ;;  %v2648_v15 = vsel %vm4876_vm4, 1.0, %v4847_v4  ;;  %604 = vmatpush.bf16.msra.mxu0 %v2785_v41  ;;  %v3235_v59 = vld [vmem:[#allocation11 + $0x38] sm:$0xf0]  ;;  %v3254_v63 = vld [vmem:[#allocation8 + $0x10] sm:$0xff]  ;;  %v4027_v33 = vld [vmem:[#allocation10 + $0x28] sm:$0xff] }
  0x35   :  { %4934 = vst [vmem:[#allocation32_spill] sm:$0xff] %v3896_v13  ;;  %v2649_v16 = vsel %vm4875_vm5, 1.0, %v4847_v4  ;;  %vm4878_vm6 = vcmp.eq.s32.totalorder %v3914_v18, %v3863_v3  ;;  %vm4877_vm7 = vcmp.eq.s32.totalorder %v3917_v19, %v3863_v3  ;;  %v3932_v23 = vadd.s32 64, %v3858_v1  ;;  %v2724_v0 = vld [vmem:[#allocation11 + $0x18] sm:$0xf]  ;;  %v4033_v35 = vld [vmem:[#allocation10 + $0x30] sm:$0xff] }
  0x36   :  { %802 = vxpose.xlu0.c.b16.start [1/8] %v268_v7, 128  ;;  %4935 = vst [vmem:[#allocation33_spill] sm:$0xff] %v3899_v14  ;;  %v270_v17 = vpack.c.bf16 %v2649_v16, %v2648_v15  ;;  %v2650_v20 = vsel %vm4878_vm6, 1.0, %v4847_v4  ;;  %v2651_v21 = vsel %vm4877_vm7, 1.0, %v4847_v4  ;;  %v3935_v24 = vadd.s32 72, %v3858_v1  ;;  %868 = vmatpush.bf16.msra.mxu3 %v3257_v46  ;;  %v3232_v5 = vld [vmem:[#allocation11 + $0x20] sm:$0xf0] }
  0x37   :  { %4936 = vst [vmem:[#allocation34_spill] sm:$0xff] %v3914_v18  ;;  %v271_v22 = vpack.c.bf16 %v2651_v21, %v2650_v20  ;;  %vm4880_vm8 = vcmp.eq.s32.totalorder %v3932_v23, %v3863_v3  ;;  %v3950_v28 = vadd.s32 80, %v3858_v1  ;;  %v3953_v29 = vadd.s32 88, %v3858_v1  ;;  %v3253_v7 = vld [vmem:[#allocation8 + $0x8] sm:$0xff]  ;;  %v2712_v10 = vld [vmem:[#allocation11] sm:$0xf] }
  0x38   :  { %4937 = vst [vmem:[#allocation35_spill] sm:$0xff] %v3917_v19  ;;  %vm4879_vm9 = vcmp.eq.s32.totalorder %v3935_v24, %v3863_v3  ;;  %v2652_v25 = vsel %vm4880_vm8, 1.0, %v4847_v4  ;;  %v3968_v39 = vadd.s32 96, %v3858_v1  ;;  %v3971_v40 = vadd.s32 104, %v3858_v1  ;;  %v3229_v11 = vld [vmem:[#allocation11 + $0x8] sm:$0xf0] }
  0x39   :  { %4938 = vst [vmem:[#allocation36_spill] sm:$0xff] %v3932_v23  ;;  %v2653_v26 = vsel %vm4879_vm9, 1.0, %v4847_v4  ;;  %vm230_vm10 = vcmp.eq.s32.totalorder %v3950_v28, %v3863_v3  ;;  %vm4900_vm11 = vcmp.eq.s32.totalorder %v3953_v29, %v3863_v3  ;;  %v2773_v45 = vor.u32 %v3244_v44, %v2772_v43  ;;  %v4003_v21 = vld [vmem:[#allocation10] sm:$0xff]  ;;  %v4039_v37 = vld [vmem:[#allocation10 + $0x38] sm:$0xff]  ;;  %v4056_v46 = vld [vmem:[%s4837_s6] ss:$0 sm:$0xff] }
  0x3a   :  { %4939 = vst [vmem:[#allocation37_spill] sm:$0xff] %v3935_v24  ;;  %v272_v27 = vpack.c.bf16 %v2653_v26, %v2652_v25  ;;  %v2654_v30 = vsel %vm230_vm10, 1.0, %v4847_v4  ;;  %v2655_v31 = vsel %vm4900_vm11, 1.0, %v4847_v4  ;;  %vm232_vm12 = vcmp.eq.s32.totalorder %v3968_v39, %v3863_v3  ;;  %869 = vmatpush.bf16.msra.mxu3 %v3256_v52  ;;  %v4009_v25 = vld [vmem:[#allocation10 + $0x10] sm:$0xff]  ;;  %s2626_s9 = sshll.u32 %s4846_s15, 4  ;;  %s3727_s30 = smov 128   ;;  %s2627_s9 = int_to_ptr.hbm [resolvable:$true] %s2626_s9 }
  0x3b   :  { %4940 = vst [vmem:[#allocation38_spill] sm:$0xff] %v3950_v28  ;;  %v273_v32 = vpack.c.bf16 %v2655_v31, %v2654_v30  ;;  %vm233_vm13 = vcmp.eq.s32.totalorder %v3971_v40, %v3863_v3  ;;  %v2656_v49 = vsel %vm232_vm12, 1.0, %v4847_v4  ;;  %605 = vmatpush.bf16.msra.mxu0 %v2773_v45  ;;  %v2761_v51 = vor.u32 %v3241_v48, %v2760_v47  ;;  %v4021_v31 = vld [vmem:[#allocation10 + $0x20] sm:$0xff]  ;;  %s3728_s17 = smov 8  }
  0x3c   :  { %4941 = vst [vmem:[#allocation39_spill] sm:$0xff] %v3953_v29  ;;  %v2657_v50 = vsel %vm233_vm13, 1.0, %v4847_v4  ;;  %v2749_v56 = vor.u32 %v3238_v55, %v2748_v54  ;;  %v3986_v60 = vadd.s32 112, %v3858_v1  ;;  %v3989_v61 = vadd.s32 120, %v3858_v1 }
  0x3d   :  { %4942 = vst [vmem:[#allocation40_spill] sm:$0xff] %v3968_v39  ;;  %v274_v53 = vpack.c.bf16 %v2657_v50, %v2656_v49  ;;  %v2737_v62 = vor.u32 %v3235_v59, %v2736_v58  ;;  %v2725_v6 = vor.u32 %v3232_v5, %v2724_v0  ;;  %v2713_v16 = vor.u32 %v3229_v11, %v2712_v10 }
  0x3e   :  { %4943 = vst [vmem:[#allocation41_spill] sm:$0xff] %v3971_v40  ;;  %870 = vmatpush.bf16.msra.mxu3 %v3255_v57  ;;  %vm234_vm14 = vcmp.eq.s32.totalorder %v3986_v60, %v3863_v3  ;;  %vm235_vm15 = vcmp.eq.s32.totalorder %v3989_v61, %v3863_v3 }
  0x3f   :  { %606 = vmatpush.bf16.msra.mxu0 %v2761_v51  ;;  %4944 = vst [vmem:[#allocation42_spill] sm:$0xff] %v3986_v60  ;;  %v2659_v15 = vsel %vm235_vm15, 1.0, %v4847_v4 }
  0x40   :  { %4945 = vst [vmem:[#allocation43_spill] sm:$0xff] %v3989_v61 }
  0x41   :  { %4951 = vst [vmem:[#allocation49_spill] sm:$0xff] %v4039_v37 }
  0x42   :  { %871 = vmatpush.bf16.msra.mxu3 %v3254_v63 }
  0x43   :  { %607 = vmatpush.bf16.msra.mxu0 %v2749_v56 }
  0x46   :  { %803 = vxpose.xlu0.c.b16.cont [2/8] %v269_v12, 128  ;;  %v2658_v12 = vsel %vm234_vm14, 1.0, %v4847_v4  ;;  %872 = vmatpush.bf16.msra.mxu3 %v3253_v7  ;;  %v2786_v4 = vld [vmem:[#allocation11 + $0x9c] sm:$0xf0] }
  0x47   :  { %608 = vmatpush.bf16.msra.mxu0 %v2737_v62  ;;  %v275_v20 = vpack.c.bf16 %v2659_v15, %v2658_v12 }
  0x4b   :  { %609 = vmatpush.bf16.msra.mxu0 %v2725_v6 }
  0x4f   :  { %610 = vmatpush.bf16.msra.mxu0 %v2713_v16 }
  0x52   :  { %611 = vmatmul.bf16.vlgmr.msra.gmra.mxu0 %v4003_v21 }
  0x56   :  { %804 = vxpose.xlu0.c.b16.cont [3/8] %v270_v17, 128  ;;  %v3252_v17 = vld [vmem:[#allocation8] sm:$0xff] }
  0x57   :  { %873 = vmatpush.bf16.msra.mxu3 %v3252_v17 }
  0x66   :  { %805 = vxpose.xlu0.c.b16.cont [4/8] %v271_v22, 128  ;;  %v4006_v22 = vld [vmem:[#allocation10 + $0x8] sm:$0xff] }
  0x67   :  { %616 = vmatmul.bf16.gmra.mxu0 %v4006_v22 }
  0x76   :  { %806 = vxpose.xlu0.c.b16.cont [5/8] %v272_v27, 128  ;;  %v4015_v27 = vld [vmem:[#allocation10 + $0x18] sm:$0xff] }
  0x77   :  { %621 = vmatmul.bf16.gmra.mxu0 %v4009_v25 }
  0x86   :  { %807 = vxpose.xlu0.c.b16.cont [6/8] %v273_v32, 128 }
  0x87   :  { %626 = vmatmul.bf16.gmra.mxu0 %v4015_v27 }
  0x96   :  { %808 = vxpose.xlu0.c.b16.cont [7/8] %v274_v53, 128 }
  0x97   :  { %631 = vmatmul.bf16.gmra.mxu0 %v4021_v31 }
  0xa6   :  { %809 = vxpose.xlu0.c.b16.end [8/8] %v275_v20, 128 }
  0xa7   :  { %636 = vmatmul.bf16.gmra.mxu0 %v4027_v33 }
  0xb7   :  { %641 = vmatmul.bf16.gmra.mxu0 %v4033_v35 }
  0xc7   :  { %646 = vmatmul.bf16.gmra.mxu0 %v4039_v37 }
  0xcf   :  { %v612_v42 = vpop.f32.mrf.mxu0 }
  0xd0   :  { %v786_v48 = vadd.f32 %v4056_v46, %v612_v42 }
  0xd7   :  { %v4048_v43 = vpop.f32.mrf.mxu0 }
  0xe2   :  { %v4012_v26 = vpop.trf.xlu0 }
  0xe3   :  { %4946 = vst [vmem:[#allocation44_spill] sm:$0xff] %v4012_v26  ;;  %874 = vmatmul.bf16.vlgmr.msra.gmra.mxu3 %v4012_v26  ;;  %v2738_v26 = vld [vmem:[#allocation11 + $0x3c] sm:$0xf0] }
  0xe4   :  { %v617_v45 = vpop.f32.mrf.mxu0 }
  0xe5   :  { %v788_v53 = vadd.f32 %v4056_v46, %v617_v45 }
  0xec   :  { %v4058_v47 = vpop.f32.mrf.mxu0 }
  0xf2   :  { %v4018_v30 = vpop.trf.xlu0 }
  0xf3   :  { %4947 = vst [vmem:[#allocation45_spill] sm:$0xff] %v4018_v30  ;;  %879 = vmatmul.bf16.gmra.mxu3 %v4018_v30  ;;  %v2750_v30 = vld [vmem:[#allocation11 + $0x54] sm:$0xf0] }
  0xf4   :  { %v622_v51 = vpop.f32.mrf.mxu0 }
  0xf5   :  { %v790_v59 = vadd.f32 %v4056_v46, %v622_v51 }
  0xfc   :  { %v4066_v55 = vpop.f32.mrf.mxu0 }
 0x102   :  { %v4024_v32 = vpop.trf.xlu0 }
 0x103   :  { %4948 = vst [vmem:[#allocation46_spill] sm:$0xff] %v4024_v32  ;;  %884 = vmatmul.bf16.gmra.mxu3 %v4024_v32  ;;  %v3237_v32 = vld [vmem:[#allocation11 + $0x4c] sm:$0xf] }
 0x104   :  { %v627_v58 = vpop.f32.mrf.mxu0 }
 0x105   :  { %v792_v6 = vadd.f32 %v4056_v46, %v627_v58  ;;  %v2798_v58 = vld [vmem:[#allocation11 + $0xb4] sm:$0xf0] }
 0x10c   :  { %v4075_v0 = vpop.f32.mrf.mxu0 }
 0x112   :  { %v4030_v34 = vpop.trf.xlu0 }
 0x113   :  { %4949 = vst [vmem:[#allocation47_spill] sm:$0xff] %v4030_v34  ;;  %889 = vmatmul.bf16.gmra.mxu3 %v4030_v34 }
 0x114   :  { %v632_v7 = vpop.f32.mrf.mxu0 }
 0x115   :  { %v794_v16 = vadd.f32 %v4056_v46, %v632_v7  ;;  %v3243_v7 = vld [vmem:[#allocation11 + $0x7c] sm:$0xf] }
 0x11c   :  { %v4084_v15 = vpop.f32.mrf.mxu0 }
 0x122   :  { %v4036_v36 = vpop.trf.xlu0 }
 0x123   :  { %4950 = vst [vmem:[#allocation48_spill] sm:$0xff] %v4036_v36  ;;  %894 = vmatmul.bf16.gmra.mxu3 %v4036_v36  ;;  %v2762_v36 = vld [vmem:[#allocation11 + $0x6c] sm:$0xf0] }
 0x124   :  { %v637_v42 = vpop.f32.mrf.mxu0 }
 0x125   :  { %v796_v60 = vadd.f32 %v4056_v46, %v637_v42 }
 0x132   :  { %v4042_v38 = vpop.trf.xlu0 }
 0x133   :  { %4952 = vst [vmem:[#allocation50_spill] sm:$0xff] %v4042_v38  ;;  %899 = vmatmul.bf16.gmra.mxu3 %v4042_v38  ;;  %v3240_v38 = vld [vmem:[#allocation11 + $0x64] sm:$0xf] }
 0x134   :  { %v2765_v34 = vor.u32 %v3240_v38, %v2762_v36 }
 0x142   :  { %v4045_v41 = vpop.trf.xlu0 }
 0x143   :  { %4953 = vst [vmem:[#allocation51_spill] sm:$0xff] %v4045_v41  ;;  %904 = vmatmul.bf16.gmra.mxu3 %v4045_v41 }
 0x152   :  { %v4050_v44 = vpop.trf.xlu0 }
 0x153   :  { %4954 = vst [vmem:[#allocation52_spill] sm:$0xff] %v4050_v44  ;;  %909 = vmatmul.bf16.gmra.mxu3 %v4050_v44 }
 0x166   :  { %v875_v49 = vpop.f32.mrf.mxu3 }
 0x167   :  { %v4061_v50 = vadd.f32 %v875_v49, %v786_v48  ;;  %v639_v48 = vpop.f32.mrf.mxu0 }
 0x16e   :  { %v4063_v52 = vpop.f32.mrf.mxu3 }
 0x16f   :  { %v642_v51 = vpop.f32.mrf.mxu0 }
 0x176   :  { %v880_v54 = vpop.f32.mrf.mxu3 }
 0x177   :  { %v4068_v56 = vadd.f32 %v880_v54, %v788_v53  ;;  %v3249_v54 = vld [vmem:[#allocation11 + $0xac] sm:$0xf] }
 0x17e   :  { %v4070_v57 = vpop.f32.mrf.mxu3 }
 0x186   :  { %v885_v62 = vpop.f32.mrf.mxu3 }
 0x187   :  { %v4073_v63 = vadd.f32 %v885_v62, %v790_v59  ;;  %v2801_v59 = vor.u32 %v3249_v54, %v2798_v58  ;;  %v644_v62 = vpop.f32.mrf.mxu0  ;;  %v2753_v54 = vor.u32 %v3237_v32, %v2750_v30 }
 0x188   :  { %v799_v61 = vadd.f32 %v4056_v46, %v644_v62 }
 0x189   :  { %652 = vmatpush.bf16.msra.mxu1 %v2801_v59  ;;  %v3234_v59 = vld [vmem:[#allocation11 + $0x34] sm:$0xf] }
 0x18e   :  { %v4077_v5 = vpop.f32.mrf.mxu3 }
 0x18f   :  { %v647_v41 = vpop.f32.mrf.mxu0 }
 0x196   :  { %v890_v10 = vpop.f32.mrf.mxu3 }
 0x197   :  { %v4080_v11 = vadd.f32 %v890_v10, %v792_v6  ;;  %v3246_v10 = vld [vmem:[#allocation11 + $0x94] sm:$0xf] }
 0x198   :  { %v2789_v3 = vor.u32 %v3246_v10, %v2786_v4  ;;  %v800_v4 = vadd.f32 %v4056_v46, %v647_v41  ;;  %v649_v10 = vpop.f32.mrf.mxu0  ;;  %v3228_v41 = vld [vmem:[#allocation11 + $0x4] sm:$0xf] }
 0x19a   :  { %653 = vmatpush.bf16.msra.mxu1 %v2789_v3  ;;  %v2741_v3 = vor.u32 %v3234_v59, %v2738_v26  ;;  %v797_v26 = vadd.f32 %v4056_v46, %v639_v48  ;;  %v2714_v59 = vld [vmem:[#allocation11 + $0xc] sm:$0xf0] }
 0x19b   :  { %v2717_v39 = vor.u32 %v3228_v41, %v2714_v59  ;;  %v3266_v59 = vld [vmem:[#allocation13 + $0x30] sm:$0xff] }
 0x19e   :  { %v4082_v12 = vpop.f32.mrf.mxu3 }
 0x1a6   :  { %v895_v17 = vpop.f32.mrf.mxu3 }
 0x1a7   :  { %v4087_v20 = vadd.f32 %v895_v17, %v794_v16  ;;  %v2774_v16 = vld [vmem:[#allocation11 + $0x84] sm:$0xf0] }
 0x1a8   :  { %v2777_v17 = vor.u32 %v3243_v7, %v2774_v16  ;;  %v798_v7 = vadd.f32 %v4056_v46, %v642_v51  ;;  %v3231_v16 = vld [vmem:[#allocation11 + $0x1c] sm:$0xf] }
 0x1aa   :  { %654 = vmatpush.bf16.msra.mxu1 %v2777_v17  ;;  %v2726_v17 = vld [vmem:[#allocation11 + $0x24] sm:$0xf0] }
 0x1ab   :  { %v2729_v38 = vor.u32 %v3231_v16, %v2726_v17 }
 0x1ae   :  { %v4089_v45 = vpop.f32.mrf.mxu3  ;;  %655 = vmatpush.bf16.msra.mxu1 %v2765_v34  ;;  %v801_v34 = vadd.f32 %v4056_v46, %v649_v10 }
 0x1b2   :  { %656 = vmatpush.bf16.msra.mxu1 %v2753_v54 }
 0x1b6   :  { %v900_v49 = vpop.f32.mrf.mxu3  ;;  %657 = vmatpush.bf16.msra.mxu1 %v2741_v3 }
 0x1ba   :  { %658 = vmatpush.bf16.msra.mxu1 %v2729_v38  ;;  %v915_v38 = vmax.f32 %v4061_v50, 0.0  ;;  %v3313_v50 = vld [vmem:[#allocation13 + $0xa8] sm:$0xff] }
 0x1be   :  { %v902_v53 = vpop.f32.mrf.mxu3  ;;  %659 = vmatpush.bf16.msra.mxu1 %v2717_v39 }
 0x1bf   :  { %v903_v37 = vadd.f32 %v902_v53, %v797_v26  ;;  %v3251_v26 = vld [vmem:[#allocation11 + $0xb8] sm:$0xf0] }
 0x1c1   :  { %660 = vmatmul.bf16.vlgmr.msra.gmra.mxu1 %v4003_v21  ;;  %v926_v48 = vmax.f32 %v903_v37, 0.0 }
 0x1c6   :  { %v905_v6 = vpop.f32.mrf.mxu3 }
 0x1c7   :  { %v906_v3 = vadd.f32 %v905_v6, %v798_v7  ;;  %v793_v6 = vadd.f32 %v4056_v46, %v4075_v0  ;;  %v921_v0 = vmax.f32 %v4080_v11, 0.0  ;;  %v4118_v11 = vld [vmem:[#allocation5] ss:$0 sm:$0xff] }
 0x1c8   :  { %vm278_vm1 = vcmp.eq.s32.totalorder %v3858_v1, %v4118_v11  ;;  %vm279_vm0 = vcmp.eq.s32.totalorder %v3861_v2, %v4118_v11  ;;  %vm280_vm2 = vcmp.eq.s32.totalorder %v3878_v8, %v4118_v11  ;;  %vm281_vm5 = vcmp.eq.s32.totalorder %v3881_v9, %v4118_v11 }
 0x1c9   :  { %vm4125_vm3 = vmpackc.low %vm279_vm0, %vm278_vm1  ;;  %vm282_vm0 = vcmp.eq.s32.totalorder %v3896_v13, %v4118_v11  ;;  %vm283_vm1 = vcmp.eq.s32.totalorder %v3899_v14, %v4118_v11 }
 0x1ca   :  { %vm4137_vm4 = vmpackc.low %vm281_vm5, %vm280_vm2  ;;  %vm284_vm2 = vcmp.eq.s32.totalorder %v3914_v18, %v4118_v11  ;;  %vm285_vm5 = vcmp.eq.s32.totalorder %v3917_v19, %v4118_v11 }
 0x1cb   :  { %vm4149_vm7 = vmpackc.low %vm283_vm1, %vm282_vm0  ;;  %vm286_vm0 = vcmp.eq.s32.totalorder %v3932_v23, %v4118_v11  ;;  %vm287_vm1 = vcmp.eq.s32.totalorder %v3935_v24, %v4118_v11 }
 0x1cc   :  { %vm4161_vm6 = vmpackc.low %vm285_vm5, %vm284_vm2  ;;  %vm288_vm2 = vcmp.eq.s32.totalorder %v3950_v28, %v4118_v11 }
 0x1cd   :  { %vm4173_vm9 = vmpackc.low %vm287_vm1, %vm286_vm0 }
 0x1ce   :  { %v907_v44 = vpop.f32.mrf.mxu3 }
 0x1cf   :  { %v908_v32 = vadd.f32 %v907_v44, %v799_v61  ;;  %v901_v61 = vadd.f32 %v900_v49, %v796_v60  ;;  %v927_v44 = vmax.f32 %v906_v3, 0.0  ;;  %v791_v60 = vadd.f32 %v4056_v46, %v4066_v55  ;;  %v4965_v3 = vld [vmem:[#allocation39_spill] sm:$0xff] }
 0x1d0   :  { %v789_v49 = vadd.f32 %v4056_v46, %v4058_v47  ;;  %v787_v55 = vadd.f32 %v4056_v46, %v4048_v43  ;;  %v917_v47 = vmax.f32 %v4068_v56, 0.0  ;;  %vm289_vm5 = vcmp.eq.s32.totalorder %v4965_v3, %v4118_v11  ;;  %v3312_v56 = vld [vmem:[#allocation13 + $0xa0] sm:$0xff] }
 0x1d1   :  { %v928_v62 = vmax.f32 %v908_v32, 0.0  ;;  %v925_v10 = vmax.f32 %v901_v61, 0.0  ;;  %665 = vmatmul.bf16.gmra.mxu1 %v4006_v22  ;;  %v3267_v32 = vld [vmem:[#allocation13 + $0x38] sm:$0xff]  ;;  %vm4185_vm0 = vmpackc.low %vm289_vm5, %vm288_vm2  ;;  %v3265_v61 = vld [vmem:[#allocation13 + $0x28] sm:$0xff] }
 0x1d2   :  { %1080 = vmatpush.bf16.msrb.mxu1 %v3267_v32  ;;  %v4973_v32 = vld [vmem:[#allocation42_spill] sm:$0xff] }
 0x1d3   :  { %v936_v53 = vpack.c.bf16 %v926_v48, %v925_v10  ;;  %v3245_v48 = vld [vmem:[#allocation11 + $0x88] sm:$0xf0]  ;;  %v3264_v10 = vld [vmem:[#allocation13 + $0x20] sm:$0xff] }
 0x1d6   :  { %v910_v58 = vpop.f32.mrf.mxu3  ;;  %1081 = vmatpush.bf16.msrb.mxu1 %v3266_v59 }
 0x1d7   :  { %v911_v36 = vadd.f32 %v910_v58, %v800_v4  ;;  %v795_v58 = vadd.f32 %v4056_v46, %v4084_v15  ;;  %v937_v4 = vpack.c.bf16 %v928_v62, %v927_v44  ;;  %v888_v15 = vadd.f32 %v4077_v5, %v791_v60  ;;  %v2792_v62 = vld [vmem:[#allocation11 + $0x98] sm:$0xf] }
 0x1d8   :  { %v878_v5 = vadd.f32 %v4063_v52, %v787_v55  ;;  %v4881_v52 = vmov 1.0|1.0   ;;  %v3263_v60 = vld [vmem:[#allocation13 + $0x18] sm:$0xff] }
 0x1d9   :  { %v929_v51 = vmax.f32 %v911_v36, 0.0  ;;  %v898_v42 = vadd.f32 %v4089_v45, %v795_v58  ;;  %v920_v7 = vmax.f32 %v888_v15, 0.0  ;;  %v3248_v58 = vld [vmem:[#allocation11 + $0xa0] sm:$0xf0]  ;;  %v3315_v46 = vld [vmem:[#allocation13 + $0xb8] sm:$0xff] }
 0x1da   :  { %v2793_v44 = vor.u32 %v3248_v58, %v2792_v62  ;;  %1082 = vmatpush.bf16.msrb.mxu1 %v3265_v61  ;;  %v4970_v15 = vld [vmem:[#allocation41_spill] sm:$0xff] }
 0x1db   :  { %v924_v39 = vmax.f32 %v898_v42, 0.0  ;;  %v2780_v42 = vld [vmem:[#allocation11 + $0x80] sm:$0xf]  ;;  %vm291_vm2 = vcmp.eq.s32.totalorder %v4970_v15, %v4118_v11 }
 0x1dc   :  { %v750_v58 = vld [vmem:[#allocation8] sm:$0xff]  }
 0x1dd   :  { %v767_v61 = vunpack.c.h.bf16 %v750_v58 }
 0x1de   :  { %v912_v30 = vpop.f32.mrf.mxu3  ;;  %1083 = vmatpush.bf16.msrb.mxu1 %v3264_v10 }
 0x1df   :  { %v913_v54 = vadd.f32 %v912_v30, %v801_v34  ;;  %v3308_v30 = vld [vmem:[#allocation13 + $0x80] sm:$0xff] }
 0x1e1   :  { %v930_v40 = vmax.f32 %v913_v54, 0.0  ;;  %670 = vmatmul.bf16.gmra.mxu1 %v4009_v25  ;;  %v2804_v54 = vld [vmem:[#allocation11 + $0xb0] sm:$0xf] }
 0x1e2   :  { %v2805_v41 = vor.u32 %v3251_v26, %v2804_v54  ;;  %1084 = vmatpush.bf16.msrb.mxu1 %v3263_v60  ;;  %v4974_v54 = vld [vmem:[#allocation43_spill] sm:$0xff]  ;;  %v4975_v26 = vmov 0 }
 0x1e3   :  { %v938_v29 = vpack.c.bf16 %v930_v40, %v929_v51  ;;  %v893_v40 = vadd.f32 %v4082_v12, %v793_v6  ;;  %v883_v12 = vadd.f32 %v4070_v57, %v789_v49  ;;  %v916_v57 = vmax.f32 %v878_v5, 0.0  ;;  %v2732_v5 = vld [vmem:[#allocation11 + $0x20] sm:$0xf] }
 0x1e4   :  { %701 = vmatpush.bf16.msra.mxu2 %v2805_v41  ;;  %v2781_v6 = vor.u32 %v3245_v48, %v2780_v42  ;;  %v4971_v49 = vmov 0 }
 0x1e5   :  { %939 = vmatpush.bf16.msra.mxu0 %v938_v29  ;;  %v923_v29 = vmax.f32 %v4087_v20, 0.0  ;;  %v922_v45 = vmax.f32 %v893_v40, 0.0  ;;  %v919_v20 = vmax.f32 %v4073_v63, 0.0  ;;  %v918_v17 = vmax.f32 %v883_v12, 0.0  ;;  %v2768_v40 = vld [vmem:[#allocation11 + $0x68] sm:$0xf] }
 0x1e6   :  { %v931_v43 = vpack.c.bf16 %v916_v57, %v915_v38  ;;  %v3262_v12 = vld [vmem:[#allocation13 + $0x10] sm:$0xff]  ;;  %v2720_v57 = vld [vmem:[#allocation11 + $0x8] sm:$0xf] }
 0x1e7   :  { %v935_v37 = vpack.c.bf16 %v924_v39, %v923_v29  ;;  %v934_v16 = vpack.c.bf16 %v922_v45, %v921_v0  ;;  %v933_v34 = vpack.c.bf16 %v920_v7, %v919_v20  ;;  %v932_v36 = vpack.c.bf16 %v918_v17, %v917_v47  ;;  %v3242_v39 = vld [vmem:[#allocation11 + $0x70] sm:$0xf0]  ;;  %v4969_v29 = vld [vmem:[#allocation40_spill] sm:$0xff]  ;;  %v2756_v45 = vld [vmem:[#allocation11 + $0x50] sm:$0xf]  ;;  %1085 = vmatpush.bf16.msrb.mxu1 %v3262_v12 }
 0x1e8   :  { %702 = vmatpush.bf16.msra.mxu2 %v2793_v44  ;;  %vm290_vm1 = vcmp.eq.s32.totalorder %v4969_v29, %v4118_v11  ;;  %v2744_v7 = vld [vmem:[#allocation11 + $0x38] sm:$0xf]  ;;  %v3261_v20 = vld [vmem:[#allocation13 + $0x8] sm:$0xff]  ;;  %v3260_v47 = vld [vmem:[#allocation13] sm:$0xff] }
 0x1e9   :  { %940 = vmatpush.bf16.msra.mxu0 %v937_v4  ;;  %v4968_v4 = vld [vmem:[#allocation49_spill] sm:$0xff]  ;;  %vm4197_vm5 = vmpackc.low %vm291_vm2, %vm290_vm1  ;;  %v3233_v17 = vld [vmem:[#allocation11 + $0x28] sm:$0xf0]  ;;  %vm292_vm1 = vcmp.eq.s32.totalorder %v4973_v32, %v4118_v11  ;;  %vm293_vm2 = vcmp.eq.s32.totalorder %v4974_v54, %v4118_v11  ;;  %v766_v11 = vunpack.c.l.bf16 %v750_v58 }
 0x1ea   :  { %v4972_v49 = vsel %vm4197_vm5, 4294967295, %v4971_v49  ;;  %vm4210_vm8 = vmpackc.low %vm293_vm2, %vm292_vm1  ;;  %v3310_v63 = vld [vmem:[#allocation13 + $0x90] sm:$0xff] }
 0x1eb   :  { %1086 = vmatpush.bf16.msrb.mxu1 %v3261_v20  ;;  %v4976_v26 = vsel %vm4210_vm8, 4294967295, %v4975_v26 }
 0x1ec   :  { %703 = vmatpush.bf16.msra.mxu2 %v2781_v6 }
 0x1ed   :  { %941 = vmatpush.bf16.msra.mxu0 %v936_v53  ;;  %v2769_v53 = vor.u32 %v3242_v39, %v2768_v40  ;;  %v752_v40 = vld [vmem:[#allocation8 + $0x8] sm:$0xff]  }
 0x1ee   :  { %v769_v60 = vunpack.c.h.bf16 %v752_v40 }
 0x1ef   :  { %1087 = vmatpush.bf16.msrb.mxu1 %v3260_v47 }
 0x1f0   :  { %704 = vmatpush.bf16.msra.mxu2 %v2769_v53  ;;  %v768_v53 = vunpack.c.l.bf16 %v752_v40 }
 0x1f1   :  { %942 = vmatpush.bf16.msra.mxu0 %v935_v37  ;;  %675 = vmatmul.bf16.gmra.mxu1 %v4015_v27  ;;  %v3239_v37 = vld [vmem:[#allocation11 + $0x58] sm:$0xf0] }
 0x1f2   :  { %v2757_v0 = vor.u32 %v3239_v37, %v2756_v45 }
 0x1f4   :  { %705 = vmatpush.bf16.msra.mxu2 %v2757_v0 }
 0x1f5   :  { %943 = vmatpush.bf16.msra.mxu0 %v934_v16  ;;  %v3236_v16 = vld [vmem:[#allocation11 + $0x40] sm:$0xf0] }
 0x1f6   :  { %v2745_v55 = vor.u32 %v3236_v16, %v2744_v7  ;;  %v754_v16 = vld [vmem:[#allocation8 + $0x10] sm:$0xff]  }
 0x1f7   :  { %v771_v20 = vunpack.c.h.bf16 %v754_v16 }
 0x1f8   :  { %706 = vmatpush.bf16.msra.mxu2 %v2745_v55  ;;  %v770_v55 = vunpack.c.l.bf16 %v754_v16 }
 0x1f9   :  { %944 = vmatpush.bf16.msra.mxu0 %v933_v34  ;;  %v2733_v34 = vor.u32 %v3233_v17, %v2732_v5 }
 0x1fc   :  { %707 = vmatpush.bf16.msra.mxu2 %v2733_v34 }
 0x1fd   :  { %945 = vmatpush.bf16.msra.mxu0 %v932_v36  ;;  %v3230_v36 = vld [vmem:[#allocation11 + $0x10] sm:$0xf0] }
 0x201   :  { %946 = vmatpush.bf16.msra.mxu0 %v931_v43  ;;  %680 = vmatmul.bf16.gmra.mxu1 %v4021_v31  ;;  %v2721_v43 = vor.u32 %v3230_v36, %v2720_v57  ;;  %v756_v36 = vld [vmem:[#allocation8 + $0x18] sm:$0xff]  }
 0x202   :  { %v773_v58 = vunpack.c.h.bf16 %v756_v36 }
 0x203   :  { %708 = vmatpush.bf16.msra.mxu2 %v2721_v43 }
 0x204   :  { %2839 = vmatmul.msk.bf16.vlgmr.msra.gmra.mxu0 %vm4125_vm3, %v4881_v52 }
 0x206   :  { %709 = vmatmul.bf16.vlgmr.msra.gmra.mxu2 %v4003_v21 }
 0x211   :  { %685 = vmatmul.bf16.gmra.mxu1 %v4027_v33 }
 0x214   :  { %2841 = vmatmul.msk.bf16.gmra.mxu0 %vm4137_vm4, %v4881_v52 }
 0x216   :  { %714 = vmatmul.bf16.gmra.mxu2 %v4006_v22 }
 0x221   :  { %690 = vmatmul.bf16.gmra.mxu1 %v4033_v35 }
 0x224   :  { %2843 = vmatmul.msk.bf16.gmra.mxu0 %vm4149_vm7, %v4881_v52 }
 0x226   :  { %719 = vmatmul.bf16.gmra.mxu2 %v4009_v25 }
 0x231   :  { %695 = vmatmul.bf16.gmra.mxu1 %v4968_v4 }
 0x234   :  { %2845 = vmatmul.msk.bf16.gmra.mxu0 %vm4161_vm6, %v4881_v52 }
 0x236   :  { %724 = vmatmul.bf16.gmra.mxu2 %v4015_v27 }
 0x23e   :  { %v4204_v38 = vpop.f32.mrf.mxu1 }
 0x244   :  { %2847 = vmatmul.msk.bf16.gmra.mxu0 %vm4173_vm9, %v4881_v52 }
 0x246   :  { %v4218_v41 = vpop.f32.mrf.mxu1  ;;  %729 = vmatmul.bf16.gmra.mxu2 %v4021_v31 }
 0x24e   :  { %v4220_v62 = vpop.f32.mrf.mxu1 }
 0x254   :  { %2849 = vmatmul.msk.bf16.gmra.mxu0 %vm4185_vm0, %v4881_v52 }
 0x256   :  { %v4223_v6 = vpop.f32.mrf.mxu1  ;;  %734 = vmatmul.bf16.gmra.mxu2 %v4027_v33  ;;  %v3275_v33 = vld [vmem:[#allocation14 + $0x38] sm:$0xff] }
 0x257   :  { %1221 = vmatpush.bf16.msrb.mxu2 %v3275_v33 }
 0x25e   :  { %v4226_v39 = vpop.f32.mrf.mxu1 }
 0x264   :  { %2851 = vmatmul.msk.bf16.gmra.mxu0 %vm4197_vm5, %v4881_v52 }
 0x266   :  { %v4228_v12 = vpop.f32.mrf.mxu1  ;;  %739 = vmatmul.bf16.gmra.mxu2 %v4033_v35  ;;  %v3272_v35 = vld [vmem:[#allocation14 + $0x20] sm:$0xff] }
 0x26e   :  { %v4231_v25 = vpop.f32.mrf.mxu1 }
 0x274   :  { %2853 = vmatmul.msk.bf16.gmra.mxu0 %vm4210_vm8, %v4881_v52 }
 0x276   :  { %v4234_v43 = vpop.f32.mrf.mxu1  ;;  %744 = vmatmul.bf16.gmra.mxu2 %v4968_v4 }
 0x281   :  { %v948_v59 = vpop.f32.mrf.mxu0 }
 0x282   :  { %v988_v42 = vadd.f32 %v948_v59, %v766_v11  ;;  %v772_v59 = vunpack.c.l.bf16 %v756_v36  ;;  %v3273_v36 = vld [vmem:[#allocation14 + $0x28] sm:$0xff] }
 0x289   :  { %v950_v44 = vpop.f32.mrf.mxu0 }
 0x28a   :  { %v989_v48 = vadd.f32 %v950_v44, %v767_v61 }
 0x28c   :  { %v1004_v21 = vpack.c.bf16 %v989_v48, %v988_v42  ;;  %v4236_v42 = vpop.f32.mrf.mxu1 }
 0x28e   :  { %1088 = vmatmul.bf16.vlgmr.msrb.gmra.mxu1 %v1004_v21  ;;  %v758_v21 = vld [vmem:[#allocation8 + $0x20] sm:$0xff]  }
 0x28f   :  { %v775_v40 = vunpack.c.h.bf16 %v758_v21 }
 0x291   :  { %v953_v10 = vpop.f32.mrf.mxu0 }
 0x292   :  { %v990_v22 = vadd.f32 %v953_v10, %v768_v53  ;;  %v774_v10 = vunpack.c.l.bf16 %v758_v21 }
 0x294   :  { %v4239_v53 = vpop.f32.mrf.mxu1 }
 0x299   :  { %v955_v45 = vpop.f32.mrf.mxu0 }
 0x29a   :  { %v991_v37 = vadd.f32 %v955_v45, %v769_v60 }
 0x29c   :  { %v1005_v0 = vpack.c.bf16 %v991_v37, %v990_v22 }
 0x29e   :  { %1093 = vmatmul.bf16.gmra.mxu1 %v1005_v0  ;;  %v4241_v0 = vpop.f32.mrf.mxu1 }
 0x2a1   :  { %v958_v7 = vpop.f32.mrf.mxu0 }
 0x2a2   :  { %v992_v17 = vadd.f32 %v958_v7, %v770_v55  ;;  %v760_v7 = vld [vmem:[#allocation8 + $0x28] sm:$0xff]  }
 0x2a3   :  { %v776_v16 = vunpack.c.l.bf16 %v760_v7  ;;  %v777_v55 = vunpack.c.h.bf16 %v760_v7 }
 0x2a9   :  { %v960_v5 = vpop.f32.mrf.mxu0 }
 0x2aa   :  { %v993_v34 = vadd.f32 %v960_v5, %v771_v20 }
 0x2ac   :  { %v1006_v47 = vpack.c.bf16 %v993_v34, %v992_v17  ;;  %v4244_v34 = vpop.f32.mrf.mxu1 }
 0x2ae   :  { %1098 = vmatmul.bf16.gmra.mxu1 %v1006_v47 }
 0x2b1   :  { %v963_v57 = vpop.f32.mrf.mxu0 }
 0x2b2   :  { %v994_v27 = vadd.f32 %v963_v57, %v772_v59  ;;  %v3274_v57 = vld [vmem:[#allocation14 + $0x30] sm:$0xff] }
 0x2b3   :  { %1222 = vmatpush.bf16.msrb.mxu2 %v3274_v57 }
 0x2b7   :  { %1223 = vmatpush.bf16.msrb.mxu2 %v3273_v36 }
 0x2b9   :  { %v965_v11 = vpop.f32.mrf.mxu0 }
 0x2ba   :  { %v995_v61 = vadd.f32 %v965_v11, %v773_v58  ;;  %v762_v58 = vld [vmem:[#allocation8 + $0x30] sm:$0xff]   ;;  %v4247_v11 = vpop.f32.mrf.mxu1 }
 0x2bb   :  { %1224 = vmatpush.bf16.msrb.mxu2 %v3272_v35 }
 0x2bc   :  { %v1007_v44 = vpack.c.bf16 %v995_v61, %v994_v27  ;;  %v778_v27 = vunpack.c.l.bf16 %v762_v58  ;;  %v779_v61 = vunpack.c.h.bf16 %v762_v58  ;;  %v4262_v58 = vld [vmem:[%s4839_s8] ss:$0 sm:$0xff] }
 0x2be   :  { %1103 = vmatmul.bf16.gmra.mxu1 %v1007_v44 }
 0x2c1   :  { %v968_v48 = vpop.f32.mrf.mxu0 }
 0x2c2   :  { %v996_v60 = vadd.f32 %v968_v48, %v774_v10  ;;  %v3271_v48 = vld [vmem:[#allocation14 + $0x18] sm:$0xff] }
 0x2c3   :  { %1225 = vmatpush.bf16.msrb.mxu2 %v3271_v48 }
 0x2c9   :  { %v970_v31 = vpop.f32.mrf.mxu0 }
 0x2ca   :  { %v997_v45 = vadd.f32 %v970_v31, %v775_v40  ;;  %v3270_v31 = vld [vmem:[#allocation14 + $0x10] sm:$0xff] }
 0x2cb   :  { %1226 = vmatpush.bf16.msrb.mxu2 %v3270_v31 }
 0x2cc   :  { %v1008_v22 = vpack.c.bf16 %v997_v45, %v996_v60  ;;  %v4249_v60 = vpop.f32.mrf.mxu1  ;;  %v3269_v45 = vld [vmem:[#allocation14 + $0x8] sm:$0xff] }
 0x2ce   :  { %1108 = vmatmul.bf16.gmra.mxu1 %v1008_v22  ;;  %v764_v22 = vld [vmem:[#allocation8 + $0x38] sm:$0xff]  }
 0x2cf   :  { %1227 = vmatpush.bf16.msrb.mxu2 %v3269_v45  ;;  %v780_v7 = vunpack.c.l.bf16 %v764_v22 }
 0x2d1   :  { %v973_v37 = vpop.f32.mrf.mxu0 }
 0x2d2   :  { %v998_v5 = vadd.f32 %v973_v37, %v776_v16  ;;  %v3268_v37 = vld [vmem:[#allocation14] sm:$0xff]  ;;  %v781_v16 = vunpack.c.h.bf16 %v764_v22 }
 0x2d3   :  { %1228 = vmatpush.bf16.msrb.mxu2 %v3268_v37 }
 0x2d9   :  { %v975_v20 = vpop.f32.mrf.mxu0 }
 0x2da   :  { %v999_v17 = vadd.f32 %v975_v20, %v777_v55  ;;  %v4251_v55 = vpop.f32.mrf.mxu1 }
 0x2dc   :  { %v1009_v47 = vpack.c.bf16 %v999_v17, %v998_v5 }
 0x2de   :  { %1113 = vmatmul.bf16.gmra.mxu1 %v1009_v47  ;;  %v4253_v47 = vpop.f32.mrf.mxu2 }
 0x2df   :  { %4977 = vst [vmem:[#allocation49_spill] sm:$0xff] %v4253_v47  ;;  %v3413_v47 = vld [vmem:[#allocation7] ss:$0 sm:$0xff] }
 0x2e0   :  { %vm336_vm1 = vcmp.eq.s32.totalorder %v3858_v1, %v3413_v47  ;;  %vm337_vm2 = vcmp.eq.s32.totalorder %v3861_v2, %v3413_v47  ;;  %v5003_v47 = vld [vmem:[#allocation46_spill] sm:$0xff] }
 0x2e1   :  { %v978_v59 = vpop.f32.mrf.mxu0  ;;  %vm4406_vm11 = vmpackc.low %vm337_vm2, %vm336_vm1 }
 0x2e2   :  { %v1000_v21 = vadd.f32 %v978_v59, %v778_v27  ;;  %v4255_v57 = vpop.f32.mrf.mxu1 }
 0x2e6   :  { %v4257_v36 = vpop.f32.mrf.mxu2 }
 0x2e7   :  { %4978 = vst [vmem:[#allocation53_spill] sm:$0xff] %v4257_v36 }
 0x2e9   :  { %v980_v44 = vpop.f32.mrf.mxu0 }
 0x2ea   :  { %v1001_v10 = vadd.f32 %v980_v44, %v779_v61 }
 0x2ec   :  { %v1010_v40 = vpack.c.bf16 %v1001_v10, %v1000_v21 }
 0x2ee   :  { %1118 = vmatmul.bf16.gmra.mxu1 %v1010_v40  ;;  %v4265_v61 = vpop.f32.mrf.mxu2 }
 0x2ef   :  { %4979 = vst [vmem:[#allocation54_spill] sm:$0xff] %v4265_v61 }
 0x2f1   :  { %v983_v4 = vpop.f32.mrf.mxu0 }
 0x2f2   :  { %v1002_v33 = vadd.f32 %v983_v4, %v780_v7 }
 0x2f6   :  { %v4268_v31 = vpop.f32.mrf.mxu2 }
 0x2f7   :  { %4980 = vst [vmem:[#allocation55_spill] sm:$0xff] %v4268_v31 }
 0x2f9   :  { %v985_v20 = vpop.f32.mrf.mxu0 }
 0x2fa   :  { %v1003_v5 = vadd.f32 %v985_v20, %v781_v16 }
 0x2fc   :  { %v1011_v17 = vpack.c.bf16 %v1003_v5, %v1002_v33 }
 0x2fe   :  { %1123 = vmatmul.bf16.gmra.mxu1 %v1011_v17  ;;  %v4272_v16 = vpop.f32.mrf.mxu2 }
 0x2ff   :  { %4981 = vst [vmem:[#allocation56_spill] sm:$0xff] %v4272_v16 }
 0x306   :  { %v4274_v5 = vpop.f32.mrf.mxu2 }
 0x307   :  { %4982 = vst [vmem:[#allocation57_spill] sm:$0xff] %v4274_v5 }
 0x30b   :  { %v1089_v59 = vpop.f32.mrf.mxu1 }
 0x30c   :  { %v1090_v35 = vadd.f32 %v4262_v58, %v1089_v59 }
 0x30e   :  { %v1129_v48 = vmax.f32 %v1090_v35, 0.0 }
 0x313   :  { %v1091_v27 = vpop.f32.mrf.mxu1 }
 0x314   :  { %v1092_v44 = vadd.f32 %v4262_v58, %v1091_v27 }
 0x316   :  { %v1130_v21 = vmax.f32 %v1092_v44, 0.0 }
 0x318   :  { %v1145_v10 = vpack.c.bf16 %v1130_v21, %v1129_v48 }
 0x31a   :  { %1229 = vmatmul.bf16.vlgmr.msrb.gmra.mxu2 %v1145_v10  ;;  %v4278_v10 = vpop.f32.mrf.mxu2 }
 0x31b   :  { %v1094_v40 = vpop.f32.mrf.mxu1  ;;  %4983 = vst [vmem:[#allocation58_spill] sm:$0xff] %v4278_v10 }
 0x31c   :  { %v1095_v4 = vadd.f32 %v4262_v58, %v1094_v40 }
 0x31e   :  { %v1131_v37 = vmax.f32 %v1095_v4, 0.0 }
 0x323   :  { %v1096_v45 = vpop.f32.mrf.mxu1 }
 0x324   :  { %v1097_v22 = vadd.f32 %v4262_v58, %v1096_v45 }
 0x326   :  { %v1132_v7 = vmax.f32 %v1097_v22, 0.0  ;;  %v4282_v22 = vpop.f32.mrf.mxu2 }
 0x327   :  { %4984 = vst [vmem:[#allocation59_spill] sm:$0xff] %v4282_v22 }
 0x328   :  { %v1146_v20 = vpack.c.bf16 %v1132_v7, %v1131_v37 }
 0x32a   :  { %1234 = vmatmul.bf16.gmra.mxu2 %v1146_v20 }
 0x32b   :  { %v1099_v33 = vpop.f32.mrf.mxu1 }
 0x32c   :  { %v1100_v17 = vadd.f32 %v4262_v58, %v1099_v33 }
 0x32e   :  { %v1133_v27 = vmax.f32 %v1100_v17, 0.0 }
 0x333   :  { %v1101_v59 = vpop.f32.mrf.mxu1 }
 0x334   :  { %v1102_v35 = vadd.f32 %v4262_v58, %v1101_v59  ;;  %v4284_v59 = vpop.f32.mrf.mxu2 }
 0x335   :  { %4985 = vst [vmem:[#allocation60_spill] sm:$0xff] %v4284_v59 }
 0x336   :  { %v1134_v44 = vmax.f32 %v1102_v35, 0.0 }
 0x338   :  { %v1147_v48 = vpack.c.bf16 %v1134_v44, %v1133_v27 }
 0x33a   :  { %1239 = vmatmul.bf16.gmra.mxu2 %v1147_v48 }
 0x33b   :  { %v1104_v21 = vpop.f32.mrf.mxu1 }
 0x33c   :  { %v1105_v40 = vadd.f32 %v4262_v58, %v1104_v21  ;;  %v4288_v52 = vpop.f32.mrf.mxu2 }
 0x33d   :  { %4986 = vst [vmem:[#allocation61_spill] sm:$0xff] %v4288_v52 }
 0x33e   :  { %v1135_v37 = vmax.f32 %v1105_v40, 0.0 }
 0x343   :  { %v1106_v4 = vpop.f32.mrf.mxu1 }
 0x344   :  { %v1107_v45 = vadd.f32 %v4262_v58, %v1106_v4 }
 0x346   :  { %v1136_v7 = vmax.f32 %v1107_v45, 0.0 }
 0x348   :  { %v1148_v20 = vpack.c.bf16 %v1136_v7, %v1135_v37  ;;  %v4291_v37 = vpop.f32.mrf.mxu2 }
 0x349   :  { %4987 = vst [vmem:[#allocation62_spill] sm:$0xff] %v4291_v37 }
 0x34a   :  { %1244 = vmatmul.bf16.gmra.mxu2 %v1148_v20 }
 0x34b   :  { %v1109_v33 = vpop.f32.mrf.mxu1 }
 0x34c   :  { %v1110_v17 = vadd.f32 %v4262_v58, %v1109_v33 }
 0x34e   :  { %v1137_v44 = vmax.f32 %v1110_v17, 0.0 }
 0x353   :  { %v1111_v35 = vpop.f32.mrf.mxu1 }
 0x354   :  { %v1112_v27 = vadd.f32 %v4262_v58, %v1111_v35  ;;  %v4294_v35 = vpop.f32.mrf.mxu2 }
 0x355   :  { %4988 = vst [vmem:[#allocation63_spill] sm:$0xff] %v4294_v35 }
 0x356   :  { %v1138_v48 = vmax.f32 %v1112_v27, 0.0 }
 0x358   :  { %v1149_v21 = vpack.c.bf16 %v1138_v48, %v1137_v44 }
 0x35a   :  { %1249 = vmatmul.bf16.gmra.mxu2 %v1149_v21 }
 0x35b   :  { %v1114_v4 = vpop.f32.mrf.mxu1 }
 0x35c   :  { %v1115_v40 = vadd.f32 %v4262_v58, %v1114_v4  ;;  %v4298_v4 = vpop.f32.mrf.mxu2 }
 0x35d   :  { %4989 = vst [vmem:[#allocation64_spill] sm:$0xff] %v4298_v4 }
 0x35e   :  { %v1139_v20 = vmax.f32 %v1115_v40, 0.0 }
 0x363   :  { %v1116_v45 = vpop.f32.mrf.mxu1 }
 0x364   :  { %v1117_v7 = vadd.f32 %v4262_v58, %v1116_v45  ;;  %v4300_v45 = vpop.f32.mrf.mxu2 }
 0x365   :  { %4990 = vst [vmem:[#allocation65_spill] sm:$0xff] %v4300_v45 }
 0x366   :  { %v1140_v59 = vmax.f32 %v1117_v7, 0.0 }
 0x368   :  { %v1150_v33 = vpack.c.bf16 %v1140_v59, %v1139_v20 }
 0x36a   :  { %1254 = vmatmul.bf16.gmra.mxu2 %v1150_v33 }
 0x36b   :  { %v1119_v22 = vpop.f32.mrf.mxu1 }
 0x36c   :  { %v1120_v17 = vadd.f32 %v4262_v58, %v1119_v22  ;;  %v4304_v35 = vpop.f32.mrf.mxu2 }
 0x36d   :  { %4991 = vst [vmem:[#allocation66_spill] sm:$0xff] %v4304_v35 }
 0x36e   :  { %v1141_v48 = vmax.f32 %v1120_v17, 0.0 }
 0x373   :  { %v1121_v27 = vpop.f32.mrf.mxu1 }
 0x374   :  { %v1122_v44 = vadd.f32 %v4262_v58, %v1121_v27  ;;  %v4306_v17 = vpop.f32.mrf.mxu2 }
 0x375   :  { %4992 = vst [vmem:[#allocation67_spill] sm:$0xff] %v4306_v17 }
 0x376   :  { %v1142_v21 = vmax.f32 %v1122_v44, 0.0 }
 0x378   :  { %v1151_v52 = vpack.c.bf16 %v1142_v21, %v1141_v48 }
 0x37a   :  { %1259 = vmatmul.bf16.gmra.mxu2 %v1151_v52 }
 0x37b   :  { %v1124_v37 = vpop.f32.mrf.mxu1 }
 0x37c   :  { %v1125_v59 = vadd.f32 %v4262_v58, %v1124_v37 }
 0x37e   :  { %v1143_v20 = vmax.f32 %v1125_v59, 0.0 }
 0x383   :  { %v1126_v40 = vpop.f32.mrf.mxu1 }
 0x384   :  { %v1127_v7 = vadd.f32 %v4262_v58, %v1126_v40 }
 0x386   :  { %v1144_v33 = vmax.f32 %v1127_v7, 0.0 }
 0x388   :  { %v1152_v22 = vpack.c.bf16 %v1144_v33, %v1143_v20  ;;  %v3412_v33 = vld [vmem:[%s4841_s10] ss:$0 sm:$0xff] }
 0x38a   :  { %1264 = vmatmul.bf16.gmra.mxu2 %v1152_v22 }
 0x39d   :  { %v4308_v27 = vpop.f32.mrf.mxu2 }
 0x3a5   :  { %v1232_v44 = vpop.f32.mrf.mxu2 }
 0x3ad   :  { %v1235_v52 = vpop.f32.mrf.mxu2 }
 0x3b5   :  { %v1237_v48 = vpop.f32.mrf.mxu2 }
 0x3bd   :  { %v1240_v21 = vpop.f32.mrf.mxu2 }
 0x3c5   :  { %v1242_v4 = vpop.f32.mrf.mxu2 }
 0x3c6   :  { %v4361_v18 = vadd.f32 %v3412_v33, %v1242_v4 }
 0x3cd   :  { %v1245_v45 = vpop.f32.mrf.mxu2 }
 0x3d5   :  { %v1247_v37 = vpop.f32.mrf.mxu2 }
 0x3d6   :  { %v4348_v19 = vadd.f32 %v3412_v33, %v1247_v37 }
 0x3d8   :  { %v4898_v37 = vmax.f32 %v4348_v19, 0.0 }
 0x3dd   :  { %v1250_v10 = vpop.f32.mrf.mxu2 }
 0x3de   :  { %v4344_v13 = vadd.f32 %v3412_v33, %v1250_v10  ;;  %v4358_v10 = vadd.f32 %v3412_v33, %v1245_v45  ;;  %v4371_v45 = vadd.f32 %v3412_v33, %v1237_v48 }
 0x3e5   :  { %v1252_v5 = vpop.f32.mrf.mxu2 }
 0x3ed   :  { %v1255_v58 = vpop.f32.mrf.mxu2 }
 0x3f5   :  { %v1257_v59 = vpop.f32.mrf.mxu2 }
 0x3f6   :  { %v4323_v9 = vadd.f32 %v3412_v33, %v1257_v59  ;;  %v4337_v59 = vadd.f32 %v3412_v33, %v1252_v5 }
 0x3f8   :  { %v4893_v8 = vmax.f32 %v4323_v9, 0.0 }
 0x3fd   :  { %v1260_v40 = vpop.f32.mrf.mxu2 }
 0x3fe   :  { %v4319_v31 = vadd.f32 %v3412_v33, %v1260_v40 }
 0x400   :  { %v4890_v40 = vmax.f32 %v4319_v31, 0.0 }
 0x405   :  { %v1262_v7 = vpop.f32.mrf.mxu2 }
 0x406   :  { %v4315_v35 = vadd.f32 %v3412_v33, %v1262_v7  ;;  %v4995_v7 = vmov 0.0  }
 0x407   :  { %v2676_v14 = vsel %vm336_vm1, 1.0, %v4995_v7  ;;  %vm3371_vm1 = vmpackc.low %vm235_vm15, %vm234_vm14 }
 0x408   :  { %342 = vadd.xlane.f32.xlu1 %v2676_v14  ;;  %v4896_v14 = vmax.f32 %v4337_v59, 0.0 }
 0x40d   :  { %v1265_v20 = vpop.f32.mrf.mxu2 }
 0x40e   :  { %v4313_v22 = vadd.f32 %v3412_v33, %v1265_v20 }
 0x410   :  { %4993 = vst [vmem:[#allocation68_spill] sm:$0xff] %v4313_v22  ;;  %v4887_v61 = vmax.f32 %v4313_v22, 0.0 }
 0x415   :  { %v1267_v17 = vpop.f32.mrf.mxu2 }
 0x416   :  { %v4317_v16 = vadd.f32 %v3412_v33, %v1267_v17  ;;  %v4331_v17 = vadd.f32 %v3412_v33, %v1255_v58 }
 0x418   :  { %4994 = vst [vmem:[#allocation69_spill] sm:$0xff] %v4317_v16  ;;  %v4886_v36 = vmax.f32 %v4317_v16, 0.0  ;;  %v4894_v58 = vmax.f32 %v4331_v17, 0.0 }
 0x41a   :  { %v1293_v20 = vpack.c.bf16 %v4886_v36, %v4887_v61  ;;  %v4996_v36 = vmax.f32 %v4315_v35, 0.0  ;;  %v1291_v5 = vpack.c.bf16 %v4893_v8, %v4894_v58  ;;  %v4368_v8 = vadd.f32 %v3412_v33, %v1240_v21 }
 0x41b   :  { %v4899_v58 = vmax.f32 %v4358_v10, 0.0  ;;  %v4903_v21 = vmax.f32 %v4371_v45, 0.0 }
 0x41c   :  { %1294 = vmatpush.bf16.msrb.mxu3 %v1293_v20  ;;  %v1292_v61 = vpack.c.bf16 %v4996_v36, %v4890_v40  ;;  %v2677_v36 = vsel %vm337_vm2, 1.0, %v4995_v7  ;;  %v4897_v40 = vmax.f32 %v4344_v13, 0.0  ;;  %v4901_v7 = vmax.f32 %v4361_v18, 0.0  ;;  %vm3373_vm2 = vmpackc.low %vm233_vm13, %vm232_vm12 }
 0x41d   :  { %344 = vadd.xlane.f32.xlu1 %v2677_v36  ;;  %v1289_v4 = vpack.c.bf16 %v4898_v37, %v4899_v58  ;;  %v4378_v36 = vadd.f32 %v3412_v33, %v1235_v52  ;;  %v4902_v23 = vmax.f32 %v4368_v8, 0.0 }
 0x41e   :  { %v1290_v24 = vpack.c.bf16 %v4896_v14, %v4897_v40  ;;  %v4381_v14 = vadd.f32 %v3412_v33, %v1232_v44  ;;  %v4389_v40 = vadd.f32 %v3412_v33, %v4308_v27  ;;  %v4997_v27 = vmov 0 }
 0x41f   :  { %v1288_v48 = vpack.c.bf16 %v4901_v7, %v4902_v23  ;;  %v4904_v3 = vmax.f32 %v4378_v36, 0.0  ;;  %v4998_v27 = vsel %vm4406_vm11, 4294967295, %v4997_v27  ;;  %v5000_v33 = vmov 1.0|1.0   ;;  %v5001_v7 = vld [vmem:[#allocation44_spill] sm:$0xff]  ;;  %v5002_v23 = vld [vmem:[#allocation45_spill] sm:$0xff] }
 0x420   :  { %1295 = vmatpush.bf16.msrb.mxu3 %v1292_v61  ;;  %v4905_v52 = vmax.f32 %v4381_v14, 0.0  ;;  %v4906_v37 = vmax.f32 %v4389_v40, 0.0  ;;  %4999 = vst [vmem:[#allocation70_spill] sm:$0xff] %v4998_v27 }
 0x421   :  { %v1287_v44 = vpack.c.bf16 %v4903_v21, %v4904_v3  ;;  %v5004_v21 = vld [vmem:[#allocation47_spill] sm:$0xff]  ;;  %v5006_v3 = vld [vmem:[#allocation50_spill] sm:$0xff] }
 0x422   :  { %v1286_v58 = vpack.c.bf16 %v4905_v52, %v4906_v37  ;;  %v5007_v52 = vld [vmem:[#allocation51_spill] sm:$0xff] }
 0x424   :  { %1296 = vmatpush.bf16.msrb.mxu3 %v1291_v5 }
 0x428   :  { %1297 = vmatpush.bf16.msrb.mxu3 %v1290_v24 }
 0x42c   :  { %1298 = vmatpush.bf16.msrb.mxu3 %v1289_v4 }
 0x430   :  { %1299 = vmatpush.bf16.msrb.mxu3 %v1288_v48 }
 0x434   :  { %1300 = vmatpush.bf16.msrb.mxu3 %v1287_v44 }
 0x438   :  { %1301 = vmatpush.bf16.msrb.mxu3 %v1286_v58 }
 0x43b   :  { %2919 = vmatmul.msk.bf16.vlgmr.msrb.gmra.mxu3 %vm4406_vm11, %v5000_v33 }
 0x43c   :  { %1348 = vmatpush.bf16.msra.mxu3 %v1293_v20  ;;  %v5005_v20 = vld [vmem:[#allocation48_spill] sm:$0xff] }
 0x440   :  { %1349 = vmatpush.bf16.msra.mxu3 %v1292_v61  ;;  %v5008_v61 = vld [vmem:[#allocation52_spill] sm:$0xff] }
 0x444   :  { %1350 = vmatpush.bf16.msra.mxu3 %v1291_v5 }
 0x448   :  { %1351 = vmatpush.bf16.msra.mxu3 %v1290_v24 }
 0x44c   :  { %1352 = vmatpush.bf16.msra.mxu3 %v1289_v4 }
 0x450   :  { %1353 = vmatpush.bf16.msra.mxu3 %v1288_v48 }
 0x454   :  { %1354 = vmatpush.bf16.msra.mxu3 %v1287_v44 }
 0x458   :  { %1355 = vmatpush.bf16.msra.mxu3 %v1286_v58 }
 0x45b   :  { %1356 = vmatmul.bf16.vlgmr.msra.gmra.mxu3 %v5001_v7 }
 0x46b   :  { %1361 = vmatmul.bf16.gmra.mxu3 %v5002_v23  ;;  %v4428_v23 = vld [vmem:[%s4837_s6 + $0x1] ss:$0 sm:$0xff] }
 0x46c   :  { %v1332_v58 = vadd.f32 %v4428_v23, %v4204_v38  ;;  %v1338_v38 = vadd.f32 %v4428_v23, %v4231_v25  ;;  %v1345_v25 = vadd.f32 %v4428_v23, %v4249_v60  ;;  %v1343_v15 = vadd.f32 %v4428_v23, %v4244_v34 }
 0x47b   :  { %1366 = vmatmul.bf16.gmra.mxu3 %v5003_v47  ;;  %v1336_v47 = vadd.f32 %v4428_v23, %v4226_v39 }
 0x48b   :  { %1371 = vmatmul.bf16.gmra.mxu3 %v5004_v21  ;;  %v1334_v21 = vadd.f32 %v4428_v23, %v4220_v62 }
 0x49b   :  { %1376 = vmatmul.bf16.gmra.mxu3 %v5005_v20 }
 0x4ab   :  { %1381 = vmatmul.bf16.gmra.mxu3 %v5006_v3 }
 0x4bb   :  { %1386 = vmatmul.bf16.gmra.mxu3 %v5007_v52 }
 0x4be   :  { %v4421_v24 = vpop.f32.mrf.mxu3 }
 0x4bf   :  { %5009 = vst [vmem:[#allocation44_spill] sm:$0xff] %v4421_v24  ;;  %v1340_v24 = vadd.f32 %v4428_v23, %v4236_v42  ;;  %v1344_v42 = vadd.f32 %v4428_v23, %v4247_v11 }
 0x4c6   :  { %v4423_v5 = vpop.f32.mrf.mxu3 }
 0x4c7   :  { %5010 = vst [vmem:[#allocation45_spill] sm:$0xff] %v4423_v5 }
 0x4cb   :  { %1391 = vmatmul.bf16.gmra.mxu3 %v5008_v61 }
 0x4de   :  { %v1357_v7 = vpop.f32.mrf.mxu3 }
 0x4df   :  { %v4432_v4 = vadd.f32 %v1357_v7, %v1332_v58 }
 0x4e6   :  { %v4434_v3 = vpop.f32.mrf.mxu3 }
 0x4ee   :  { %v1362_v48 = vpop.f32.mrf.mxu3 }
 0x4ef   :  { %v4438_v52 = vadd.f32 %v1362_v48, %v1334_v21 }
 0x4f6   :  { %v1364_v44 = vpop.f32.mrf.mxu3 }
 0x4fe   :  { %v1367_v20 = vpop.f32.mrf.mxu3 }
 0x4ff   :  { %v1368_v61 = vadd.f32 %v1367_v20, %v1336_v47  ;;  %v1346_v47 = vadd.f32 %v4428_v23, %v4251_v55  ;;  %v1347_v20 = vadd.f32 %v4428_v23, %v4255_v57  ;;  %v1342_v55 = vadd.f32 %v4428_v23, %v4241_v0 }
 0x500   :  { %v1341_v57 = vadd.f32 %v4428_v23, %v4239_v53  ;;  %v1335_v53 = vadd.f32 %v4428_v23, %v4223_v6  ;;  %v1397_v6 = vmax.f32 %v4432_v4, 0.0  ;;  %v3289_v4 = vld [vmem:[#allocation13 + $0x68] sm:$0xff] }
 0x506   :  { %v1369_v37 = vpop.f32.mrf.mxu3 }
 0x50e   :  { %v1372_v58 = vpop.f32.mrf.mxu3 }
 0x50f   :  { %v1373_v7 = vadd.f32 %v1372_v58, %v1338_v38 }
 0x516   :  { %v1374_v5 = vpop.f32.mrf.mxu3 }
 0x51e   :  { %v1377_v62 = vpop.f32.mrf.mxu3 }
 0x51f   :  { %v1378_v27 = vadd.f32 %v1377_v62, %v1340_v24 }
 0x526   :  { %v1379_v21 = vpop.f32.mrf.mxu3 }
 0x52e   :  { %v1382_v48 = vpop.f32.mrf.mxu3 }
 0x536   :  { %v1384_v2 = vpop.f32.mrf.mxu3 }
 0x537   :  { %v1385_v60 = vadd.f32 %v1384_v2, %v1343_v15  ;;  %v1337_v2 = vadd.f32 %v4428_v23, %v4228_v12  ;;  %v1405_v15 = vmax.f32 %v1378_v27, 0.0 }
 0x539   :  { %v1408_v11 = vmax.f32 %v1385_v60, 0.0 }
 0x53e   :  { %v1387_v1 = vpop.f32.mrf.mxu3 }
 0x53f   :  { %v1388_v29 = vadd.f32 %v1387_v1, %v1344_v42  ;;  %v1339_v1 = vadd.f32 %v4428_v23, %v4234_v43 }
 0x546   :  { %v1389_v28 = vpop.f32.mrf.mxu3 }
 0x547   :  { %v1390_v24 = vadd.f32 %v1389_v28, %v1345_v25  ;;  %v1380_v28 = vadd.f32 %v1379_v21, %v1341_v57  ;;  %v5011_v57 = vmax.f32 %v4389_v40, 0.0  ;;  %v5015_v40 = vmax.f32 %v4368_v8, 0.0 }
 0x548   :  { %v5019_v8 = vmax.f32 %v4344_v13, 0.0  ;;  %v3297_v13 = vld [vmem:[#allocation14 + $0x68] sm:$0xff] }
 0x549   :  { %v1410_v16 = vmax.f32 %v1390_v24, 0.0 }
 0x54e   :  { %v1392_v39 = vpop.f32.mrf.mxu3 }
 0x54f   :  { %v1393_v38 = vadd.f32 %v1392_v39, %v1346_v47  ;;  %v1383_v39 = vadd.f32 %v1382_v48, %v1342_v55  ;;  %v1409_v47 = vmax.f32 %v1388_v29, 0.0  ;;  %v1401_v48 = vmax.f32 %v1368_v61, 0.0  ;;  %v3286_v61 = vld [vmem:[#allocation13 + $0x50] sm:$0xff] }
 0x551   :  { %v1411_v54 = vmax.f32 %v1393_v38, 0.0  ;;  %v1419_v25 = vpack.c.bf16 %v1410_v16, %v1409_v47  ;;  %v1407_v34 = vmax.f32 %v1383_v39, 0.0  ;;  %v1406_v38 = vmax.f32 %v1380_v28, 0.0 }
 0x552   :  { %v1403_v16 = vmax.f32 %v1373_v7, 0.0  ;;  %v3285_v7 = vld [vmem:[#allocation13 + $0x48] sm:$0xff]  ;;  %v5012_v47 = vmax.f32 %v4381_v14, 0.0  ;;  %v5016_v14 = vmax.f32 %v4361_v18, 0.0  ;;  %v5020_v18 = vmax.f32 %v4337_v59, 0.0  ;;  %v3296_v59 = vld [vmem:[#allocation14 + $0x60] sm:$0xff] }
 0x553   :  { %v1418_v0 = vpack.c.bf16 %v1408_v11, %v1407_v34  ;;  %v1417_v29 = vpack.c.bf16 %v1406_v38, %v1405_v15  ;;  %v5013_v34 = vmax.f32 %v4378_v36, 0.0  ;;  %v5014_v38 = vmax.f32 %v4371_v45, 0.0 }
 0x554   :  { %v5017_v36 = vmax.f32 %v4358_v10, 0.0  ;;  %v5018_v45 = vmax.f32 %v4348_v19, 0.0  ;;  %v5021_v10 = vmax.f32 %v4331_v17, 0.0  ;;  %v5022_v19 = vmax.f32 %v4323_v9, 0.0 }
 0x555   :  { %v5024_v17 = vmax.f32 %v4315_v35, 0.0 }
 0x556   :  { %v1394_v58 = vpop.f32.mrf.mxu3 }
 0x557   :  { %v1395_v62 = vadd.f32 %v1394_v58, %v1347_v20  ;;  %v1375_v20 = vadd.f32 %v1374_v5, %v1339_v1  ;;  %v1333_v5 = vadd.f32 %v4428_v23, %v4218_v41  ;;  %v3291_v41 = vld [vmem:[#allocation13 + $0x78] sm:$0xff]  ;;  %v3290_v23 = vld [vmem:[#allocation13 + $0x70] sm:$0xff] }
 0x558   :  { %1564 = vmatpush.bf16.msra.mxu1 %v3291_v41 }
 0x559   :  { %v1412_v32 = vmax.f32 %v1395_v62, 0.0  ;;  %v1360_v12 = vadd.f32 %v4434_v3, %v1333_v5  ;;  %v3288_v3 = vld [vmem:[#allocation13 + $0x60] sm:$0xff] }
 0x55a   :  { %v3284_v62 = vld [vmem:[#allocation13 + $0x40] sm:$0xff] }
 0x55b   :  { %v1420_v22 = vpack.c.bf16 %v1412_v32, %v1411_v54  ;;  %v1370_v32 = vadd.f32 %v1369_v37, %v1337_v2  ;;  %v1404_v54 = vmax.f32 %v1375_v20, 0.0  ;;  %v1399_v37 = vmax.f32 %v4438_v52, 0.0  ;;  %v3287_v52 = vld [vmem:[#allocation13 + $0x58] sm:$0xff] }
 0x55c   :  { %v1398_v42 = vmax.f32 %v1360_v12, 0.0  ;;  %1565 = vmatpush.bf16.msra.mxu1 %v3290_v23 }
 0x55d   :  { %1421 = vmatpush.bf16.msra.mxu0 %v1420_v22  ;;  %v1365_v22 = vadd.f32 %v1364_v44, %v1335_v53  ;;  %v1402_v43 = vmax.f32 %v1370_v32, 0.0  ;;  %v1416_v21 = vpack.c.bf16 %v1404_v54, %v1403_v16 }
 0x55e   :  { %v1413_v44 = vpack.c.bf16 %v1398_v42, %v1397_v6  ;;  %v3299_v6 = vld [vmem:[#allocation14 + $0x78] sm:$0xff] }
 0x55f   :  { %v1400_v27 = vmax.f32 %v1365_v22, 0.0  ;;  %v1415_v58 = vpack.c.bf16 %v1402_v43, %v1401_v48  ;;  %1707 = vmatpush.bf16.msra.mxu2 %v3299_v6 }
 0x560   :  { %1566 = vmatpush.bf16.msra.mxu1 %v3289_v4  ;;  %v3298_v4 = vld [vmem:[#allocation14 + $0x70] sm:$0xff] }
 0x561   :  { %1422 = vmatpush.bf16.msra.mxu0 %v1419_v25  ;;  %v1414_v24 = vpack.c.bf16 %v1400_v27, %v1399_v37 }
 0x563   :  { %1708 = vmatpush.bf16.msra.mxu2 %v3298_v4 }
 0x564   :  { %1567 = vmatpush.bf16.msra.mxu1 %v3288_v3 }
 0x565   :  { %1423 = vmatpush.bf16.msra.mxu0 %v1418_v0 }
 0x567   :  { %1709 = vmatpush.bf16.msra.mxu2 %v3297_v13 }
 0x568   :  { %1568 = vmatpush.bf16.msra.mxu1 %v3287_v52 }
 0x569   :  { %1424 = vmatpush.bf16.msra.mxu0 %v1417_v29 }
 0x56b   :  { %1710 = vmatpush.bf16.msra.mxu2 %v3296_v59 }
 0x56c   :  { %1569 = vmatpush.bf16.msra.mxu1 %v3286_v61  ;;  %v3295_v61 = vld [vmem:[#allocation14 + $0x58] sm:$0xff] }
 0x56d   :  { %1425 = vmatpush.bf16.msra.mxu0 %v1416_v21 }
 0x56f   :  { %1711 = vmatpush.bf16.msra.mxu2 %v3295_v61 }
 0x570   :  { %1570 = vmatpush.bf16.msra.mxu1 %v3285_v7  ;;  %v5023_v7 = vmax.f32 %v4319_v31, 0.0 }
 0x571   :  { %1426 = vmatpush.bf16.msra.mxu0 %v1415_v58 }
 0x574   :  { %1571 = vmatpush.bf16.msra.mxu1 %v3284_v62 }
 0x575   :  { %1427 = vmatpush.bf16.msra.mxu0 %v1414_v24 }
 0x579   :  { %1428 = vmatpush.bf16.msra.mxu0 %v1413_v44 }
 0x57c   :  { %2922 = vmatmul.msk.bf16.vlgmr.msra.gmra.mxu0 %vm4125_vm3, %v5000_v33 }
 0x57d   :  { %3372 = vmatpush.lsf.msk.bf16.msk.msrb.mxu0 %vm3371_vm1, %v5000_v33 }
 0x581   :  { %3374 = vmatpush.lsf.msk.bf16.msk.msrb.mxu0 %vm3373_vm2, %v5000_v33 }
 0x58c   :  { %2924 = vmatmul.msk.bf16.gmra.mxu0 %vm4137_vm4, %v5000_v33 }
 0x59c   :  { %2926 = vmatmul.msk.bf16.gmra.mxu0 %vm4149_vm7, %v5000_v33 }
 0x5ac   :  { %2928 = vmatmul.msk.bf16.gmra.mxu0 %vm4161_vm6, %v5000_v33 }
 0x5bc   :  { %2930 = vmatmul.msk.bf16.gmra.mxu0 %vm4173_vm9, %v5000_v33 }
 0x5cc   :  { %2932 = vmatmul.msk.bf16.gmra.mxu0 %vm4185_vm0, %v5000_v33 }
 0x5dc   :  { %2934 = vmatmul.msk.bf16.gmra.mxu0 %vm4197_vm5, %v5000_v33 }
 0x5ec   :  { %2936 = vmatmul.msk.bf16.gmra.mxu0 %vm4210_vm8, %v5000_v33 }
 0x5f9   :  { %v1430_v55 = vpop.f32.mrf.mxu0 }
 0x5fa   :  { %v1470_v39 = vadd.f32 %v1430_v55, %v5011_v57 }
 0x601   :  { %v1432_v60 = vpop.f32.mrf.mxu0 }
 0x602   :  { %v1471_v28 = vadd.f32 %v1432_v60, %v5012_v47  ;;  %v3294_v60 = vld [vmem:[#allocation14 + $0x50] sm:$0xff]  ;;  %v3292_v47 = vld [vmem:[#allocation14 + $0x40] sm:$0xff] }
 0x603   :  { %1712 = vmatpush.bf16.msra.mxu2 %v3294_v60 }
 0x604   :  { %v1486_v11 = vpack.c.bf16 %v1471_v28, %v1470_v39  ;;  %v3293_v39 = vld [vmem:[#allocation14 + $0x48] sm:$0xff] }
 0x606   :  { %1572 = vmatmul.bf16.vlgmr.msra.gmra.mxu1 %v1486_v11  ;;  %v5025_v11 = vld [vmem:[#allocation68_spill] sm:$0xff] }
 0x607   :  { %1713 = vmatpush.bf16.msra.mxu2 %v3293_v39 }
 0x609   :  { %v1435_v25 = vpop.f32.mrf.mxu0 }
 0x60a   :  { %v1472_v20 = vadd.f32 %v1435_v25, %v5013_v34  ;;  %v5026_v25 = vmax.f32 %v5025_v11, 0.0  ;;  %v5027_v34 = vld [vmem:[#allocation69_spill] sm:$0xff] }
 0x60b   :  { %1714 = vmatpush.bf16.msra.mxu2 %v3292_v47  ;;  %v5028_v31 = vmax.f32 %v5027_v34, 0.0 }
 0x60f   :  { %2175 = vmatpush.bf16.msrb.mxu2 %v3315_v46 }
 0x611   :  { %v1437_v1 = vpop.f32.mrf.mxu0 }
 0x612   :  { %v1473_v0 = vadd.f32 %v1437_v1, %v5014_v38 }
 0x614   :  { %v1487_v2 = vpack.c.bf16 %v1473_v0, %v1472_v20  ;;  %v3414_v0 = vld [vmem:[%s4839_s8 + $0x1] ss:$0 sm:$0xff] }
 0x616   :  { %1577 = vmatmul.bf16.gmra.mxu1 %v1487_v2 }
 0x619   :  { %v1440_v15 = vpop.f32.mrf.mxu0 }
 0x61a   :  { %v1474_v54 = vadd.f32 %v1440_v15, %v5015_v40 }
 0x621   :  { %v1442_v32 = vpop.f32.mrf.mxu0 }
 0x622   :  { %v1475_v29 = vadd.f32 %v1442_v32, %v5016_v14 }
 0x624   :  { %v1488_v53 = vpack.c.bf16 %v1475_v29, %v1474_v54 }
 0x626   :  { %1582 = vmatmul.bf16.gmra.mxu1 %v1488_v53 }
 0x629   :  { %v1445_v16 = vpop.f32.mrf.mxu0 }
 0x62a   :  { %v1476_v43 = vadd.f32 %v1445_v16, %v5017_v36 }
 0x631   :  { %v1447_v22 = vpop.f32.mrf.mxu0 }
 0x632   :  { %v1477_v21 = vadd.f32 %v1447_v22, %v5018_v45 }
 0x634   :  { %v1489_v5 = vpack.c.bf16 %v1477_v21, %v1476_v43 }
 0x636   :  { %1587 = vmatmul.bf16.gmra.mxu1 %v1489_v5 }
 0x639   :  { %v1450_v48 = vpop.f32.mrf.mxu0 }
 0x63a   :  { %v1478_v27 = vadd.f32 %v1450_v48, %v5019_v8 }
 0x641   :  { %v1452_v12 = vpop.f32.mrf.mxu0 }
 0x642   :  { %v1479_v58 = vadd.f32 %v1452_v12, %v5020_v18 }
 0x644   :  { %v1490_v37 = vpack.c.bf16 %v1479_v58, %v1478_v27 }
 0x646   :  { %1592 = vmatmul.bf16.gmra.mxu1 %v1490_v37 }
 0x649   :  { %v1455_v42 = vpop.f32.mrf.mxu0 }
 0x64a   :  { %v1480_v44 = vadd.f32 %v1455_v42, %v5021_v10 }
 0x651   :  { %v1457_v24 = vpop.f32.mrf.mxu0 }
 0x652   :  { %v1481_v41 = vadd.f32 %v1457_v24, %v5022_v19 }
 0x654   :  { %v1491_v23 = vpack.c.bf16 %v1481_v41, %v1480_v44 }
 0x656   :  { %1597 = vmatmul.bf16.gmra.mxu1 %v1491_v23 }
 0x659   :  { %v1460_v3 = vpop.f32.mrf.mxu0 }
 0x65a   :  { %v1482_v62 = vadd.f32 %v1460_v3, %v5023_v7 }
 0x661   :  { %v1462_v52 = vpop.f32.mrf.mxu0 }
 0x662   :  { %v1483_v55 = vadd.f32 %v1462_v52, %v5024_v17 }
 0x664   :  { %v1492_v9 = vpack.c.bf16 %v1483_v55, %v1482_v62 }
 0x666   :  { %1602 = vmatmul.bf16.gmra.mxu1 %v1492_v9 }
 0x669   :  { %v1465_v57 = vpop.f32.mrf.mxu0 }
 0x66a   :  { %v1484_v1 = vadd.f32 %v1465_v57, %v5026_v25 }
 0x671   :  { %v1467_v28 = vpop.f32.mrf.mxu0 }
 0x672   :  { %v1485_v20 = vadd.f32 %v1467_v28, %v5028_v31 }
 0x674   :  { %v1493_v38 = vpack.c.bf16 %v1485_v20, %v1484_v1 }
 0x676   :  { %1607 = vmatmul.bf16.gmra.mxu1 %v1493_v38 }
 0x683   :  { %v1573_v35 = vpop.f32.mrf.mxu1 }
 0x684   :  { %v1574_v2 = vadd.f32 %v3414_v0, %v1573_v35 }
 0x686   :  { %v1613_v40 = vmax.f32 %v1574_v2, 0.0 }
 0x68b   :  { %v1575_v15 = vpop.f32.mrf.mxu1 }
 0x68c   :  { %v1576_v32 = vadd.f32 %v3414_v0, %v1575_v15 }
 0x68e   :  { %v1614_v54 = vmax.f32 %v1576_v32, 0.0 }
 0x690   :  { %v1629_v14 = vpack.c.bf16 %v1614_v54, %v1613_v40 }
 0x692   :  { %1715 = vmatmul.bf16.vlgmr.msra.gmra.mxu2 %v1629_v14 }
 0x693   :  { %v1578_v29 = vpop.f32.mrf.mxu1 }
 0x694   :  { %v1579_v53 = vadd.f32 %v3414_v0, %v1578_v29 }
 0x696   :  { %v1615_v36 = vmax.f32 %v1579_v53, 0.0 }
 0x69b   :  { %v1580_v16 = vpop.f32.mrf.mxu1 }
 0x69c   :  { %v1581_v22 = vadd.f32 %v3414_v0, %v1580_v16 }
 0x69e   :  { %v1616_v43 = vmax.f32 %v1581_v22, 0.0 }
 0x6a0   :  { %v1630_v45 = vpack.c.bf16 %v1616_v43, %v1615_v36  ;;  %v5030_v36 = vld [vmem:[#allocation29_spill] sm:$0xff] }
 0x6a2   :  { %1720 = vmatmul.bf16.gmra.mxu2 %v1630_v45 }
 0x6a3   :  { %v1583_v21 = vpop.f32.mrf.mxu1 }
 0x6a4   :  { %v1584_v5 = vadd.f32 %v3414_v0, %v1583_v21 }
 0x6a6   :  { %v1617_v8 = vmax.f32 %v1584_v5, 0.0 }
 0x6ab   :  { %v1585_v48 = vpop.f32.mrf.mxu1 }
 0x6ac   :  { %v1586_v12 = vadd.f32 %v3414_v0, %v1585_v48  ;;  %v5035_v48 = vld [vmem:[#allocation39_spill] sm:$0xff] }
 0x6ad   :  { %vm5036_vm8 = vcmp.eq.s32.totalorder %v5035_v48, %v5030_v36 }
 0x6ae   :  { %v1618_v27 = vmax.f32 %v1586_v12, 0.0  ;;  %vm3375_vm5 = vmpackc.low %vm5036_vm8, %vm230_vm10 }
 0x6af   :  { %3376 = vmatpush.lsf.msk.bf16.msk.msrb.mxu0 %vm3375_vm5, %v5000_v33 }
 0x6b0   :  { %v1631_v18 = vpack.c.bf16 %v1618_v27, %v1617_v8  ;;  %v5037_v8 = vld [vmem:[#allocation36_spill] sm:$0xff]  ;;  %v5039_v27 = vld [vmem:[#allocation37_spill] sm:$0xff] }
 0x6b1   :  { %vm5038_vm14 = vcmp.eq.s32.totalorder %v5037_v8, %v5030_v36  ;;  %vm5040_vm15 = vcmp.eq.s32.totalorder %v5039_v27, %v5030_v36 }
 0x6b2   :  { %1725 = vmatmul.bf16.gmra.mxu2 %v1631_v18  ;;  %vm3377_vm1 = vmpackc.low %vm5040_vm15, %vm5038_vm14  ;;  %v5041_v18 = vld [vmem:[#allocation34_spill] sm:$0xff] }
 0x6b3   :  { %v1588_v58 = vpop.f32.mrf.mxu1  ;;  %3378 = vmatpush.lsf.msk.bf16.msk.msrb.mxu0 %vm3377_vm1, %v5000_v33  ;;  %vm5042_vm12 = vcmp.eq.s32.totalorder %v5041_v18, %v5030_v36 }
 0x6b4   :  { %v1589_v37 = vadd.f32 %v3414_v0, %v1588_v58  ;;  %v5043_v58 = vld [vmem:[#allocation35_spill] sm:$0xff] }
 0x6b5   :  { %vm5044_vm13 = vcmp.eq.s32.totalorder %v5043_v58, %v5030_v36  ;;  %v3307_v58 = vld [vmem:[#allocation16 + $0x78] sm:$0xff] }
 0x6b6   :  { %v1619_v6 = vmax.f32 %v1589_v37, 0.0  ;;  %vm3379_vm2 = vmpackc.low %vm5044_vm13, %vm5042_vm12 }
 0x6b7   :  { %3380 = vmatpush.lsf.msk.bf16.msk.msrb.mxu0 %vm3379_vm2, %v5000_v33 }
 0x6bb   :  { %v1590_v42 = vpop.f32.mrf.mxu1 }
 0x6bc   :  { %v1591_v24 = vadd.f32 %v3414_v0, %v1590_v42  ;;  %v5045_v42 = vld [vmem:[#allocation32_spill] sm:$0xff] }
 0x6bd   :  { %vm5046_vm8 = vcmp.eq.s32.totalorder %v5045_v42, %v5030_v36  ;;  %v3305_v42 = vld [vmem:[#allocation16 + $0x68] sm:$0xff] }
 0x6be   :  { %v1620_v10 = vmax.f32 %v1591_v24, 0.0  ;;  %v5047_v24 = vld [vmem:[#allocation33_spill] sm:$0xff] }
 0x6bf   :  { %vm5048_vm10 = vcmp.eq.s32.totalorder %v5047_v24, %v5030_v36  ;;  %v3304_v24 = vld [vmem:[#allocation16 + $0x60] sm:$0xff] }
 0x6c0   :  { %v1632_v44 = vpack.c.bf16 %v1620_v10, %v1619_v6  ;;  %vm3381_vm5 = vmpackc.low %vm5048_vm10, %vm5046_vm8  ;;  %v5049_v6 = vld [vmem:[#allocation30_spill] sm:$0xff]  ;;  %v5051_v10 = vld [vmem:[#allocation31_spill] sm:$0xff] }
 0x6c1   :  { %3382 = vmatpush.lsf.msk.bf16.msk.msrb.mxu0 %vm3381_vm5, %v5000_v33  ;;  %vm5050_vm14 = vcmp.eq.s32.totalorder %v5049_v6, %v5030_v36  ;;  %vm5052_vm15 = vcmp.eq.s32.totalorder %v5051_v10, %v5030_v36  ;;  %v3303_v6 = vld [vmem:[#allocation16 + $0x58] sm:$0xff]  ;;  %v3302_v10 = vld [vmem:[#allocation16 + $0x50] sm:$0xff] }
 0x6c2   :  { %1730 = vmatmul.bf16.gmra.mxu2 %v1632_v44  ;;  %vm3383_vm1 = vmpackc.low %vm5052_vm15, %vm5050_vm14 }
 0x6c3   :  { %v1593_v19 = vpop.f32.mrf.mxu1 }
 0x6c4   :  { %v1594_v41 = vadd.f32 %v3414_v0, %v1593_v19  ;;  %v5053_v19 = vld [vmem:[#allocation27_spill] sm:$0xff] }
 0x6c5   :  { %3384 = vmatpush.lsf.msk.bf16.msk.msrb.mxu0 %vm3383_vm1, %v5000_v33  ;;  %vm5054_vm12 = vcmp.eq.s32.totalorder %v5053_v19, %v5030_v36  ;;  %v343_v19 = vpop.xlane.xlu1 %342 }
 0x6c6   :  { %v1621_v13 = vmax.f32 %v1594_v41, 0.0  ;;  %v5055_v41 = vld [vmem:[#allocation28_spill] sm:$0xff] }
 0x6c7   :  { %vm5056_vm13 = vcmp.eq.s32.totalorder %v5055_v41, %v5030_v36  ;;  %v3300_v41 = vld [vmem:[#allocation16 + $0x40] sm:$0xff] }
 0x6c8   :  { %vm3385_vm2 = vmpackc.low %vm5056_vm13, %vm5054_vm12 }
 0x6c9   :  { %3386 = vmatpush.lsf.msk.bf16.msk.msrb.mxu0 %vm3385_vm2, %v5000_v33 }
 0x6cb   :  { %v1595_v23 = vpop.f32.mrf.mxu1  ;;  %3351 = vllmr.16.mxu0 }
 0x6cc   :  { %v1596_v4 = vadd.f32 %v3414_v0, %v1595_v23 }
 0x6ce   :  { %v1622_v3 = vmax.f32 %v1596_v4, 0.0 }
 0x6d0   :  { %v1633_v59 = vpack.c.bf16 %v1622_v3, %v1621_v13  ;;  %v3415_v3 = vld [vmem:[%s4841_s10 + $0x1] ss:$0 sm:$0xff] }
 0x6d2   :  { %1735 = vmatmul.bf16.gmra.mxu2 %v1633_v59 }
 0x6d3   :  { %v1598_v52 = vpop.f32.mrf.mxu1 }
 0x6d4   :  { %v1599_v61 = vadd.f32 %v3414_v0, %v1598_v52 }
 0x6d6   :  { %v1623_v17 = vmax.f32 %v1599_v61, 0.0 }
 0x6db   :  { %v1600_v7 = vpop.f32.mrf.mxu1 }
 0x6dc   :  { %v1601_v62 = vadd.f32 %v3414_v0, %v1600_v7 }
 0x6de   :  { %v1624_v55 = vmax.f32 %v1601_v62, 0.0 }
 0x6e0   :  { %v1634_v9 = vpack.c.bf16 %v1624_v55, %v1623_v17 }
 0x6e2   :  { %1740 = vmatmul.bf16.gmra.mxu2 %v1634_v9 }
 0x6e3   :  { %v1603_v60 = vpop.f32.mrf.mxu1 }
 0x6e4   :  { %v1604_v57 = vadd.f32 %v3414_v0, %v1603_v60 }
 0x6e6   :  { %v1625_v28 = vmax.f32 %v1604_v57, 0.0 }
 0x6eb   :  { %v1605_v39 = vpop.f32.mrf.mxu1 }
 0x6ec   :  { %v1606_v47 = vadd.f32 %v3414_v0, %v1605_v39 }
 0x6ee   :  { %v1626_v11 = vmax.f32 %v1606_v47, 0.0 }
 0x6f0   :  { %v1635_v25 = vpack.c.bf16 %v1626_v11, %v1625_v28 }
 0x6f2   :  { %1745 = vmatmul.bf16.gmra.mxu2 %v1635_v25 }
 0x6f3   :  { %v1608_v1 = vpop.f32.mrf.mxu1 }
 0x6f4   :  { %v1609_v34 = vadd.f32 %v3414_v0, %v1608_v1 }
 0x6f6   :  { %v1627_v38 = vmax.f32 %v1609_v34, 0.0 }
 0x6fb   :  { %v1610_v31 = vpop.f32.mrf.mxu1 }
 0x6fc   :  { %v1611_v20 = vadd.f32 %v3414_v0, %v1610_v31 }
 0x6fe   :  { %v1628_v35 = vmax.f32 %v1611_v20, 0.0 }
 0x700   :  { %v1636_v2 = vpack.c.bf16 %v1628_v35, %v1627_v38 }
 0x702   :  { %1750 = vmatmul.bf16.gmra.mxu2 %v1636_v2 }
 0x715   :  { %v4530_v15 = vpop.f32.mrf.mxu2 }
 0x71d   :  { %v4532_v32 = vpop.f32.mrf.mxu2 }
 0x71e   :  { %v4660_v5 = vadd.f32 %v3415_v3, %v4532_v32 }
 0x720   :  { %v1757_v8 = vmax.f32 %v4660_v5, 0.0 }
 0x725   :  { %v4534_v40 = vpop.f32.mrf.mxu2 }
 0x726   :  { %v4656_v21 = vadd.f32 %v3415_v3, %v4534_v40 }
 0x728   :  { %v1758_v40 = vmax.f32 %v4656_v21, 0.0 }
 0x72d   :  { %v4536_v54 = vpop.f32.mrf.mxu2 }
 0x735   :  { %v1726_v14 = vpop.f32.mrf.mxu2 }
 0x736   :  { %v4644_v0 = vadd.f32 %v3415_v3, %v1726_v14 }
 0x738   :  { %v4927_v14 = vmax.f32 %v4644_v0, 0.0 }
 0x73d   :  { %v1728_v29 = vpop.f32.mrf.mxu2 }
 0x73e   :  { %v4637_v22 = vadd.f32 %v3415_v3, %v1728_v29 }
 0x740   :  { %v4926_v45 = vmax.f32 %v4637_v22, 0.0  ;;  %v5082_v5 = vmax.f32 %v4637_v22, 0.0 }
 0x742   :  { %v1774_v48 = vpack.c.bf16 %v4926_v45, %v4927_v14 }
 0x745   :  { %v1731_v53 = vpop.f32.mrf.mxu2 }
 0x746   :  { %v4634_v35 = vadd.f32 %v3415_v3, %v1731_v53  ;;  %v4648_v53 = vadd.f32 %v3415_v3, %v4536_v54 }
 0x748   :  { %v4928_v54 = vmax.f32 %v4648_v53, 0.0  ;;  %v5083_v21 = vmax.f32 %v4634_v35, 0.0 }
 0x74a   :  { %v1773_v32 = vpack.c.bf16 %v4928_v54, %v1758_v40 }
 0x74d   :  { %v1733_v16 = vpop.f32.mrf.mxu2 }
 0x74e   :  { %v4627_v31 = vadd.f32 %v3415_v3, %v1733_v16 }
 0x750   :  { %v4924_v36 = vmax.f32 %v4627_v31, 0.0 }
 0x755   :  { %v1736_v43 = vpop.f32.mrf.mxu2 }
 0x756   :  { %v4624_v1 = vadd.f32 %v3415_v3, %v1736_v43  ;;  %v4925_v43 = vmax.f32 %v4634_v35, 0.0 }
 0x758   :  { %v4923_v2 = vmax.f32 %v4624_v1, 0.0  ;;  %v1775_v29 = vpack.c.bf16 %v4924_v36, %v4925_v43 }
 0x75d   :  { %v1738_v12 = vpop.f32.mrf.mxu2 }
 0x75e   :  { %v4617_v28 = vadd.f32 %v3415_v3, %v1738_v12  ;;  %v4668_v12 = vadd.f32 %v3415_v3, %v4530_v15 }
 0x760   :  { %v4922_v20 = vmax.f32 %v4617_v28, 0.0  ;;  %v1756_v27 = vmax.f32 %v4668_v12, 0.0  ;;  %v5081_v12 = vmax.f32 %v4644_v0, 0.0  ;;  %v5085_v0 = vmax.f32 %v4624_v1, 0.0 }
 0x761   :  { %v5086_v22 = vmax.f32 %v4617_v28, 0.0  ;;  %v3320_v28 = vld [vmem:[#allocation14 + $0xa0] sm:$0xff] }
 0x762   :  { %v1776_v16 = vpack.c.bf16 %v4922_v20, %v4923_v2  ;;  %v1772_v15 = vpack.c.bf16 %v1757_v8, %v1756_v27 }
 0x765   :  { %v1741_v37 = vpop.f32.mrf.mxu2 }
 0x766   :  { %v4614_v39 = vadd.f32 %v3415_v3, %v1741_v37  ;;  %v3306_v37 = vld [vmem:[#allocation16 + $0x70] sm:$0xff] }
 0x768   :  { %v4921_v34 = vmax.f32 %v4614_v39, 0.0  ;;  %v5087_v35 = vmax.f32 %v4614_v39, 0.0 }
 0x76d   :  { %v1743_v44 = vpop.f32.mrf.mxu2 }
 0x76e   :  { %v4607_v9 = vadd.f32 %v3415_v3, %v1743_v44  ;;  %v3301_v44 = vld [vmem:[#allocation16 + $0x48] sm:$0xff] }
 0x770   :  { %v4920_v11 = vmax.f32 %v4607_v9, 0.0 }
 0x772   :  { %v1777_v38 = vpack.c.bf16 %v4920_v11, %v4921_v34  ;;  %v5075_v11 = vld [vmem:[#allocation63_spill] sm:$0xff] }
 0x775   :  { %v1746_v23 = vpop.f32.mrf.mxu2 }
 0x776   :  { %v4603_v62 = vadd.f32 %v3415_v3, %v1746_v23  ;;  %v3283_v23 = vld [vmem:[#allocation16 + $0x38] sm:$0xff] }
 0x778   :  { %v4919_v47 = vmax.f32 %v4603_v62, 0.0 }
 0x77d   :  { %v1748_v4 = vpop.f32.mrf.mxu2 }
 0x77e   :  { %v4599_v61 = vadd.f32 %v3415_v3, %v1748_v4  ;;  %v3282_v4 = vld [vmem:[#allocation16 + $0x30] sm:$0xff] }
 0x780   :  { %v4918_v60 = vmax.f32 %v4599_v61, 0.0  ;;  %v5090_v39 = vmax.f32 %v4599_v61, 0.0 }
 0x782   :  { %v1778_v25 = vpack.c.bf16 %v4918_v60, %v4919_v47 }
 0x785   :  { %v1751_v13 = vpop.f32.mrf.mxu2 }
 0x786   :  { %v4597_v59 = vadd.f32 %v3415_v3, %v1751_v13  ;;  %v3281_v13 = vld [vmem:[#allocation16 + $0x28] sm:$0xff] }
 0x788   :  { %v4917_v17 = vmax.f32 %v4597_v59, 0.0 }
 0x78d   :  { %v1753_v52 = vpop.f32.mrf.mxu2 }
 0x78e   :  { %v4601_v7 = vadd.f32 %v3415_v3, %v1753_v52  ;;  %v345_v3 = vpop.xlane.xlu1 %344  ;;  %v346_v52 = vmax.f32 %v343_v19, 1.0 }
 0x790   :  { %v4916_v55 = vmax.f32 %v4601_v7, 0.0  ;;  %3420 = vrcp.f32 %v346_v52  ;;  %vm353_vm8 = vweird.f32 %v346_v52 }
 0x792   :  { %v1779_v57 = vpack.c.bf16 %v4916_v55, %v4917_v17 }
 0x794   :  { %1780 = vmatpush.bf16.msrb.mxu3 %v1779_v57  ;;  %1959 = vmatpush.bf16.msra.mxu0 %v1779_v57  ;;  %v347_v57 = vmax.f32 %v345_v3, 1.0 }
 0x796   :  { %3422 = vrcp.f32 %v347_v57  ;;  %vm368_vm5 = vweird.f32 %v347_v57 }
 0x798   :  { %1781 = vmatpush.bf16.msrb.mxu3 %v1778_v25  ;;  %1960 = vmatpush.bf16.msra.mxu0 %v1778_v25  ;;  %v3280_v25 = vld [vmem:[#allocation16 + $0x20] sm:$0xff] }
 0x79c   :  { %1782 = vmatpush.bf16.msrb.mxu3 %v1777_v38  ;;  %1961 = vmatpush.bf16.msra.mxu0 %v1777_v38  ;;  %v3279_v38 = vld [vmem:[#allocation16 + $0x18] sm:$0xff] }
 0x7a0   :  { %1783 = vmatpush.bf16.msrb.mxu3 %v1776_v16  ;;  %1962 = vmatpush.bf16.msra.mxu0 %v1776_v16  ;;  %v3278_v16 = vld [vmem:[#allocation16 + $0x10] sm:$0xff] }
 0x7a4   :  { %1784 = vmatpush.bf16.msrb.mxu3 %v1775_v29  ;;  %1963 = vmatpush.bf16.msra.mxu0 %v1775_v29  ;;  %v3421_v29 = vpop.eup %3420 }
 0x7a5   :  { %vm354_vm10 = vweird.f32 %v3421_v29 }
 0x7a6   :  { %vm4691_vm15 = vmor %vm353_vm8, %vm354_vm10 }
 0x7a8   :  { %1785 = vmatpush.bf16.msrb.mxu3 %v1774_v48  ;;  %1964 = vmatpush.bf16.msra.mxu0 %v1774_v48  ;;  %v3423_v48 = vpop.eup %3422 }
 0x7a9   :  { %vm369_vm14 = vweird.f32 %v3423_v48 }
 0x7aa   :  { %vm370_vm1 = vmor %vm368_vm5, %vm369_vm14 }
 0x7ac   :  { %1786 = vmatpush.bf16.msrb.mxu3 %v1773_v32  ;;  %1965 = vmatpush.bf16.msra.mxu0 %v1773_v32  ;;  %v349_v32 = vmul.f32 %v3421_v29, %v346_v52 }
 0x7b0   :  { %1787 = vmatpush.bf16.msrb.mxu3 %v1772_v15  ;;  %1966 = vmatpush.bf16.msra.mxu0 %v1772_v15  ;;  %v3277_v15 = vld [vmem:[#allocation16 + $0x8] sm:$0xff] }
 0x7b3   :  { %3004 = vmatmul.msk.bf16.vlgmr.msrb.gmra.mxu3 %vm4406_vm11, %v5000_v33  ;;  %3352 = vmatmul.lmr.bf16.vlgmr.msra.gmra.16.mxu0 }
 0x7b4   :  { %1862 = vmatpush.bf16.msra.mxu3 %v3307_v58  ;;  %v4687_v58 = vld [vmem:[%s4837_s6 + $0x2] ss:$0 sm:$0xff] }
 0x7b5   :  { %v1954_v34 = vadd.f32 %v4687_v58, %v5075_v11 }
 0x7b8   :  { %1863 = vmatpush.bf16.msra.mxu3 %v3306_v37  ;;  %v364_v37 = vmul.f32 %v3423_v48, %v347_v57 }
 0x7bb   :  { %3353 = vmatmul.lmr.bf16.gmra.16.mxu0 }
 0x7bc   :  { %1864 = vmatpush.bf16.msra.mxu3 %v3305_v42  ;;  %v350_v42 = vsub.f32 1.0, %v349_v32 }
 0x7c0   :  { %1865 = vmatpush.bf16.msra.mxu3 %v3304_v24  ;;  %v3276_v24 = vld [vmem:[#allocation16] sm:$0xff] }
 0x7c3   :  { %3354 = vmatmul.lmr.bf16.gmra.16.mxu0 }
 0x7c4   :  { %1866 = vmatpush.bf16.msra.mxu3 %v3303_v6  ;;  %v5058_v6 = vld [vmem:[#allocation49_spill] sm:$0xff] }
 0x7c8   :  { %1867 = vmatpush.bf16.msra.mxu3 %v3302_v10  ;;  %v1943_v10 = vadd.f32 %v4687_v58, %v5058_v6 }
 0x7cb   :  { %3355 = vmatmul.lmr.bf16.gmra.16.mxu0 }
 0x7cc   :  { %1868 = vmatpush.bf16.msra.mxu3 %v3301_v44  ;;  %v365_v44 = vsub.f32 1.0, %v364_v37 }
 0x7d0   :  { %1869 = vmatpush.bf16.msra.mxu3 %v3300_v41  ;;  %v351_v41 = vmul.f32 %v3421_v29, %v350_v42  ;;  %v372_v42 = vand.u32 2147483647, %v347_v57 }
 0x7d2   :  { %v352_v3 = vadd.f32 %v3421_v29, %v351_v41  ;;  %vm373_vm13 = vcmp.eq.f32.partialorder %v372_v42, 8.507059e+37 }
 0x7d3   :  { %3356 = vmatmul.lmr.bf16.gmra.16.mxu0 }
 0x7d4   :  { %1924 = vmatpush.bf16.msrb.mxu3 %v3283_v23 }
 0x7d8   :  { %1925 = vmatpush.bf16.msrb.mxu3 %v3282_v4  ;;  %v366_v4 = vmul.f32 %v3423_v48, %v365_v44  ;;  %v356_v44 = vsel %vm4691_vm15, %v3421_v29, %v352_v3 }
 0x7db   :  { %3357 = vmatmul.lmr.bf16.gmra.16.mxu0 }
 0x7dc   :  { %1926 = vmatpush.bf16.msrb.mxu3 %v3281_v13  ;;  %v359_v13 = vand.u32 2147483648, %v346_v52 }
 0x7de   :  { %v360_v6 = vor.u32 1.1754944e-38, %v359_v13  ;;  %v5062_v13 = vld [vmem:[#allocation54_spill] sm:$0xff] }
 0x7e0   :  { %1927 = vmatpush.bf16.msrb.mxu3 %v3280_v25  ;;  %v357_v25 = vand.u32 2147483647, %v346_v52 }
 0x7e2   :  { %vm358_vm12 = vcmp.eq.f32.partialorder %v357_v25, 8.507059e+37 }
 0x7e3   :  { %3358 = vmatmul.lmr.bf16.gmra.16.mxu0  ;;  %v4699_v60 = vsel %vm358_vm12, %v360_v6, %v356_v44  ;;  %v5065_v6 = vld [vmem:[#allocation45_spill] sm:$0xff] }
 0x7e4   :  { %1928 = vmatpush.bf16.msrb.mxu3 %v3279_v38  ;;  %v1945_v38 = vadd.f32 %v4687_v58, %v5062_v13  ;;  %v5067_v13 = vld [vmem:[#allocation57_spill] sm:$0xff] }
 0x7e8   :  { %1929 = vmatpush.bf16.msrb.mxu3 %v3278_v16  ;;  %v374_v16 = vand.u32 2147483648, %v347_v57 }
 0x7eb   :  { %3359 = vmatmul.lmr.bf16.gmra.16.mxu0 }
 0x7ec   :  { %1930 = vmatpush.bf16.msrb.mxu3 %v3277_v15  ;;  %v5061_v15 = vld [vmem:[#allocation53_spill] sm:$0xff] }
 0x7ed   :  { %v1944_v37 = vadd.f32 %v4687_v58, %v5061_v15 }
 0x7f0   :  { %1931 = vmatpush.bf16.msrb.mxu3 %v3276_v24  ;;  %v367_v24 = vadd.f32 %v3423_v48, %v366_v4 }
 0x7f2   :  { %v371_v41 = vsel %vm370_vm1, %v3423_v48, %v367_v24 }
 0x7f3   :  { %3360 = vmatmul.lmr.bf16.gmra.16.mxu0 }
 0x7fb   :  { %3361 = vmatmul.lmr.bf16.gmra.16.mxu0 }
 0x803   :  { %3362 = vmatmul.lmr.bf16.gmra.16.mxu0 }
 0x80b   :  { %3363 = vmatmul.lmr.bf16.gmra.16.mxu0 }
 0x813   :  { %3364 = vmatmul.lmr.bf16.gmra.16.mxu0 }
 0x81b   :  { %3365 = vmatmul.lmr.bf16.gmra.16.mxu0 }
 0x823   :  { %3366 = vmatmul.lmr.bf16.gmra.16.mxu0 }
 0x82b   :  { %3367 = vmatmul.lmr.bf16.gmra.16.mxu0 }
 0x830   :  { %v1968_v19 = vpop.f32.mrf.mxu0 }
 0x831   :  { %v1969_v23 = vadd.f32 %v1968_v19, %v1943_v10  ;;  %v375_v19 = vor.u32 1.1754944e-38, %v374_v16 }
 0x833   :  { %v2008_v55 = vmax.f32 %v1969_v23, 0.0  ;;  %v4704_v57 = vsel %vm373_vm13, %v375_v19, %v371_v41  ;;  %v5063_v23 = vld [vmem:[#allocation55_spill] sm:$0xff] }
 0x834   :  { %v1946_v16 = vadd.f32 %v4687_v58, %v5063_v23 }
 0x836   :  { %v1789_v32 = vpop.f32.mrf.mxu3 }
 0x837   :  { %v1794_v47 = vmul.f32 %v1789_v32, %v4699_v60 }
 0x838   :  { %v1970_v10 = vpop.f32.mrf.mxu0 }
 0x839   :  { %v1971_v52 = vadd.f32 %v1970_v10, %v1944_v37  ;;  %v1309_v10 = vmul.f32 %v5065_v6, %v4704_v57 }
 0x83b   :  { %v2009_v17 = vmax.f32 %v1971_v52, 0.0  ;;  %v5066_v52 = vld [vmem:[#allocation56_spill] sm:$0xff] }
 0x83d   :  { %v4702_v15 = vpack.c.bf16 %v2009_v17, %v2008_v55  ;;  %v5064_v55 = vld [vmem:[#allocation44_spill] sm:$0xff] }
 0x83e   :  { %v1791_v4 = vpop.f32.mrf.mxu3  ;;  %v1308_v42 = vmul.f32 %v5064_v55, %v4699_v60 }
 0x83f   :  { %v1795_v29 = vmul.f32 %v1791_v4, %v4704_v57 }
 0x840   :  { %v1973_v3 = vpop.f32.mrf.mxu0  ;;  %v1310_v41 = vpack.c.bf16 %v1309_v10, %v1308_v42 }
 0x841   :  { %v1796_v25 = vpack.c.bf16 %v1795_v29, %v1794_v47  ;;  %v1974_v48 = vadd.f32 %v1973_v3, %v1945_v38  ;;  %v1947_v47 = vadd.f32 %v4687_v58, %v5066_v52  ;;  %v1948_v38 = vadd.f32 %v4687_v58, %v5067_v13 }
 0x843   :  { %1870 = vmatmul.bf16.vlgmr.msra.gmra.mxu3 %v1796_v25  ;;  %v2010_v32 = vmax.f32 %v1974_v48, 0.0 }
 0x848   :  { %v1975_v37 = vpop.f32.mrf.mxu0 }
 0x849   :  { %v1976_v24 = vadd.f32 %v1975_v37, %v1946_v16  ;;  %v5068_v16 = vld [vmem:[#allocation58_spill] sm:$0xff] }
 0x84a   :  { %v1949_v37 = vadd.f32 %v4687_v58, %v5068_v16 }
 0x84b   :  { %v2011_v17 = vmax.f32 %v1976_v24, 0.0 }
 0x84d   :  { %v4715_v44 = vpack.c.bf16 %v2011_v17, %v2010_v32  ;;  %v5069_v17 = vld [vmem:[#allocation59_spill] sm:$0xff] }
 0x84e   :  { %v1950_v55 = vadd.f32 %v4687_v58, %v5069_v17  ;;  %v5072_v17 = vld [vmem:[#allocation65_spill] sm:$0xff] }
 0x850   :  { %v1978_v19 = vpop.f32.mrf.mxu0 }
 0x851   :  { %v1979_v4 = vadd.f32 %v1978_v19, %v1947_v47  ;;  %v5070_v19 = vld [vmem:[#allocation60_spill] sm:$0xff] }
 0x853   :  { %1932 = vmatmul.bf16.vlgmr.msrb.gmra.mxu3 %v1310_v41  ;;  %v2012_v25 = vmax.f32 %v1979_v4, 0.0  ;;  %v1951_v41 = vadd.f32 %v4687_v58, %v5070_v19 }
 0x858   :  { %v1980_v29 = vpop.f32.mrf.mxu0 }
 0x859   :  { %v1981_v3 = vadd.f32 %v1980_v29, %v1948_v38 }
 0x85b   :  { %v2013_v48 = vmax.f32 %v1981_v3, 0.0 }
 0x85d   :  { %v2026_v23 = vpack.c.bf16 %v2013_v48, %v2012_v25 }
 0x860   :  { %v1983_v24 = vpop.f32.mrf.mxu0 }
 0x861   :  { %v1984_v32 = vadd.f32 %v1983_v24, %v1949_v37  ;;  %v5071_v37 = vld [vmem:[#allocation66_spill] sm:$0xff] }
 0x862   :  { %v1957_v24 = vadd.f32 %v4687_v58, %v5071_v37  ;;  %v5076_v37 = vld [vmem:[#allocation62_spill] sm:$0xff] }
 0x863   :  { %v2014_v10 = vmax.f32 %v1984_v32, 0.0  ;;  %v5073_v32 = vld [vmem:[#allocation67_spill] sm:$0xff]  ;;  %v1953_v43 = vadd.f32 %v4687_v58, %v5076_v37 }
 0x868   :  { %v1985_v6 = vpop.f32.mrf.mxu0 }
 0x869   :  { %v1986_v42 = vadd.f32 %v1985_v6, %v1950_v55  ;;  %v1956_v55 = vadd.f32 %v4687_v58, %v5072_v17  ;;  %v1958_v6 = vadd.f32 %v4687_v58, %v5073_v32  ;;  %v5077_v32 = vld [vmem:[#allocation61_spill] sm:$0xff] }
 0x86b   :  { %v2015_v52 = vmax.f32 %v1986_v42, 0.0 }
 0x86d   :  { %v2027_v47 = vpack.c.bf16 %v2015_v52, %v2014_v10  ;;  %v5074_v52 = vld [vmem:[#allocation64_spill] sm:$0xff] }
 0x86e   :  { %v1955_v19 = vadd.f32 %v4687_v58, %v5074_v52 }
 0x870   :  { %v1988_v13 = vpop.f32.mrf.mxu0 }
 0x871   :  { %v1989_v4 = vadd.f32 %v1988_v13, %v1951_v41 }
 0x878   :  { %v1990_v38 = vpop.f32.mrf.mxu0 }
 0x880   :  { %v1993_v29 = vpop.f32.mrf.mxu0 }
 0x888   :  { %v1995_v3 = vpop.f32.mrf.mxu0 }
 0x889   :  { %v1996_v17 = vadd.f32 %v1995_v3, %v1954_v34 }
 0x890   :  { %v1998_v25 = vpop.f32.mrf.mxu0 }
 0x891   :  { %v1999_v20 = vadd.f32 %v1998_v25, %v1955_v19 }
 0x893   :  { %v2020_v54 = vmax.f32 %v1999_v20, 0.0 }
 0x898   :  { %v2000_v48 = vpop.f32.mrf.mxu0 }
 0x899   :  { %v2001_v41 = vadd.f32 %v2000_v48, %v1956_v55  ;;  %v2019_v55 = vmax.f32 %v1996_v17, 0.0 }
 0x89b   :  { %v2021_v45 = vmax.f32 %v2001_v41, 0.0 }
 0x8a0   :  { %v2003_v16 = vpop.f32.mrf.mxu0 }
 0x8a1   :  { %v2004_v42 = vadd.f32 %v2003_v16, %v1957_v24  ;;  %v1952_v16 = vadd.f32 %v4687_v58, %v5077_v32  ;;  %v1994_v24 = vadd.f32 %v1993_v29, %v1953_v43  ;;  %v3314_v43 = vld [vmem:[#allocation13 + $0xb0] sm:$0xff] }
 0x8a2   :  { %2176 = vmatpush.bf16.msrb.mxu2 %v3314_v43  ;;  %v5089_v43 = vmax.f32 %v4603_v62, 0.0  ;;  %v5092_v62 = vmax.f32 %v4601_v7, 0.0 }
 0x8a3   :  { %v2022_v2 = vmax.f32 %v2004_v42, 0.0  ;;  %v1991_v48 = vadd.f32 %v1990_v38, %v1952_v16  ;;  %v2016_v42 = vmax.f32 %v1989_v4, 0.0  ;;  %v5080_v4 = vmax.f32 %v4648_v53, 0.0 }
 0x8a4   :  { %v5084_v53 = vmax.f32 %v4627_v31, 0.0  ;;  %v5088_v31 = vmax.f32 %v4607_v9, 0.0  ;;  %v3319_v9 = vld [vmem:[#allocation14 + $0x98] sm:$0xff] }
 0x8a5   :  { %v2017_v11 = vmax.f32 %v1991_v48, 0.0 }
 0x8a6   :  { %2177 = vmatpush.bf16.msrb.mxu2 %v3313_v50 }
 0x8a7   :  { %v2028_v52 = vpack.c.bf16 %v2017_v11, %v2016_v42 }
 0x8a8   :  { %v2005_v10 = vpop.f32.mrf.mxu0 }
 0x8a9   :  { %v2006_v13 = vadd.f32 %v2005_v10, %v1958_v6  ;;  %v2030_v6 = vpack.c.bf16 %v2021_v45, %v2020_v54  ;;  %v2018_v10 = vmax.f32 %v1994_v24, 0.0  ;;  %v3311_v45 = vld [vmem:[#allocation13 + $0x98] sm:$0xff] }
 0x8aa   :  { %2178 = vmatpush.bf16.msrb.mxu2 %v3312_v56 }
 0x8ab   :  { %v2023_v36 = vmax.f32 %v2006_v13, 0.0  ;;  %v2029_v25 = vpack.c.bf16 %v2019_v55, %v2018_v10 }
 0x8ad   :  { %v2031_v14 = vpack.c.bf16 %v2023_v36, %v2022_v2 }
 0x8ae   :  { %2179 = vmatpush.bf16.msrb.mxu2 %v3311_v45 }
 0x8af   :  { %2032 = vmatpush.bf16.msrb.mxu1 %v2031_v14  ;;  %v3309_v14 = vld [vmem:[#allocation13 + $0x88] sm:$0xff] }
 0x8b2   :  { %2180 = vmatpush.bf16.msrb.mxu2 %v3310_v63 }
 0x8b3   :  { %2033 = vmatpush.bf16.msrb.mxu1 %v2030_v6 }
 0x8b6   :  { %2181 = vmatpush.bf16.msrb.mxu2 %v3309_v14  ;;  %v3318_v14 = vld [vmem:[#allocation14 + $0x90] sm:$0xff] }
 0x8b7   :  { %2034 = vmatpush.bf16.msrb.mxu1 %v2029_v25 }
 0x8ba   :  { %2182 = vmatpush.bf16.msrb.mxu2 %v3308_v30  ;;  %v3317_v30 = vld [vmem:[#allocation14 + $0x88] sm:$0xff] }
 0x8bb   :  { %2035 = vmatpush.bf16.msrb.mxu1 %v2028_v52  ;;  %v3323_v52 = vld [vmem:[#allocation14 + $0xb8] sm:$0xff] }
 0x8bc   :  { %2318 = vmatpush.bf16.msra.mxu3 %v3323_v52 }
 0x8bf   :  { %2036 = vmatpush.bf16.msrb.mxu1 %v2027_v47 }
 0x8c3   :  { %2037 = vmatpush.bf16.msrb.mxu1 %v2026_v23 }
 0x8c6   :  { %v1871_v34 = vpop.f32.mrf.mxu3 }
 0x8c7   :  { %2038 = vmatpush.bf16.msrb.mxu1 %v4715_v44 }
 0x8cb   :  { %2039 = vmatpush.bf16.msrb.mxu1 %v4702_v15 }
 0x8ce   :  { %v4743_v20 = vpop.f32.mrf.mxu3  ;;  %3071 = vmatmul.msk.bf16.vlgmr.msrb.gmra.mxu1 %vm4125_vm3, %v5000_v33  ;;  %vm5078_vm3 = vnez %v4972_v49 }
 0x8d6   :  { %v1933_v2 = vpop.f32.mrf.mxu3 }
 0x8d7   :  { %v4748_v36 = vadd.f32 %v1933_v2, %v1871_v34  ;;  %v3322_v34 = vld [vmem:[#allocation14 + $0xb0] sm:$0xff]  ;;  %v3321_v2 = vld [vmem:[#allocation14 + $0xa8] sm:$0xff] }
 0x8d8   :  { %2319 = vmatpush.bf16.msra.mxu3 %v3322_v34 }
 0x8dc   :  { %2320 = vmatpush.bf16.msra.mxu3 %v3321_v2 }
 0x8de   :  { %3073 = vmatmul.msk.bf16.gmra.mxu1 %vm4137_vm4, %v5000_v33  ;;  %vm5079_vm4 = vnez %v4976_v26 }
 0x8e0   :  { %2321 = vmatpush.bf16.msra.mxu3 %v3320_v28 }
 0x8e4   :  { %2322 = vmatpush.bf16.msra.mxu3 %v3319_v9 }
 0x8e8   :  { %2323 = vmatpush.bf16.msra.mxu3 %v3318_v14 }
 0x8ec   :  { %2324 = vmatpush.bf16.msra.mxu3 %v3317_v30 }
 0x8ee   :  { %3075 = vmatmul.msk.bf16.gmra.mxu1 %vm4149_vm7, %v5000_v33 }
 0x8fe   :  { %3077 = vmatmul.msk.bf16.gmra.mxu1 %vm4161_vm6, %v5000_v33 }
 0x90e   :  { %3079 = vmatmul.msk.bf16.gmra.mxu1 %vm4173_vm9, %v5000_v33 }
 0x91e   :  { %3081 = vmatmul.msk.bf16.gmra.mxu1 %vm4185_vm0, %v5000_v33 }
 0x92e   :  { %3083 = vmatmul.msk.bf16.gmra.mxu1 %vm5078_vm3, %v5000_v33 }
 0x93e   :  { %3085 = vmatmul.msk.bf16.gmra.mxu1 %vm5079_vm4, %v5000_v33 }
 0x94b   :  { %v2041_v51 = vpop.f32.mrf.mxu1 }
 0x94c   :  { %v2081_v58 = vadd.f32 %v2041_v51, %v1756_v27 }
 0x953   :  { %v2043_v54 = vpop.f32.mrf.mxu1 }
 0x954   :  { %v2082_v15 = vadd.f32 %v2043_v54, %v1757_v8  ;;  %v5091_v54 = vmax.f32 %v4597_v59, 0.0 }
 0x956   :  { %v2097_v44 = vpack.c.bf16 %v2082_v15, %v2081_v58 }
 0x958   :  { %2183 = vmatmul.bf16.vlgmr.msrb.gmra.mxu2 %v2097_v44  ;;  %v3316_v44 = vld [vmem:[#allocation14 + $0x80] sm:$0xff] }
 0x959   :  { %2325 = vmatpush.bf16.msra.mxu3 %v3316_v44 }
 0x95b   :  { %v2046_v23 = vpop.f32.mrf.mxu1 }
 0x95c   :  { %v2083_v47 = vadd.f32 %v2046_v23, %v1758_v40 }
 0x963   :  { %v2048_v49 = vpop.f32.mrf.mxu1 }
 0x964   :  { %v2084_v38 = vadd.f32 %v2048_v49, %v5080_v4  ;;  %v3416_v49 = vld [vmem:[%s4839_s8 + $0x2] ss:$0 sm:$0xff] }
 0x966   :  { %v2098_v26 = vpack.c.bf16 %v2084_v38, %v2083_v47 }
 0x968   :  { %2188 = vmatmul.bf16.gmra.mxu2 %v2098_v26 }
 0x96b   :  { %v2051_v29 = vpop.f32.mrf.mxu1 }
 0x96c   :  { %v2085_v27 = vadd.f32 %v2051_v29, %v5081_v12 }
 0x973   :  { %v2053_v3 = vpop.f32.mrf.mxu1 }
 0x974   :  { %v2086_v8 = vadd.f32 %v2053_v3, %v5082_v5 }
 0x976   :  { %v2099_v19 = vpack.c.bf16 %v2086_v8, %v2085_v27 }
 0x978   :  { %2193 = vmatmul.bf16.gmra.mxu2 %v2099_v19 }
 0x97b   :  { %v2056_v41 = vpop.f32.mrf.mxu1 }
 0x97c   :  { %v2087_v40 = vadd.f32 %v2056_v41, %v5083_v21 }
 0x983   :  { %v2058_v13 = vpop.f32.mrf.mxu1 }
 0x984   :  { %v2088_v37 = vadd.f32 %v2058_v13, %v5084_v53 }
 0x986   :  { %v2100_v17 = vpack.c.bf16 %v2088_v37, %v2087_v40 }
 0x988   :  { %2198 = vmatmul.bf16.gmra.mxu2 %v2100_v17 }
 0x98b   :  { %v2061_v32 = vpop.f32.mrf.mxu1 }
 0x98c   :  { %v2089_v24 = vadd.f32 %v2061_v32, %v5085_v0 }
 0x993   :  { %v2063_v16 = vpop.f32.mrf.mxu1 }
 0x994   :  { %v2090_v48 = vadd.f32 %v2063_v16, %v5086_v22 }
 0x996   :  { %v2101_v55 = vpack.c.bf16 %v2090_v48, %v2089_v24 }
 0x998   :  { %2203 = vmatmul.bf16.gmra.mxu2 %v2101_v55 }
 0x99b   :  { %v2066_v6 = vpop.f32.mrf.mxu1 }
 0x99c   :  { %v2091_v11 = vadd.f32 %v2066_v6, %v5087_v35 }
 0x9a3   :  { %v2068_v10 = vpop.f32.mrf.mxu1 }
 0x9a4   :  { %v2092_v25 = vadd.f32 %v2068_v10, %v5088_v31 }
 0x9a6   :  { %v2102_v42 = vpack.c.bf16 %v2092_v25, %v2091_v11 }
 0x9a8   :  { %2208 = vmatmul.bf16.gmra.mxu2 %v2102_v42 }
 0x9ab   :  { %v2071_v1 = vpop.f32.mrf.mxu1 }
 0x9ac   :  { %v2093_v50 = vadd.f32 %v2071_v1, %v5089_v43 }
 0x9b3   :  { %v2073_v46 = vpop.f32.mrf.mxu1 }
 0x9b4   :  { %v2094_v56 = vadd.f32 %v2073_v46, %v5090_v39 }
 0x9b6   :  { %v2103_v45 = vpack.c.bf16 %v2094_v56, %v2093_v50 }
 0x9b8   :  { %2213 = vmatmul.bf16.gmra.mxu2 %v2103_v45 }
 0x9bb   :  { %v2076_v63 = vpop.f32.mrf.mxu1 }
 0x9bc   :  { %v2095_v58 = vadd.f32 %v2076_v63, %v5091_v54 }
 0x9c3   :  { %v2078_v51 = vpop.f32.mrf.mxu1 }
 0x9c4   :  { %v2096_v15 = vadd.f32 %v2078_v51, %v5092_v62 }
 0x9c6   :  { %v2104_v61 = vpack.c.bf16 %v2096_v15, %v2095_v58 }
 0x9c8   :  { %2218 = vmatmul.bf16.gmra.mxu2 %v2104_v61  ;;  %v4806_v61 = vpop.f32.mrf.mxu3 }
 0x9db   :  { %v2184_v23 = vpop.f32.mrf.mxu2 }
 0x9dc   :  { %v2185_v47 = vadd.f32 %v3416_v49, %v2184_v23 }
 0x9de   :  { %v2224_v26 = vmax.f32 %v2185_v47, 0.0  ;;  %v3417_v47 = vld [vmem:[%s4841_s10 + $0x2] ss:$0 sm:$0xff] }
 0x9e3   :  { %v2186_v4 = vpop.f32.mrf.mxu2 }
 0x9e4   :  { %v2187_v38 = vadd.f32 %v3416_v49, %v2186_v4 }
 0x9e6   :  { %v2225_v29 = vmax.f32 %v2187_v38, 0.0 }
 0x9e8   :  { %v2240_v3 = vpack.c.bf16 %v2225_v29, %v2224_v26 }
 0x9ea   :  { %2326 = vmatmul.bf16.vlgmr.msra.gmra.mxu3 %v2240_v3 }
 0x9eb   :  { %v2189_v59 = vpop.f32.mrf.mxu2 }
 0x9ec   :  { %v2190_v12 = vadd.f32 %v3416_v49, %v2189_v59 }
 0x9ee   :  { %v2226_v5 = vmax.f32 %v2190_v12, 0.0 }
 0x9f3   :  { %v2191_v7 = vpop.f32.mrf.mxu2 }
 0x9f4   :  { %v2192_v27 = vadd.f32 %v3416_v49, %v2191_v7 }
 0x9f6   :  { %v2227_v8 = vmax.f32 %v2192_v27, 0.0 }
 0x9f8   :  { %v2241_v19 = vpack.c.bf16 %v2227_v8, %v2226_v5 }
 0x9fa   :  { %2331 = vmatmul.bf16.gmra.mxu3 %v2241_v19 }
 0x9fb   :  { %v2194_v41 = vpop.f32.mrf.mxu2 }
 0x9fc   :  { %v2195_v13 = vadd.f32 %v3416_v49, %v2194_v41 }
 0x9fe   :  { %v2228_v53 = vmax.f32 %v2195_v13, 0.0 }
 0xa03   :  { %v2196_v21 = vpop.f32.mrf.mxu2 }
 0xa04   :  { %v2197_v40 = vadd.f32 %v3416_v49, %v2196_v21 }
 0xa06   :  { %v2229_v37 = vmax.f32 %v2197_v40, 0.0 }
 0xa08   :  { %v2242_v17 = vpack.c.bf16 %v2229_v37, %v2228_v53 }
 0xa0a   :  { %2336 = vmatmul.bf16.gmra.mxu3 %v2242_v17 }
 0xa0b   :  { %v2199_v32 = vpop.f32.mrf.mxu2 }
 0xa0c   :  { %v2200_v16 = vadd.f32 %v3416_v49, %v2199_v32 }
 0xa0e   :  { %v2230_v22 = vmax.f32 %v2200_v16, 0.0 }
 0xa13   :  { %v2201_v0 = vpop.f32.mrf.mxu2 }
 0xa14   :  { %v2202_v24 = vadd.f32 %v3416_v49, %v2201_v0 }
 0xa16   :  { %v2231_v48 = vmax.f32 %v2202_v24, 0.0 }
 0xa18   :  { %v2243_v55 = vpack.c.bf16 %v2231_v48, %v2230_v22 }
 0xa1a   :  { %2341 = vmatmul.bf16.gmra.mxu3 %v2243_v55 }
 0xa1b   :  { %v2204_v6 = vpop.f32.mrf.mxu2 }
 0xa1c   :  { %v2205_v10 = vadd.f32 %v3416_v49, %v2204_v6 }
 0xa1e   :  { %v2232_v31 = vmax.f32 %v2205_v10, 0.0 }
 0xa23   :  { %v2206_v35 = vpop.f32.mrf.mxu2 }
 0xa24   :  { %v2207_v11 = vadd.f32 %v3416_v49, %v2206_v35 }
 0xa26   :  { %v2233_v25 = vmax.f32 %v2207_v11, 0.0 }
 0xa28   :  { %v2244_v42 = vpack.c.bf16 %v2233_v25, %v2232_v31 }
 0xa2a   :  { %2346 = vmatmul.bf16.gmra.mxu3 %v2244_v42 }
 0xa2b   :  { %v2209_v52 = vpop.f32.mrf.mxu2 }
 0xa2c   :  { %v2210_v34 = vadd.f32 %v3416_v49, %v2209_v52 }
 0xa2e   :  { %v2234_v28 = vmax.f32 %v2210_v34, 0.0 }
 0xa33   :  { %v2211_v1 = vpop.f32.mrf.mxu2 }
 0xa34   :  { %v2212_v2 = vadd.f32 %v3416_v49, %v2211_v1 }
 0xa36   :  { %v2235_v46 = vmax.f32 %v2212_v2, 0.0 }
 0xa38   :  { %v2245_v43 = vpack.c.bf16 %v2235_v46, %v2234_v28 }
 0xa3a   :  { %2351 = vmatmul.bf16.gmra.mxu3 %v2245_v43 }
 0xa3b   :  { %v2214_v50 = vpop.f32.mrf.mxu2 }
 0xa3c   :  { %v2215_v39 = vadd.f32 %v3416_v49, %v2214_v50 }
 0xa3e   :  { %v2236_v9 = vmax.f32 %v2215_v39, 0.0 }
 0xa43   :  { %v2216_v56 = vpop.f32.mrf.mxu2 }
 0xa44   :  { %v2217_v45 = vadd.f32 %v3416_v49, %v2216_v56 }
 0xa46   :  { %v2237_v63 = vmax.f32 %v2217_v45, 0.0  ;;  %v3331_v45 = vld [vmem:[#allocation16 + $0xb8] sm:$0xff] }
 0xa47   :  { %2473 = vmatpush.bf16.msra.mxu1 %v3331_v45 }
 0xa48   :  { %v2246_v14 = vpack.c.bf16 %v2237_v63, %v2236_v9 }
 0xa4a   :  { %2356 = vmatmul.bf16.gmra.mxu3 %v2246_v14  ;;  %v3330_v14 = vld [vmem:[#allocation16 + $0xb0] sm:$0xff] }
 0xa4b   :  { %v2219_v30 = vpop.f32.mrf.mxu2  ;;  %2474 = vmatpush.bf16.msra.mxu1 %v3330_v14 }
 0xa4c   :  { %v2220_v51 = vadd.f32 %v3416_v49, %v2219_v30 }
 0xa4e   :  { %v2238_v62 = vmax.f32 %v2220_v51, 0.0 }
 0xa53   :  { %v2221_v54 = vpop.f32.mrf.mxu2 }
 0xa54   :  { %v2222_v58 = vadd.f32 %v3416_v49, %v2221_v54 }
 0xa56   :  { %v2239_v15 = vmax.f32 %v2222_v58, 0.0 }
 0xa58   :  { %v2247_v44 = vpack.c.bf16 %v2239_v15, %v2238_v62  ;;  %v3329_v15 = vld [vmem:[#allocation16 + $0xa8] sm:$0xff] }
 0xa59   :  { %2475 = vmatpush.bf16.msra.mxu1 %v3329_v15 }
 0xa5a   :  { %2361 = vmatmul.bf16.gmra.mxu3 %v2247_v44 }
 0xa6d   :  { %v2327_v23 = vpop.f32.mrf.mxu3 }
 0xa6e   :  { %v2328_v4 = vadd.f32 %v3417_v47, %v2327_v23 }
 0xa70   :  { %v2367_v29 = vmax.f32 %v2328_v4, 0.0 }
 0xa75   :  { %v2329_v38 = vpop.f32.mrf.mxu3 }
 0xa76   :  { %v2330_v26 = vadd.f32 %v3417_v47, %v2329_v38  ;;  %v3328_v38 = vld [vmem:[#allocation16 + $0xa0] sm:$0xff] }
 0xa77   :  { %2476 = vmatpush.bf16.msra.mxu1 %v3328_v38 }
 0xa78   :  { %v2368_v3 = vmax.f32 %v2330_v26, 0.0 }
 0xa7a   :  { %v4811_v59 = vpack.c.bf16 %v2368_v3, %v2367_v29  ;;  %v3327_v29 = vld [vmem:[#allocation16 + $0x98] sm:$0xff]  ;;  %v3325_v3 = vld [vmem:[#allocation16 + $0x88] sm:$0xff] }
 0xa7b   :  { %2477 = vmatpush.bf16.msra.mxu1 %v3327_v29 }
 0xa7d   :  { %v2332_v12 = vpop.f32.mrf.mxu3 }
 0xa7e   :  { %v2333_v49 = vadd.f32 %v3417_v47, %v2332_v12  ;;  %v3324_v12 = vld [vmem:[#allocation16 + $0x80] sm:$0xff] }
 0xa80   :  { %v2369_v5 = vmax.f32 %v2333_v49, 0.0  ;;  %v3339_v49 = vld [vmem:[#allocation17 + $0x38] sm:$0xff] }
 0xa81   :  { %2566 = vmatpush.bf16.msra.mxu2 %v3339_v49 }
 0xa85   :  { %v2334_v7 = vpop.f32.mrf.mxu3 }
 0xa86   :  { %v2335_v27 = vadd.f32 %v3417_v47, %v2334_v7  ;;  %v3338_v7 = vld [vmem:[#allocation17 + $0x30] sm:$0xff] }
 0xa87   :  { %2567 = vmatpush.bf16.msra.mxu2 %v3338_v7 }
 0xa88   :  { %v2370_v8 = vmax.f32 %v2335_v27, 0.0  ;;  %v3337_v27 = vld [vmem:[#allocation17 + $0x28] sm:$0xff] }
 0xa8a   :  { %v2384_v19 = vpack.c.bf16 %v2370_v8, %v2369_v5  ;;  %v3336_v5 = vld [vmem:[#allocation17 + $0x20] sm:$0xff] }
 0xa8b   :  { %2568 = vmatpush.bf16.msra.mxu2 %v3337_v27 }
 0xa8d   :  { %v2337_v41 = vpop.f32.mrf.mxu3 }
 0xa8e   :  { %v2338_v13 = vadd.f32 %v3417_v47, %v2337_v41  ;;  %v3335_v41 = vld [vmem:[#allocation17 + $0x18] sm:$0xff] }
 0xa8f   :  { %2569 = vmatpush.bf16.msra.mxu2 %v3336_v5 }
 0xa90   :  { %v2371_v53 = vmax.f32 %v2338_v13, 0.0  ;;  %v3334_v13 = vld [vmem:[#allocation17 + $0x10] sm:$0xff] }
 0xa93   :  { %2570 = vmatpush.bf16.msra.mxu2 %v3335_v41 }
 0xa95   :  { %v2339_v21 = vpop.f32.mrf.mxu3 }
 0xa96   :  { %v2340_v40 = vadd.f32 %v3417_v47, %v2339_v21  ;;  %v3333_v21 = vld [vmem:[#allocation17 + $0x8] sm:$0xff] }
 0xa97   :  { %2571 = vmatpush.bf16.msra.mxu2 %v3334_v13 }
 0xa98   :  { %v2372_v37 = vmax.f32 %v2340_v40, 0.0  ;;  %v3332_v40 = vld [vmem:[#allocation17] sm:$0xff] }
 0xa9a   :  { %v2385_v17 = vpack.c.bf16 %v2372_v37, %v2371_v53 }
 0xa9b   :  { %2572 = vmatpush.bf16.msra.mxu2 %v3333_v21 }
 0xa9d   :  { %v2342_v32 = vpop.f32.mrf.mxu3 }
 0xa9e   :  { %v2343_v16 = vadd.f32 %v3417_v47, %v2342_v32 }
 0xa9f   :  { %2573 = vmatpush.bf16.msra.mxu2 %v3332_v40 }
 0xaa0   :  { %v2373_v22 = vmax.f32 %v2343_v16, 0.0 }
 0xaa5   :  { %v2344_v0 = vpop.f32.mrf.mxu3 }
 0xaa6   :  { %v2345_v24 = vadd.f32 %v3417_v47, %v2344_v0 }
 0xaa8   :  { %v2374_v48 = vmax.f32 %v2345_v24, 0.0 }
 0xaaa   :  { %v2386_v55 = vpack.c.bf16 %v2374_v48, %v2373_v22 }
 0xaad   :  { %v2347_v6 = vpop.f32.mrf.mxu3 }
 0xaae   :  { %v2348_v58 = vadd.f32 %v3417_v47, %v2347_v6 }
 0xab0   :  { %v2375_v4 = vmax.f32 %v2348_v58, 0.0 }
 0xab5   :  { %v2349_v10 = vpop.f32.mrf.mxu3 }
 0xab6   :  { %v2350_v30 = vadd.f32 %v3417_v47, %v2349_v10 }
 0xab8   :  { %v2376_v44 = vmax.f32 %v2350_v30, 0.0 }
 0xaba   :  { %v2387_v26 = vpack.c.bf16 %v2376_v44, %v2375_v4 }
 0xabd   :  { %v2352_v35 = vpop.f32.mrf.mxu3 }
 0xabe   :  { %v2353_v9 = vadd.f32 %v3417_v47, %v2352_v35 }
 0xac0   :  { %v2377_v62 = vmax.f32 %v2353_v9, 0.0 }
 0xac5   :  { %v2354_v11 = vpop.f32.mrf.mxu3 }
 0xac6   :  { %v2355_v50 = vadd.f32 %v3417_v47, %v2354_v11 }
 0xac8   :  { %v2378_v51 = vmax.f32 %v2355_v50, 0.0 }
 0xaca   :  { %v2388_v23 = vpack.c.bf16 %v2378_v51, %v2377_v62 }
 0xacd   :  { %v2357_v31 = vpop.f32.mrf.mxu3 }
 0xace   :  { %v2358_v28 = vadd.f32 %v3417_v47, %v2357_v31 }
 0xad0   :  { %v2379_v63 = vmax.f32 %v2358_v28, 0.0 }
 0xad5   :  { %v2359_v25 = vpop.f32.mrf.mxu3 }
 0xad6   :  { %v2360_v1 = vadd.f32 %v3417_v47, %v2359_v25 }
 0xad8   :  { %v2380_v39 = vmax.f32 %v2360_v1, 0.0 }
 0xada   :  { %v2389_v54 = vpack.c.bf16 %v2380_v39, %v2379_v63 }
 0xadd   :  { %v2362_v42 = vpop.f32.mrf.mxu3 }
 0xade   :  { %v2363_v52 = vadd.f32 %v3417_v47, %v2362_v42 }
 0xae0   :  { %v2381_v46 = vmax.f32 %v2363_v52, 0.0 }
 0xae5   :  { %v2364_v34 = vpop.f32.mrf.mxu3 }
 0xae6   :  { %v2365_v2 = vadd.f32 %v3417_v47, %v2364_v34  ;;  %v3326_v47 = vld [vmem:[#allocation16 + $0x90] sm:$0xff] }
 0xae7   :  { %2478 = vmatpush.bf16.msra.mxu1 %v3326_v47 }
 0xae8   :  { %v2382_v43 = vmax.f32 %v2365_v2, 0.0 }
 0xaea   :  { %v2390_v56 = vpack.c.bf16 %v2382_v43, %v2381_v46 }
 0xaeb   :  { %2479 = vmatpush.bf16.msra.mxu1 %v3325_v3 }
 0xaec   :  { %2391 = vmatpush.bf16.msra.mxu0 %v2390_v56 }
 0xaef   :  { %2480 = vmatpush.bf16.msra.mxu1 %v3324_v12 }
 0xaf0   :  { %2392 = vmatpush.bf16.msra.mxu0 %v2389_v54 }
 0xaf4   :  { %2393 = vmatpush.bf16.msra.mxu0 %v2388_v23 }
 0xaf8   :  { %2394 = vmatpush.bf16.msra.mxu0 %v2387_v26 }
 0xafc   :  { %2395 = vmatpush.bf16.msra.mxu0 %v2386_v55  ;;  %v3419_v55 = vld [vmem:[%s4845_s14] ss:$0 sm:$0xff] }
 0xb00   :  { %2396 = vmatpush.bf16.msra.mxu0 %v2385_v17  ;;  %v3418_v17 = vld [vmem:[%s4843_s12] ss:$0 sm:$0xff]  ;;  %s3726_s12 = smov [#allocation19]  }
 0xb01   :  { %s2624_s14 = sshll.u32 %s3726_s12, 4  ;;  %s2625_s14 = int_to_ptr.vmem [resolvable:$true] %s2624_s14 }
 0xb04   :  { %2397 = vmatpush.bf16.msra.mxu0 %v2384_v19 }
 0xb08   :  { %2398 = vmatpush.bf16.msra.mxu0 %v4811_v59 }
 0xb0b   :  { %3153 = vmatmul.msk.bf16.vlgmr.msra.gmra.mxu0 %vm4406_vm11, %v5000_v33 }
 0xb88   :  { %v2400_v8 = vpop.f32.mrf.mxu0 }
 0xb89   :  { %v2405_v19 = vmul.f32 %v2400_v8, %v4699_v60  ;;  %v1936_v60 = vadd.f32 %v4806_v61, %v4743_v20 }
 0xb90   :  { %v2402_v59 = vpop.f32.mrf.mxu0 }
 0xb91   :  { %v2406_v33 = vmul.f32 %v2402_v59, %v4704_v57 }
 0xb93   :  { %v2407_v18 = vpack.c.bf16 %v2406_v33, %v2405_v19 }
 0xb95   :  { %2481 = vmatmul.bf16.vlgmr.msra.gmra.mxu1 %v2407_v18 }
 0xc12   :  { %v2482_v53 = vpop.f32.mrf.mxu1 }
 0xc13   :  { %v2487_v37 = vadd.f32 %v2482_v53, %v4748_v36 }
 0xc15   :  { %v2493_v32 = vadd.f32 %v3418_v17, %v2487_v37 }
 0xc17   :  { %v2495_v24 = vmax.f32 %v2493_v32, 0.0 }
 0xc1a   :  { %v2484_v57 = vpop.f32.mrf.mxu1 }
 0xc1b   :  { %v2488_v16 = vadd.f32 %v2484_v57, %v1936_v60 }
 0xc1d   :  { %v2494_v0 = vadd.f32 %v3418_v17, %v2488_v16 }
 0xc1f   :  { %v2496_v22 = vmax.f32 %v2494_v0, 0.0 }
 0xc21   :  { %v2497_v48 = vpack.c.bf16 %v2496_v22, %v2495_v24 }
 0xc23   :  { %2574 = vmatmul.bf16.vlgmr.msra.gmra.mxu2 %v2497_v48 }
 0xca6   :  { %v2575_v36 = vpop.f32.mrf.mxu2 }
 0xca7   :  { %v2576_v6 = vadd.f32 %v3419_v55, %v2575_v36 }
 0xca9   :  { %v3218_v10 = vmul.f32 -1.442695, %v2576_v6 }
 0xcab   :  { %3424 = vpow2.f32 %v3218_v10 }
 0xcae   :  { %v2577_v35 = vpop.f32.mrf.mxu2 }
 0xcaf   :  { %v2578_v11 = vadd.f32 %v3419_v55, %v2577_v35 }
 0xcb1   :  { %v3425_v31 = vpop.eup %3424  ;;  %v3219_v20 = vmul.f32 -1.442695, %v2578_v11 }
 0xcb2   :  { %v2586_v61 = vadd.f32 1.0, %v3425_v31 }
 0xcb3   :  { %3426 = vpow2.f32 %v3219_v20 }
 0xcb4   :  { %3428 = vrcp.f32 %v2586_v61  ;;  %v2599_v2 = vand.u32 2147483648, %v2586_v61  ;;  %v2597_v46 = vand.u32 2147483647, %v2586_v61  ;;  %vm2593_vm7 = vweird.f32 %v2586_v61 }
 0xcb6   :  { %v2600_v39 = vor.u32 1.1754944e-38, %v2599_v2  ;;  %vm2598_vm11 = vcmp.eq.f32.partialorder %v2597_v46, 8.507059e+37 }
 0xcb9   :  { %v3427_v25 = vpop.eup %3426 }
 0xcba   :  { %v3429_v42 = vpop.eup %3428  ;;  %v2587_v52 = vadd.f32 1.0, %v3427_v25 }
 0xcbb   :  { %v2589_v34 = vmul.f32 %v3429_v42, %v2586_v61  ;;  %vm2594_vm6 = vweird.f32 %v3429_v42 }
 0xcbc   :  { %3430 = vrcp.f32 %v2587_v52  ;;  %vm2595_vm9 = vmor %vm2593_vm7, %vm2594_vm6  ;;  %v2614_v14 = vand.u32 2147483648, %v2587_v52  ;;  %v2612_v51 = vand.u32 2147483647, %v2587_v52  ;;  %vm2608_vm2 = vweird.f32 %v2587_v52 }
 0xcbd   :  { %v2590_v1 = vsub.f32 1.0, %v2589_v34 }
 0xcbe   :  { %v2615_v58 = vor.u32 1.1754944e-38, %v2614_v14  ;;  %vm2613_vm10 = vcmp.eq.f32.partialorder %v2612_v51, 8.507059e+37 }
 0xcbf   :  { %v2591_v28 = vmul.f32 %v3429_v42, %v2590_v1 }
 0xcc1   :  { %v2592_v43 = vadd.f32 %v3429_v42, %v2591_v28 }
 0xcc2   :  { %v3431_v50 = vpop.eup %3430 }
 0xcc3   :  { %v2604_v56 = vmul.f32 %v3431_v50, %v2587_v52  ;;  %v2596_v45 = vsel %vm2595_vm9, %v3429_v42, %v2592_v43  ;;  %vm2609_vm0 = vweird.f32 %v3431_v50 }
 0xcc4   :  { %v2601_v9 = vsel %vm2598_vm11, %v2600_v39, %v2596_v45  ;;  %vm2610_vm8 = vmor %vm2608_vm2, %vm2609_vm0 }
 0xcc5   :  { %v2605_v63 = vsub.f32 1.0, %v2604_v56  ;;  %2618 = vst [vmem:[#allocation19] sm:$0xff] %v2601_v9 }
 0xcc7   :  { %v2606_v30 = vmul.f32 %v3431_v50, %v2605_v63 }
 0xcc9   :  { %v2607_v54 = vadd.f32 %v3431_v50, %v2606_v30 }
 0xccb   :  { %v2611_v62 = vsel %vm2610_vm8, %v3431_v50, %v2607_v54 }
 0xccc   :  { %v2616_v15 = vsel %vm2613_vm10, %v2615_v58, %v2611_v62 }
 0xccd   :  { %2619 = vst [vmem:[#allocation19 + $0x8] sm:$0xff] %v2616_v15 }
 0xcce   :  { %2632 = dma.vmem_to_hbm [thread:$0]  %s2625_s14, 256, %s2627_s9, [#allocation4], %s3727_s30, %s3727_s30, %s3728_s17  }
 0xccf   :  { %3708 = dma.done.wait [#allocation4], 256  }
 0xcd0   :  { %3709 = vsyncadd [#allocation4], 4294967040 }
 0xcd1   :  { %2637 = vsyncpa [#allocation3], 1 }
 0xcd2   :  { %2638 = vsyncpa [#allocation6], 1 }
 0xcd3   :  { %2639 = vsyncpa [#allocation9], 1 }
 0xcd4   :  { %2640 = vsyncpa [#allocation12], 1 }
 0xcd5   :  { %2641 = vsyncpa [#allocation15], 1 }
 0xcd6   :  { %2642 = vsyncpa [#allocation18], 1 }
 0xcd7   :  { %2643 = vsyncpa [#allocation4], 1 }

</bundles_post_ra>
